<compile_context>
chip_gen: v7x
topology: tpu7x:2x2x1
jax: 0.10.0
libtpu: 0.0.40
codegen_flags: <defaults>
</compile_context>

<pallas_src>
import functools

import jax
import jax.numpy as jnp
from jax.experimental import pallas as pl
from jax.experimental.pallas import tpu as pltpu

BN_EPS = 1e-5
LANE = 128


def _vmem_capacity_bytes():
    try:
        return int(pltpu.get_tpu_info().vmem_capacity_bytes)
    except Exception:
        return 64 * 1024 * 1024          # conservative default (v7x per-core VMEM)


_VMEM_PHYS = _vmem_capacity_bytes()
# Scoped-VMEM ceiling for the pallas_calls and the I/O budget used to size the
# row tiles (the budget already includes the resident weights; the ceiling
# keeps ~16-32 MiB of headroom above it).
VMEM_LIMIT_BYTES = max(32 << 20, min(_VMEM_PHYS * 3 // 4, 96 << 20))
IO_VMEM_BUDGET = max(16 << 20, min(_VMEM_PHYS // 2, 64 << 20))


# ------------------------------ small helpers -------------------------------
def _round_up(x, m):
    return (x + m - 1) // m * m


def _cdiv(a, b):
    return (a + b - 1) // b


def _pad2(a, rows, cols):
    return jnp.pad(a, ((0, rows - a.shape[0]), (0, cols - a.shape[1])))


def _choose_rows(budget_bytes, row_bytes, m, cap=1024, explicit=None):
    """Largest bf16-friendly (multiple-of-16) row tile whose double-buffered
    tiles fit `budget_bytes`."""
    if explicit is not None:
        tm = int(explicit)
    else:
        tm = budget_bytes // (2 * max(row_bytes, 1))
    tm = min(tm, cap, _round_up(m, 16))
    return max(16, (tm // 16) * 16)


# ------------------------------ Pallas kernels -------------------------------
def _mm_stats_kernel(p_ref, w_ref, y_ref, st_ref, acc_ref):
    """Pass A: y = patches @ w (bf16 in, f32 MXU acc), y stored bf16; the
    per-channel sum / sumsq are accumulated in a VMEM scratch and written once."""
    j = pl.program_id(1)
    y = jnp.dot(p_ref[...], w_ref[...], preferred_element_type=jnp.float32)
    y_ref[...] = y.astype(y_ref.dtype)

    @pl.when(j == 0)
    def _():
        acc_ref[...] = jnp.zeros_like(acc_ref)

    acc_ref[0:1, :] += jnp.sum(y, axis=0, keepdims=True)
    acc_ref[1:2, :] += jnp.sum(y * y, axis=0, keepdims=True)

    @pl.when(j == pl.num_programs(1) - 1)
    def _():
        st_ref[...] = acc_ref[...]


def _mm2_stats_kernel(p_ref, ps_ref, w_ref, ws_ref, y_ref, s_ref, st_ref, acc_ref):
    """Pass A with fused 1x1 projection shortcut: two matmuls, two stats slabs
    (rows 0-1: main conv, rows 8-9: shortcut) in one scratch, written once."""
    j = pl.program_id(1)
    y = jnp.dot(p_ref[...], w_ref[...], preferred_element_type=jnp.float32)
    s = jnp.dot(ps_ref[...], ws_ref[...], preferred_element_type=jnp.float32)
    y_ref[...] = y.astype(y_ref.dtype)
    s_ref[...] = s.astype(s_ref.dtype)

    @pl.when(j == 0)
    def _():
        acc_ref[...] = jnp.zeros_like(acc_ref)

    acc_ref[0:1, :] += jnp.sum(y, axis=0, keepdims=True)
    acc_ref[1:2, :] += jnp.sum(y * y, axis=0, keepdims=True)
    acc_ref[8:9, :] += jnp.sum(s, axis=0, keepdims=True)
    acc_ref[9:10, :] += jnp.sum(s * s, axis=0, keepdims=True)

    @pl.when(j == pl.num_programs(1) - 1)
    def _():
        st_ref[...] = acc_ref[...]


def _finalize_kernel(y_ref, sb_ref, o_ref, *, relu):
    """out = relu?(y*scale + bias); f32 math, bf16 input stream."""
    y = y_ref[...].astype(jnp.float32) * sb_ref[0:1, :] + sb_ref[1:2, :]
    if relu:
        y = jnp.maximum(y, 0.0)
    o_ref[...] = y.astype(o_ref.dtype)


def _finalize_add_kernel(y_ref, r_ref, sb_ref, o_ref, *, relu):
    """Identity shortcut: out = relu?(y*scale + bias + residual) (no FMA on r)."""
    y = y_ref[...].astype(jnp.float32) * sb_ref[0:1, :] + sb_ref[1:2, :]
    y = y + r_ref[...].astype(jnp.float32)
    if relu:
        y = jnp.maximum(y, 0.0)
    o_ref[...] = y.astype(o_ref.dtype)


def _finalize_proj_kernel(y_ref, s_ref, sb_ref, sbs_ref, o_ref, *, relu):
    """Projection shortcut: out = relu?((y*sb) + (s*sbs))."""
    y = y_ref[...].astype(jnp.float32) * sb_ref[0:1, :] + sb_ref[1:2, :]
    y = y + (s_ref[...].astype(jnp.float32) * sbs_ref[0:1, :] + sbs_ref[1:2, :])
    if relu:
        y = jnp.maximum(y, 0.0)
    o_ref[...] = y.astype(o_ref.dtype)


# ------------------------- conv + BN + act building block --------------------
def _bn_scale_bias(sum_row, sumsq_row, count, gamma, beta, cpad):
    """Fold one-pass batch stats + affine into a single (scale, bias) pair.
    Stats come from the f32 MXU accumulator; the max() guards f32 cancellation
    of E[x^2]-E[x]^2 (adequate here; a shifted/two-pass reduce would be safer
    for very large activation means)."""
    mean = sum_row / count
    var = jnp.maximum(sumsq_row / count - mean * mean, 0.0)
    g = jnp.pad(gamma.astype(jnp.float32), (0, cpad - gamma.shape[0]))
    b = jnp.pad(beta.astype(jnp.float32), (0, cpad - beta.shape[0]))
    scale = g * jax.lax.rsqrt(var + BN_EPS)
    bias = b - mean * scale
    return jnp.zeros((8, cpad), jnp.float32).at[0].set(scale).at[1].set(bias)


def conv_bn_act(patches, w_mat, gamma, beta, *, relu=True,
                out_dtype=jnp.float32,
                residual=None,                    # identity shortcut rows (M, C), bf16
                sc_patches=None, sc_w=None,       # fused 1x1 projection shortcut
                sc_gamma=None, sc_beta=None,
                tile_m=None):
    """relu?( BN(patches @ w) + shortcut? ) -> (M, Cout) in out_dtype."""
    M, K = patches.shape
    Cout = w_mat.shape[1]
    cpad = _round_up(Cout, LANE)
    kpad = _round_up(K, LANE)
    has_proj = sc_patches is not None
    has_res = residual is not None

    # ---------------- pass-A tiling (budget includes resident weights) -------
    kspad = _round_up(sc_patches.shape[1], LANE) if has_proj else 0
    stat_rows = 16 if has_proj else 8
    fixed_a = 2 * (kpad * cpad * 2)                       # conv weight, 2 buffers
    if has_proj:
        fixed_a += 2 * (kspad * cpad * 2)                 # 1x1 shortcut weight
    fixed_a += 3 * (stat_rows * cpad * 4)                 # stats out bufs + scratch
    row_a = 2 * kpad + 2 * cpad                           # bf16 patches in + bf16 y out
    if has_proj:
        row_a += 2 * kspad + 2 * cpad
    tm = _choose_rows(max(IO_VMEM_BUDGET - fixed_a, 0), row_a, M,
                      cap=1024, explicit=tile_m)

    ntiles = _cdiv(M, tm)
    ncores = 2 if ntiles >= 2 else 1       # megacore split on v7x; free elsewhere
    steps = _cdiv(ntiles, ncores)
    total_tiles = ncores * steps
    mpad = total_tiles * tm

    p = _pad2(patches.astype(jnp.bfloat16), mpad, kpad)
    w = _pad2(w_mat.astype(jnp.bfloat16), kpad, cpad)

    row_map = lambda i, j: (i * steps + j, 0)
    y_spec = pl.BlockSpec((tm, cpad), row_map)
    st_spec = pl.BlockSpec((stat_rows, cpad), lambda i, j: (i, 0))
    acc_params = pltpu.CompilerParams(
        dimension_semantics=("parallel", "arbitrary"),
        vmem_limit_bytes=VMEM_LIMIT_BYTES)

    if has_proj:
        ps = _pad2(sc_patches.astype(jnp.bfloat16), mpad, kspad)
        ws = _pad2(sc_w.astype(jnp.bfloat16), kspad, cpad)
        y, s, st = pl.pallas_call(
            _mm2_stats_kernel,
            out_shape=(jax.ShapeDtypeStruct((mpad, cpad), jnp.bfloat16),
                       jax.ShapeDtypeStruct((mpad, cpad), jnp.bfloat16),
                       jax.ShapeDtypeStruct((ncores * 16, cpad), jnp.float32)),
            grid_spec=pltpu.PrefetchScalarGridSpec(
                num_scalar_prefetch=0, grid=(ncores, steps),
                in_specs=[pl.BlockSpec((tm, kpad), row_map),
                          pl.BlockSpec((tm, kspad), row_map),
                          pl.BlockSpec((kpad, cpad), lambda i, j: (0, 0)),
                          pl.BlockSpec((kspad, cpad), lambda i, j: (0, 0))],
                out_specs=[y_spec, y_spec, st_spec],
                scratch_shapes=[pltpu.VMEM((16, cpad), jnp.float32)]),
            compiler_params=acc_params,
        )(p, ps, w, ws)
        st = st.reshape(ncores, 16, cpad).sum(axis=0)      # reduce per-core slabs
        sb_y = _bn_scale_bias(st[0], st[1], M, gamma, beta, cpad)
        sb_s = _bn_scale_bias(st[8], st[9], M, sc_gamma, sc_beta, cpad)
    else:
        y, st = pl.pallas_call(
            _mm_stats_kernel,
            out_shape=(jax.ShapeDtypeStruct((mpad, cpad), jnp.bfloat16),
                       jax.ShapeDtypeStruct((ncores * 8, cpad), jnp.float32)),
            grid_spec=pltpu.PrefetchScalarGridSpec(
                num_scalar_prefetch=0, grid=(ncores, steps),
                in_specs=[pl.BlockSpec((tm, kpad), row_map),
                          pl.BlockSpec((kpad, cpad), lambda i, j: (0, 0))],
                out_specs=[y_spec, st_spec],
                scratch_shapes=[pltpu.VMEM((8, cpad), jnp.float32)]),
            compiler_params=acc_params,
        )(p, w)
        st = st.reshape(ncores, 8, cpad).sum(axis=0)
        sb_y = _bn_scale_bias(st[0], st[1], M, gamma, beta, cpad)
        sb_s = None

    # ---------------- pass-B tiling (pure streaming, larger tile) ------------
    out_bytes = 2 if out_dtype == jnp.bfloat16 else 4
    row_b = 2 * cpad + out_bytes * cpad + (2 * cpad if (has_proj or has_res) else 0)
    cap_rows = max(tm, (IO_VMEM_BUDGET - 4 * 8 * cpad * 4) // (2 * row_b))
    max_mult = max(1, min(total_tiles, cap_rows // tm, 2048 // tm))
    k_mult = max_mult
    while total_tiles % k_mult:
        k_mult -= 1
    tmb = tm * k_mult
    grid_b = (mpad // tmb,)
    rowb_spec = pl.BlockSpec((tmb, cpad), lambda i: (i, 0))
    sb_spec = pl.BlockSpec((8, cpad), lambda i: (0, 0))
    par_params = pltpu.CompilerParams(dimension_semantics=("parallel",),
                                      vmem_limit_bytes=VMEM_LIMIT_BYTES)
    out_shape = jax.ShapeDtypeStruct((mpad, cpad), out_dtype)

    if has_proj:
        out = pl.pallas_call(
            functools.partial(_finalize_proj_kernel, relu=relu),
            out_shape=out_shape,
            grid_spec=pltpu.PrefetchScalarGridSpec(
                num_scalar_prefetch=0, grid=grid_b,
                in_specs=[rowb_spec, rowb_spec, sb_spec, sb_spec],
                out_specs=rowb_spec),
            compiler_params=par_params,
        )(y, s, sb_y, sb_s)
    elif has_res:
        r = _pad2(residual.astype(jnp.bfloat16), mpad, cpad)
        out = pl.pallas_call(
            functools.partial(_finalize_add_kernel, relu=relu),
            out_shape=out_shape,
            grid_spec=pltpu.PrefetchScalarGridSpec(
                num_scalar_prefetch=0, grid=grid_b,
                in_specs=[rowb_spec, rowb_spec, sb_spec],
                out_specs=rowb_spec),
            compiler_params=par_params,
        )(y, r, sb_y)
    else:
        out = pl.pallas_call(
            functools.partial(_finalize_kernel, relu=relu),
            out_shape=out_shape,
            grid_spec=pltpu.PrefetchScalarGridSpec(
                num_scalar_prefetch=0, grid=grid_b,
                in_specs=[rowb_spec, sb_spec],
                out_specs=rowb_spec),
            compiler_params=par_params,
        )(y, sb_y)
    return out[:M, :Cout]


# --------------------------------- JAX glue ----------------------------------
def im2col(x, kh, kw, stride, pad):
    """x: (N, H, W, C) bf16 -> (N*Ho*Wo, kh*kw*C) bf16 patches, plus (Ho, Wo)."""
    # TODO(synk): build the 3x3 patches inside the pass-A kernel (halo row
    # blocks / shifted VMEM slices) to remove the 9x patch inflation in HBM
    # entirely; for now the patches are materialized and streamed in bf16.
    N, H, W, C = x.shape
    xp = jnp.pad(x, ((0, 0), (pad, pad), (pad, pad), (0, 0)))
    Ho = (H + 2 * pad - kh) // stride + 1
    Wo = (W + 2 * pad - kw) // stride + 1
    cols = []
    for i in range(kh):
        for j in range(kw):
            cols.append(xp[:, i:i + Ho * stride:stride, j:j + Wo * stride:stride, :])
    patches = jnp.stack(cols, axis=3)                # (N, Ho, Wo, kh*kw, C)
    return patches.reshape(N * Ho * Wo, kh * kw * C), Ho, Wo


def torch_weight_to_mat(w):
    """(Cout, Cin, KH, KW) PyTorch conv weight -> (KH*KW*Cin, Cout)."""
    Cout, Cin, KH, KW = w.shape
    return jnp.transpose(w, (2, 3, 1, 0)).reshape(KH * KW * Cin, Cout)


@functools.partial(jax.jit, static_argnums=(2, 3))
def basic_block_forward(x_nchw, params, stride, tile_m=None):
    """BasicBlock forward; input/output in PyTorch NCHW layout (removeBN=False)."""
    x = jnp.transpose(x_nchw, (0, 2, 3, 1)).astype(jnp.bfloat16)  # NHWC, bf16 stream
    N, H, W, Cin = x.shape
    Cout = params["conv1_w"].shape[0]

    # conv1 (3x3, stride, pad=1) -> bn1 -> relu; out1 stays bf16 (feeds conv2)
    p1, Ho, Wo = im2col(x, 3, 3, stride, 1)
    out1 = conv_bn_act(p1, torch_weight_to_mat(params["conv1_w"]),
                       params["bn1_gamma"], params["bn1_beta"],
                       relu=True, out_dtype=jnp.bfloat16, tile_m=tile_m)
    out1_img = out1.reshape(N, Ho, Wo, Cout)

    # conv2 (3x3, s=1, pad=1) -> bn2 -> (+ shortcut) -> relu (shortcut fused in)
    p2, _, _ = im2col(out1_img, 3, 3, 1, 1)
    if stride != 1 or Cin != Cout:
        xs, _, _ = im2col(x, 1, 1, stride, 0)   # rows for the 1x1 projection
        out2 = conv_bn_act(p2, torch_weight_to_mat(params["conv2_w"]),
                           params["bn2_gamma"], params["bn2_beta"], relu=True,
                           out_dtype=jnp.float32,
                           sc_patches=xs,
                           sc_w=torch_weight_to_mat(params["sc_w"]),
                           sc_gamma=params["sc_gamma"],
                           sc_beta=params["sc_beta"],
                           tile_m=tile_m)
    else:
        out2 = conv_bn_act(p2, torch_weight_to_mat(params["conv2_w"]),
                           params["bn2_gamma"], params["bn2_beta"], relu=True,
                           out_dtype=jnp.float32,
                           residual=x.reshape(N * H * W, Cin),
                           tile_m=tile_m)
    out = out2.reshape(N, Ho, Wo, Cout)
    return jnp.transpose(out, (0, 3, 1, 2))      # back to NCHW, f32


# ----------------------------- pure-JAX reference ----------------------------
def reference_forward(x_nchw, params, stride):
    """Reference with numerics matched to the kernel pipeline: bf16 MXU
    operands, f32 accumulation & batch statistics, bf16 storage of the conv
    outputs / intermediate activations (what the Pallas passes stream via HBM)."""
    f32, bf16 = jnp.float32, jnp.bfloat16

    def q(v):                                   # bf16 storage round-trip
        return v.astype(bf16).astype(f32)

    def conv(x, w, s, p):
        return jax.lax.conv_general_dilated(
            x.astype(bf16), w.astype(bf16),
            window_strides=(s, s), padding=[(p, p), (p, p)],
            dimension_numbers=("NCHW", "OIHW", "NCHW"),
            preferred_element_type=f32)

    def bn(y, g, b):
        # stats from the f32 accumulator; normalization applied to the bf16
        # copy that pass B reads back (mirrors the kernel's two-pass split)
        mean = jnp.mean(y, axis=(0, 2, 3), keepdims=True)
        var = jnp.mean(jnp.square(y - mean), axis=(0, 2, 3), keepdims=True)
        scale = g.reshape(1, -1, 1, 1) * jax.lax.rsqrt(var + BN_EPS)
        bias = b.reshape(1, -1, 1, 1) - mean * scale
        return q(y) * scale + bias

    Cin = x_nchw.shape[1]
    Cout = params["conv1_w"].shape[0]
    xq = q(x_nchw.astype(f32))
    out1 = q(jax.nn.relu(bn(conv(xq, params["conv1_w"], stride, 1),
                            params["bn1_gamma"], params["bn1_beta"])))
    out2 = bn(conv(out1, params["conv2_w"], 1, 1),
              params["bn2_gamma"], params["bn2_beta"])
    if stride != 1 or Cin != Cout:
        sc = bn(conv(xq, params["sc_w"], stride, 0),
                params["sc_gamma"], params["sc_beta"])
    else:
        sc = xq
    return jax.nn.relu(out2 + sc)


# ------------------------------------ main ------------------------------------
def _make_params(key, cin, cout):
    ks = jax.random.split(key, 9)
    return {
        "conv1_w": 0.1 * jax.random.normal(ks[0], (cout, cin, 3, 3), jnp.float32),
        "bn1_gamma": 1.0 + 0.1 * jax.random.normal(ks[1], (cout,), jnp.float32),
        "bn1_beta": 0.1 * jax.random.normal(ks[2], (cout,), jnp.float32),
        "conv2_w": 0.1 * jax.random.normal(ks[3], (cout, cout, 3, 3), jnp.float32),
        "bn2_gamma": 1.0 + 0.1 * jax.random.normal(ks[4], (cout,), jnp.float32),
        "bn2_beta": 0.1 * jax.random.normal(ks[5], (cout,), jnp.float32),
        "sc_w": 0.1 * jax.random.normal(ks[6], (cout, cin, 1, 1), jnp.float32),
        "sc_gamma": 1.0 + 0.1 * jax.random.normal(ks[7], (cout,), jnp.float32),
        "sc_beta": 0.1 * jax.random.normal(ks[8], (cout,), jnp.float32),
    }


if __name__ == "__main__":
    key = jax.random.PRNGKey(0)
    configs = [
        # (N, Cin, Cout, H, W, stride, tile_m)
        (2, 4, 8, 16, 16, 1, None),   # projection shortcut, single tile
        (2, 4, 8, 16, 16, 2, 64),     # projection, stride 2, 2 tiles -> 2-core split
        (2, 8, 8, 16, 16, 1, 128),    # identity shortcut, 4 tiles (2 per core)
    ]
    for idx, (N, Cin, Cout, H, W, stride, tile_m) in enumerate(configs):
        kp, kx, key = jax.random.split(key, 3)
        params = _make_params(kp, Cin, Cout)
        x = jax.random.normal(kx, (N, Cin, H, W), jnp.float32)

        out = jax.block_until_ready(basic_block_forward(x, params, stride, tile_m))
        ref = jax.block_until_ready(reference_forward(x, params, stride))

        Ho = (H + 2 - 3) // stride + 1
        assert out.shape == (N, Cout, Ho, Ho), (idx, out.shape)
        err = float(jnp.max(jnp.abs(out - ref)))
        assert jnp.allclose(out, ref, rtol=1e-2, atol=1e-2), (idx, err)
    print("KERNEL_OK")
</pallas_src>

<mosaic_0001>
module attributes {stable_mosaic.version = 11 : i64} {
  func.func @_mm_stats_kernel(%arg0: i32, %arg1: i32, %arg2: memref<512x128xbf16, #tpu.memory_space<vmem>>, %arg3: memref<128x128xbf16, #tpu.memory_space<vmem>>, %arg4: memref<512x128xbf16, #tpu.memory_space<vmem>>, %arg5: memref<8x128xf32, #tpu.memory_space<vmem>>, %arg6: memref<8x128xf32, #tpu.memory_space<vmem>>) attributes {dimension_semantics = [#tpu.dimension_semantics<parallel>, #tpu.dimension_semantics<arbitrary>], iteration_bounds = array<i64: 1, 1>, scalar_prefetch = 0 : i64, scratch_operands = 1 : i64, tpu.core_type = #tpu.core_type<tc>, window_params = [{transform_indices = @transform_0, window_bounds = array<i64: 512, 128>}, {pipeline_mode = #tpu.pipeline_mode<synchronous>, transform_indices = @transform_1, window_bounds = array<i64: 128, 128>}, {transform_indices = @transform_2, window_bounds = array<i64: 512, 128>}, {transform_indices = @transform_3, window_bounds = array<i64: 8, 128>}]} {
    %c0 = arith.constant 0 : index
    %c0_0 = arith.constant 0 : index
    %0 = vector.load %arg2[%c0, %c0_0] : memref<512x128xbf16, #tpu.memory_space<vmem>>, vector<512x128xbf16>
    %c0_1 = arith.constant 0 : index
    %c0_2 = arith.constant 0 : index
    %1 = vector.load %arg3[%c0_1, %c0_2] : memref<128x128xbf16, #tpu.memory_space<vmem>>, vector<128x128xbf16>
    %cst = arith.constant dense<0.000000e+00> : vector<512x128xf32>
    %2 = tpu.matmul %0, %1, %cst {dimension_numbers = #tpu.dot_dimension_numbers<[1], [0], [0], [1], [0, 0, 1, 1], [], []>} : vector<512x128xbf16>, vector<128x128xbf16>, vector<512x128xf32> -> vector<512x128xf32>
    %3 = arith.truncf %2 : vector<512x128xf32> to vector<512x128xbf16>
    %c0_3 = arith.constant 0 : index
    %c0_4 = arith.constant 0 : index
    %4 = vector.load %arg4[%c0_3, %c0_4] : memref<512x128xbf16, #tpu.memory_space<vmem>>, vector<512x128xbf16>
    tpu.vector_store %arg4[%c0_3, %c0_4], %3 {strides = array<i32>} : memref<512x128xbf16, #tpu.memory_space<vmem>>, vector<512x128xbf16>,
    %c0_i32 = arith.constant 0 : i32
    %5 = arith.cmpi eq, %arg1, %c0_i32 : i32
    %6 = arith.extui %5 : i1 to i32
    %c0_i32_5 = arith.constant 0 : i32
    %7 = arith.cmpi ne, %6, %c0_i32_5 : i32
    scf.if %7 {
      %cst_17 = arith.constant 0.000000e+00 : f32
      %22 = vector.broadcast %cst_17 : f32 to vector<8x128xf32>
      %c0_18 = arith.constant 0 : index
      %c0_19 = arith.constant 0 : index
      %23 = vector.load %arg6[%c0_18, %c0_19] : memref<8x128xf32, #tpu.memory_space<vmem>>, vector<8x128xf32>
      tpu.vector_store %arg6[%c0_18, %c0_19], %22 {strides = array<i32>} : memref<8x128xf32, #tpu.memory_space<vmem>>, vector<8x128xf32>,
    } else {
    }
    %c0_6 = arith.constant 0 : index
    %c0_7 = arith.constant 0 : index
    %8 = vector.load %arg6[%c0_6, %c0_7] : memref<8x128xf32, #tpu.memory_space<vmem>>, vector<1x128xf32>
    %cst_8 = arith.constant dense<0.000000e+00> : vector<128xf32>
    %9 = vector.multi_reduction <add>, %2, %cst_8 [0] : vector<512x128xf32> to vector<128xf32>
    %10 = vector.shape_cast %9 : vector<128xf32> to vector<1x128xf32>
    %11 = arith.addf %8, %10 : vector<1x128xf32>
    %c0_9 = arith.constant 0 : index
    %c0_10 = arith.constant 0 : index
    %12 = vector.load %arg6[%c0_9, %c0_10] : memref<8x128xf32, #tpu.memory_space<vmem>>, vector<1x128xf32>
    tpu.vector_store %arg6[%c0_9, %c0_10], %11 {strides = array<i32>} : memref<8x128xf32, #tpu.memory_space<vmem>>, vector<1x128xf32>,
    %c1 = arith.constant 1 : index
    %c0_11 = arith.constant 0 : index
    %13 = vector.load %arg6[%c1, %c0_11] : memref<8x128xf32, #tpu.memory_space<vmem>>, vector<1x128xf32>
    %14 = arith.mulf %2, %2 : vector<512x128xf32>
    %cst_12 = arith.constant dense<0.000000e+00> : vector<128xf32>
    %15 = vector.multi_reduction <add>, %14, %cst_12 [0] : vector<512x128xf32> to vector<128xf32>
    %16 = vector.shape_cast %15 : vector<128xf32> to vector<1x128xf32>
    %17 = arith.addf %13, %16 : vector<1x128xf32>
    %c1_13 = arith.constant 1 : index
    %c0_14 = arith.constant 0 : index
    %18 = vector.load %arg6[%c1_13, %c0_14] : memref<8x128xf32, #tpu.memory_space<vmem>>, vector<1x128xf32>
    tpu.vector_store %arg6[%c1_13, %c0_14], %17 {strides = array<i32>} : memref<8x128xf32, #tpu.memory_space<vmem>>, vector<1x128xf32>,
    %c0_i32_15 = arith.constant 0 : i32
    %19 = arith.cmpi eq, %arg1, %c0_i32_15 : i32
    %20 = arith.extui %19 : i1 to i32
    %c0_i32_16 = arith.constant 0 : i32
    %21 = arith.cmpi ne, %20, %c0_i32_16 : i32
    scf.if %21 {
      %c0_17 = arith.constant 0 : index
      %c0_18 = arith.constant 0 : index
      %22 = vector.load %arg6[%c0_17, %c0_18] : memref<8x128xf32, #tpu.memory_space<vmem>>, vector<8x128xf32>
      %c0_19 = arith.constant 0 : index
      %c0_20 = arith.constant 0 : index
      %23 = vector.load %arg5[%c0_19, %c0_20] : memref<8x128xf32, #tpu.memory_space<vmem>>, vector<8x128xf32>
      tpu.vector_store %arg5[%c0_19, %c0_20], %22 {strides = array<i32>} : memref<8x128xf32, #tpu.memory_space<vmem>>, vector<8x128xf32>,
    } else {
    }
    return
  }
  func.func @transform_0(%arg0: i32, %arg1: i32) -> (i32, i32) {
    %c1_i32 = arith.constant 1 : i32
    %0 = arith.muli %arg0, %c1_i32 : i32
    %1 = arith.addi %0, %arg1 : i32
    %c0_i32 = arith.constant 0 : i32
    %c0_i32_0 = arith.constant 0 : i32
    return %1, %c0_i32 : i32, i32
  }
  func.func @transform_1(%arg0: i32, %arg1: i32) -> (i32, i32) {
    %c0_i32 = arith.constant 0 : i32
    %c0_i32_0 = arith.constant 0 : i32
    %c0_i32_1 = arith.constant 0 : i32
    return %c0_i32, %c0_i32_0 : i32, i32
  }
  func.func @transform_2(%arg0: i32, %arg1: i32) -> (i32, i32) {
    %c1_i32 = arith.constant 1 : i32
    %0 = arith.muli %arg0, %c1_i32 : i32
    %1 = arith.addi %0, %arg1 : i32
    %c0_i32 = arith.constant 0 : i32
    %c0_i32_0 = arith.constant 0 : i32
    return %1, %c0_i32 : i32, i32
  }
  func.func @transform_3(%arg0: i32, %arg1: i32) -> (i32, i32) {
    %c0_i32 = arith.constant 0 : i32
    %c0_i32_0 = arith.constant 0 : i32
    return %arg0, %c0_i32 : i32, i32
  }
}

module attributes {stable_mosaic.version = 11 : i64} {
  func.func @_finalize_kernel(%arg0: i32, %arg1: memref<512x128xbf16, #tpu.memory_space<vmem>>, %arg2: memref<8x128xf32, #tpu.memory_space<vmem>>, %arg3: memref<512x128xbf16, #tpu.memory_space<vmem>>) attributes {dimension_semantics = [#tpu.dimension_semantics<parallel>], iteration_bounds = array<i64: 1>, scalar_prefetch = 0 : i64, scratch_operands = 0 : i64, tpu.core_type = #tpu.core_type<tc>, window_params = [{transform_indices = @transform_0, window_bounds = array<i64: 512, 128>}, {pipeline_mode = #tpu.pipeline_mode<synchronous>, transform_indices = @transform_1, window_bounds = array<i64: 8, 128>}, {transform_indices = @transform_2, window_bounds = array<i64: 512, 128>}]} {
    %c0 = arith.constant 0 : index
    %c0_0 = arith.constant 0 : index
    %0 = vector.load %arg1[%c0, %c0_0] : memref<512x128xbf16, #tpu.memory_space<vmem>>, vector<512x128xbf16>
    %1 = arith.extf %0 : vector<512x128xbf16> to vector<512x128xf32>
    %c0_1 = arith.constant 0 : index
    %c0_2 = arith.constant 0 : index
    %2 = vector.load %arg2[%c0_1, %c0_2] : memref<8x128xf32, #tpu.memory_space<vmem>>, vector<1x128xf32>
    %3 = vector.broadcast %2 : vector<1x128xf32> to vector<512x128xf32>
    %4 = arith.mulf %1, %3 : vector<512x128xf32>
    %c1 = arith.constant 1 : index
    %c0_3 = arith.constant 0 : index
    %5 = vector.load %arg2[%c1, %c0_3] : memref<8x128xf32, #tpu.memory_space<vmem>>, vector<1x128xf32>
    %6 = vector.broadcast %5 : vector<1x128xf32> to vector<512x128xf32>
    %7 = arith.addf %4, %6 : vector<512x128xf32>
    %cst = arith.constant 0.000000e+00 : f32
    %8 = vector.broadcast %cst : f32 to vector<512x128xf32>
    %9 = arith.maximumf %7, %8 : vector<512x128xf32>
    %10 = arith.truncf %9 : vector<512x128xf32> to vector<512x128xbf16>
    %c0_4 = arith.constant 0 : index
    %c0_5 = arith.constant 0 : index
    %11 = vector.load %arg3[%c0_4, %c0_5] : memref<512x128xbf16, #tpu.memory_space<vmem>>, vector<512x128xbf16>
    tpu.vector_store %arg3[%c0_4, %c0_5], %10 {strides = array<i32>} : memref<512x128xbf16, #tpu.memory_space<vmem>>, vector<512x128xbf16>,
    return
  }
  func.func @transform_0(%arg0: i32) -> (i32, i32) {
    %c0_i32 = arith.constant 0 : i32
    %c0_i32_0 = arith.constant 0 : i32
    return %arg0, %c0_i32 : i32, i32
  }
  func.func @transform_1(%arg0: i32) -> (i32, i32) {
    %c0_i32 = arith.constant 0 : i32
    %c0_i32_0 = arith.constant 0 : i32
    %c0_i32_1 = arith.constant 0 : i32
    return %c0_i32, %c0_i32_0 : i32, i32
  }
  func.func @transform_2(%arg0: i32) -> (i32, i32) {
    %c0_i32 = arith.constant 0 : i32
    %c0_i32_0 = arith.constant 0 : i32
    return %arg0, %c0_i32 : i32, i32
  }
}

module attributes {stable_mosaic.version = 11 : i64} {
  func.func @_finalize_proj_kernel(%arg0: i32, %arg1: memref<512x128xbf16, #tpu.memory_space<vmem>>, %arg2: memref<512x128xbf16, #tpu.memory_space<vmem>>, %arg3: memref<8x128xf32, #tpu.memory_space<vmem>>, %arg4: memref<8x128xf32, #tpu.memory_space<vmem>>, %arg5: memref<512x128xf32, #tpu.memory_space<vmem>>) attributes {dimension_semantics = [#tpu.dimension_semantics<parallel>], iteration_bounds = array<i64: 1>, scalar_prefetch = 0 : i64, scratch_operands = 0 : i64, tpu.core_type = #tpu.core_type<tc>, window_params = [{transform_indices = @transform_0, window_bounds = array<i64: 512, 128>}, {transform_indices = @transform_1, window_bounds = array<i64: 512, 128>}, {pipeline_mode = #tpu.pipeline_mode<synchronous>, transform_indices = @transform_2, window_bounds = array<i64: 8, 128>}, {pipeline_mode = #tpu.pipeline_mode<synchronous>, transform_indices = @transform_3, window_bounds = array<i64: 8, 128>}, {transform_indices = @transform_4, window_bounds = array<i64: 512, 128>}]} {
    %c0 = arith.constant 0 : index
    %c0_0 = arith.constant 0 : index
    %0 = vector.load %arg1[%c0, %c0_0] : memref<512x128xbf16, #tpu.memory_space<vmem>>, vector<512x128xbf16>
    %1 = arith.extf %0 : vector<512x128xbf16> to vector<512x128xf32>
    %c0_1 = arith.constant 0 : index
    %c0_2 = arith.constant 0 : index
    %2 = vector.load %arg3[%c0_1, %c0_2] : memref<8x128xf32, #tpu.memory_space<vmem>>, vector<1x128xf32>
    %3 = vector.broadcast %2 : vector<1x128xf32> to vector<512x128xf32>
    %4 = arith.mulf %1, %3 : vector<512x128xf32>
    %c1 = arith.constant 1 : index
    %c0_3 = arith.constant 0 : index
    %5 = vector.load %arg3[%c1, %c0_3] : memref<8x128xf32, #tpu.memory_space<vmem>>, vector<1x128xf32>
    %6 = vector.broadcast %5 : vector<1x128xf32> to vector<512x128xf32>
    %7 = arith.addf %4, %6 : vector<512x128xf32>
    %c0_4 = arith.constant 0 : index
    %c0_5 = arith.constant 0 : index
    %8 = vector.load %arg2[%c0_4, %c0_5] : memref<512x128xbf16, #tpu.memory_space<vmem>>, vector<512x128xbf16>
    %9 = arith.extf %8 : vector<512x128xbf16> to vector<512x128xf32>
    %c0_6 = arith.constant 0 : index
    %c0_7 = arith.constant 0 : index
    %10 = vector.load %arg4[%c0_6, %c0_7] : memref<8x128xf32, #tpu.memory_space<vmem>>, vector<1x128xf32>
    %11 = vector.broadcast %10 : vector<1x128xf32> to vector<512x128xf32>
    %12 = arith.mulf %9, %11 : vector<512x128xf32>
    %c1_8 = arith.constant 1 : index
    %c0_9 = arith.constant 0 : index
    %13 = vector.load %arg4[%c1_8, %c0_9] : memref<8x128xf32, #tpu.memory_space<vmem>>, vector<1x128xf32>
    %14 = vector.broadcast %13 : vector<1x128xf32> to vector<512x128xf32>
    %15 = arith.addf %12, %14 : vector<512x128xf32>
    %16 = arith.addf %7, %15 : vector<512x128xf32>
    %cst = arith.constant 0.000000e+00 : f32
    %17 = vector.broadcast %cst : f32 to vector<512x128xf32>
    %18 = arith.maximumf %16, %17 : vector<512x128xf32>
    %c0_10 = arith.constant 0 : index
    %c0_11 = arith.constant 0 : index
    %19 = vector.load %arg5[%c0_10, %c0_11] : memref<512x128xf32, #tpu.memory_space<vmem>>, vector<512x128xf32>
    tpu.vector_store %arg5[%c0_10, %c0_11], %18 {strides = array<i32>} : memref<512x128xf32, #tpu.memory_space<vmem>>, vector<512x128xf32>,
    return
  }
  func.func @transform_0(%arg0: i32) -> (i32, i32) {
    %c0_i32 = arith.constant 0 : i32
    %c0_i32_0 = arith.constant 0 : i32
    return %arg0, %c0_i32 : i32, i32
  }
  func.func @transform_1(%arg0: i32) -> (i32, i32) {
    %c0_i32 = arith.constant 0 : i32
    %c0_i32_0 = arith.constant 0 : i32
    return %arg0, %c0_i32 : i32, i32
  }
  func.func @transform_2(%arg0: i32) -> (i32, i32) {
    %c0_i32 = arith.constant 0 : i32
    %c0_i32_0 = arith.constant 0 : i32
    %c0_i32_1 = arith.constant 0 : i32
    return %c0_i32, %c0_i32_0 : i32, i32
  }
  func.func @transform_3(%arg0: i32) -> (i32, i32) {
    %c0_i32 = arith.constant 0 : i32
    %c0_i32_0 = arith.constant 0 : i32
    %c0_i32_1 = arith.constant 0 : i32
    return %c0_i32, %c0_i32_0 : i32, i32
  }
  func.func @transform_4(%arg0: i32) -> (i32, i32) {
    %c0_i32 = arith.constant 0 : i32
    %c0_i32_0 = arith.constant 0 : i32
    return %arg0, %c0_i32 : i32, i32
  }
}

module attributes {stable_mosaic.version = 11 : i64} {
  func.func @_mm2_stats_kernel(%arg0: i32, %arg1: i32, %arg2: memref<512x128xbf16, #tpu.memory_space<vmem>>, %arg3: memref<512x128xbf16, #tpu.memory_space<vmem>>, %arg4: memref<128x128xbf16, #tpu.memory_space<vmem>>, %arg5: memref<128x128xbf16, #tpu.memory_space<vmem>>, %arg6: memref<512x128xbf16, #tpu.memory_space<vmem>>, %arg7: memref<512x128xbf16, #tpu.memory_space<vmem>>, %arg8: memref<16x128xf32, #tpu.memory_space<vmem>>, %arg9: memref<16x128xf32, #tpu.memory_space<vmem>>) attributes {dimension_semantics = [#tpu.dimension_semantics<parallel>, #tpu.dimension_semantics<arbitrary>], iteration_bounds = array<i64: 1, 1>, scalar_prefetch = 0 : i64, scratch_operands = 1 : i64, tpu.core_type = #tpu.core_type<tc>, window_params = [{transform_indices = @transform_0, window_bounds = array<i64: 512, 128>}, {transform_indices = @transform_1, window_bounds = array<i64: 512, 128>}, {pipeline_mode = #tpu.pipeline_mode<synchronous>, transform_indices = @transform_2, window_bounds = array<i64: 128, 128>}, {pipeline_mode = #tpu.pipeline_mode<synchronous>, transform_indices = @transform_3, window_bounds = array<i64: 128, 128>}, {transform_indices = @transform_4, window_bounds = array<i64: 512, 128>}, {transform_indices = @transform_5, window_bounds = array<i64: 512, 128>}, {transform_indices = @transform_6, window_bounds = array<i64: 16, 128>}]} {
    %c0 = arith.constant 0 : index
    %c0_0 = arith.constant 0 : index
    %0 = vector.load %arg2[%c0, %c0_0] : memref<512x128xbf16, #tpu.memory_space<vmem>>, vector<512x128xbf16>
    %c0_1 = arith.constant 0 : index
    %c0_2 = arith.constant 0 : index
    %1 = vector.load %arg4[%c0_1, %c0_2] : memref<128x128xbf16, #tpu.memory_space<vmem>>, vector<128x128xbf16>
    %cst = arith.constant dense<0.000000e+00> : vector<512x128xf32>
    %2 = tpu.matmul %0, %1, %cst {dimension_numbers = #tpu.dot_dimension_numbers<[1], [0], [0], [1], [0, 0, 1, 1], [], []>} : vector<512x128xbf16>, vector<128x128xbf16>, vector<512x128xf32> -> vector<512x128xf32>
    %c0_3 = arith.constant 0 : index
    %c0_4 = arith.constant 0 : index
    %3 = vector.load %arg3[%c0_3, %c0_4] : memref<512x128xbf16, #tpu.memory_space<vmem>>, vector<512x128xbf16>
    %c0_5 = arith.constant 0 : index
    %c0_6 = arith.constant 0 : index
    %4 = vector.load %arg5[%c0_5, %c0_6] : memref<128x128xbf16, #tpu.memory_space<vmem>>, vector<128x128xbf16>
    %cst_7 = arith.constant dense<0.000000e+00> : vector<512x128xf32>
    %5 = tpu.matmul %3, %4, %cst_7 {dimension_numbers = #tpu.dot_dimension_numbers<[1], [0], [0], [1], [0, 0, 1, 1], [], []>} : vector<512x128xbf16>, vector<128x128xbf16>, vector<512x128xf32> -> vector<512x128xf32>
    %6 = arith.truncf %2 : vector<512x128xf32> to vector<512x128xbf16>
    %c0_8 = arith.constant 0 : index
    %c0_9 = arith.constant 0 : index
    %7 = vector.load %arg6[%c0_8, %c0_9] : memref<512x128xbf16, #tpu.memory_space<vmem>>, vector<512x128xbf16>
    tpu.vector_store %arg6[%c0_8, %c0_9], %6 {strides = array<i32>} : memref<512x128xbf16, #tpu.memory_space<vmem>>, vector<512x128xbf16>,
    %8 = arith.truncf %5 : vector<512x128xf32> to vector<512x128xbf16>
    %c0_10 = arith.constant 0 : index
    %c0_11 = arith.constant 0 : index
    %9 = vector.load %arg7[%c0_10, %c0_11] : memref<512x128xbf16, #tpu.memory_space<vmem>>, vector<512x128xbf16>
    tpu.vector_store %arg7[%c0_10, %c0_11], %8 {strides = array<i32>} : memref<512x128xbf16, #tpu.memory_space<vmem>>, vector<512x128xbf16>,
    %c0_i32 = arith.constant 0 : i32
    %10 = arith.cmpi eq, %arg1, %c0_i32 : i32
    %11 = arith.extui %10 : i1 to i32
    %c0_i32_12 = arith.constant 0 : i32
    %12 = arith.cmpi ne, %11, %c0_i32_12 : i32
    scf.if %12 {
      %cst_32 = arith.constant 0.000000e+00 : f32
      %38 = vector.broadcast %cst_32 : f32 to vector<16x128xf32>
      %c0_33 = arith.constant 0 : index
      %c0_34 = arith.constant 0 : index
      %39 = vector.load %arg9[%c0_33, %c0_34] : memref<16x128xf32, #tpu.memory_space<vmem>>, vector<16x128xf32>
      tpu.vector_store %arg9[%c0_33, %c0_34], %38 {strides = array<i32>} : memref<16x128xf32, #tpu.memory_space<vmem>>, vector<16x128xf32>,
    } else {
    }
    %c0_13 = arith.constant 0 : index
    %c0_14 = arith.constant 0 : index
    %13 = vector.load %arg9[%c0_13, %c0_14] : memref<16x128xf32, #tpu.memory_space<vmem>>, vector<1x128xf32>
    %cst_15 = arith.constant dense<0.000000e+00> : vector<128xf32>
    %14 = vector.multi_reduction <add>, %2, %cst_15 [0] : vector<512x128xf32> to vector<128xf32>
    %15 = vector.shape_cast %14 : vector<128xf32> to vector<1x128xf32>
    %16 = arith.addf %13, %15 : vector<1x128xf32>
    %c0_16 = arith.constant 0 : index
    %c0_17 = arith.constant 0 : index
    %17 = vector.load %arg9[%c0_16, %c0_17] : memref<16x128xf32, #tpu.memory_space<vmem>>, vector<1x128xf32>
    tpu.vector_store %arg9[%c0_16, %c0_17], %16 {strides = array<i32>} : memref<16x128xf32, #tpu.memory_space<vmem>>, vector<1x128xf32>,
    %c1 = arith.constant 1 : index
    %c0_18 = arith.constant 0 : index
    %18 = vector.load %arg9[%c1, %c0_18] : memref<16x128xf32, #tpu.memory_space<vmem>>, vector<1x128xf32>
    %19 = arith.mulf %2, %2 : vector<512x128xf32>
    %cst_19 = arith.constant dense<0.000000e+00> : vector<128xf32>
    %20 = vector.multi_reduction <add>, %19, %cst_19 [0] : vector<512x128xf32> to vector<128xf32>
    %21 = vector.shape_cast %20 : vector<128xf32> to vector<1x128xf32>
    %22 = arith.addf %18, %21 : vector<1x128xf32>
    %c1_20 = arith.constant 1 : index
    %c0_21 = arith.constant 0 : index
    %23 = vector.load %arg9[%c1_20, %c0_21] : memref<16x128xf32, #tpu.memory_space<vmem>>, vector<1x128xf32>
    tpu.vector_store %arg9[%c1_20, %c0_21], %22 {strides = array<i32>} : memref<16x128xf32, #tpu.memory_space<vmem>>, vector<1x128xf32>,
    %c8 = arith.constant 8 : index
    %c0_22 = arith.constant 0 : index
    %24 = vector.load %arg9[%c8, %c0_22] : memref<16x128xf32, #tpu.memory_space<vmem>>, vector<1x128xf32>
    %cst_23 = arith.constant dense<0.000000e+00> : vector<128xf32>
    %25 = vector.multi_reduction <add>, %5, %cst_23 [0] : vector<512x128xf32> to vector<128xf32>
    %26 = vector.shape_cast %25 : vector<128xf32> to vector<1x128xf32>
    %27 = arith.addf %24, %26 : vector<1x128xf32>
    %c8_24 = arith.constant 8 : index
    %c0_25 = arith.constant 0 : index
    %28 = vector.load %arg9[%c8_24, %c0_25] : memref<16x128xf32, #tpu.memory_space<vmem>>, vector<1x128xf32>
    tpu.vector_store %arg9[%c8_24, %c0_25], %27 {strides = array<i32>} : memref<16x128xf32, #tpu.memory_space<vmem>>, vector<1x128xf32>,
    %c9 = arith.constant 9 : index
    %c0_26 = arith.constant 0 : index
    %29 = vector.load %arg9[%c9, %c0_26] : memref<16x128xf32, #tpu.memory_space<vmem>>, vector<1x128xf32>
    %30 = arith.mulf %5, %5 : vector<512x128xf32>
    %cst_27 = arith.constant dense<0.000000e+00> : vector<128xf32>
    %31 = vector.multi_reduction <add>, %30, %cst_27 [0] : vector<512x128xf32> to vector<128xf32>
    %32 = vector.shape_cast %31 : vector<128xf32> to vector<1x128xf32>
    %33 = arith.addf %29, %32 : vector<1x128xf32>
    %c9_28 = arith.constant 9 : index
    %c0_29 = arith.constant 0 : index
    %34 = vector.load %arg9[%c9_28, %c0_29] : memref<16x128xf32, #tpu.memory_space<vmem>>, vector<1x128xf32>
    tpu.vector_store %arg9[%c9_28, %c0_29], %33 {strides = array<i32>} : memref<16x128xf32, #tpu.memory_space<vmem>>, vector<1x128xf32>,
    %c0_i32_30 = arith.constant 0 : i32
    %35 = arith.cmpi eq, %arg1, %c0_i32_30 : i32
    %36 = arith.extui %35 : i1 to i32
    %c0_i32_31 = arith.constant 0 : i32
    %37 = arith.cmpi ne, %36, %c0_i32_31 : i32
    scf.if %37 {
      %c0_32 = arith.constant 0 : index
      %c0_33 = arith.constant 0 : index
      %38 = vector.load %arg9[%c0_32, %c0_33] : memref<16x128xf32, #tpu.memory_space<vmem>>, vector<16x128xf32>
      %c0_34 = arith.constant 0 : index
      %c0_35 = arith.constant 0 : index
      %39 = vector.load %arg8[%c0_34, %c0_35] : memref<16x128xf32, #tpu.memory_space<vmem>>, vector<16x128xf32>
      tpu.vector_store %arg8[%c0_34, %c0_35], %38 {strides = array<i32>} : memref<16x128xf32, #tpu.memory_space<vmem>>, vector<16x128xf32>,
    } else {
    }
    return
  }
  func.func @transform_0(%arg0: i32, %arg1: i32) -> (i32, i32) {
    %c1_i32 = arith.constant 1 : i32
    %0 = arith.muli %arg0, %c1_i32 : i32
    %1 = arith.addi %0, %arg1 : i32
    %c0_i32 = arith.constant 0 : i32
    %c0_i32_0 = arith.constant 0 : i32
    return %1, %c0_i32 : i32, i32
  }
  func.func @transform_1(%arg0: i32, %arg1: i32) -> (i32, i32) {
    %c1_i32 = arith.constant 1 : i32
    %0 = arith.muli %arg0, %c1_i32 : i32
    %1 = arith.addi %0, %arg1 : i32
    %c0_i32 = arith.constant 0 : i32
    %c0_i32_0 = arith.constant 0 : i32
    return %1, %c0_i32 : i32, i32
  }
  func.func @transform_2(%arg0: i32, %arg1: i32) -> (i32, i32) {
    %c0_i32 = arith.constant 0 : i32
    %c0_i32_0 = arith.constant 0 : i32
    %c0_i32_1 = arith.constant 0 : i32
    return %c0_i32, %c0_i32_0 : i32, i32
  }
  func.func @transform_3(%arg0: i32, %arg1: i32) -> (i32, i32) {
    %c0_i32 = arith.constant 0 : i32
    %c0_i32_0 = arith.constant 0 : i32
    %c0_i32_1 = arith.constant 0 : i32
    return %c0_i32, %c0_i32_0 : i32, i32
  }
  func.func @transform_4(%arg0: i32, %arg1: i32) -> (i32, i32) {
    %c1_i32 = arith.constant 1 : i32
    %0 = arith.muli %arg0, %c1_i32 : i32
    %1 = arith.addi %0, %arg1 : i32
    %c0_i32 = arith.constant 0 : i32
    %c0_i32_0 = arith.constant 0 : i32
    return %1, %c0_i32 : i32, i32
  }
  func.func @transform_5(%arg0: i32, %arg1: i32) -> (i32, i32) {
    %c1_i32 = arith.constant 1 : i32
    %0 = arith.muli %arg0, %c1_i32 : i32
    %1 = arith.addi %0, %arg1 : i32
    %c0_i32 = arith.constant 0 : i32
    %c0_i32_0 = arith.constant 0 : i32
    return %1, %c0_i32 : i32, i32
  }
  func.func @transform_6(%arg0: i32, %arg1: i32) -> (i32, i32) {
    %c0_i32 = arith.constant 0 : i32
    %c0_i32_0 = arith.constant 0 : i32
    return %arg0, %c0_i32 : i32, i32
  }
}

</mosaic_0001>

<bundles_post_ra>
// kernel: basic_block_forward.5
= control target key start
LH: loop header
LB: loop body
LE: loop exit
PB: predicated region body
PF: predicated region fallthrough
CT: control target
= control target key end

     0   :  { %s1490_s0 = inlined_call_operand.vmem [shape: bf16[512,128], index: 0, kind: input, shape index: {}]   ;;  %s1491_s1 = inlined_call_operand.vmem [shape: f32[8,128], index: 1, kind: input, shape index: {}]   ;;  %s1492_s2 = inlined_call_operand.vmem [shape: bf16[512,128], index: 2, kind: output, shape index: {}]  }
   0x1   :  { %v796_v0 = vld [vmem:[%s1490_s0] sm:$0xff]   ;;  %v1083_v4 = vld [vmem:[%s1490_s0 + $0x8] sm:$0xff]   ;;  %v1084_v5 = vld [vmem:[%s1490_s0 + $0x10] sm:$0xff]  }
   0x2   :  { %v1166_v1 = vld [vmem:[%s1491_s1] ss:$0 sm:$0xff]  ;;  %v797_v2 = vunpack.c.l.bf16 %v796_v0  ;;  %v798_v3 = vunpack.c.h.bf16 %v796_v0  ;;  %v1085_v6 = vld [vmem:[%s1490_s0 + $0x18] sm:$0xff]   ;;  %v1180_v7 = vld [vmem:[%s1491_s1 + $0x1] ss:$0 sm:$0xff]  ;;  %v801_v8 = vunpack.c.l.bf16 %v1083_v4  ;;  %v802_v9 = vunpack.c.h.bf16 %v1083_v4 }
   0x3   :  { %v805_v10 = vunpack.c.l.bf16 %v1084_v5  ;;  %v806_v11 = vunpack.c.h.bf16 %v1084_v5  ;;  %v809_v14 = vunpack.c.l.bf16 %v1085_v6  ;;  %v810_v15 = vunpack.c.h.bf16 %v1085_v6  ;;  %v1086_v28 = vld [vmem:[%s1490_s0 + $0x20] sm:$0xff]   ;;  %v1087_v33 = vld [vmem:[%s1490_s0 + $0x28] sm:$0xff]   ;;  %v1088_v38 = vld [vmem:[%s1490_s0 + $0x30] sm:$0xff]  }
   0x4   :  { %v144_v12 = vmul.f32 %v797_v2, %v1166_v1  ;;  %v145_v13 = vmul.f32 %v798_v3, %v1166_v1  ;;  %v146_v16 = vmul.f32 %v801_v8, %v1166_v1  ;;  %v147_v17 = vmul.f32 %v802_v9, %v1166_v1  ;;  %v1089_v43 = vld [vmem:[%s1490_s0 + $0x38] sm:$0xff]   ;;  %v1090_v0 = vld [vmem:[%s1490_s0 + $0x40] sm:$0xff]  }
   0x5   :  { %v148_v18 = vmul.f32 %v805_v10, %v1166_v1  ;;  %v149_v19 = vmul.f32 %v806_v11, %v1166_v1  ;;  %v150_v22 = vmul.f32 %v809_v14, %v1166_v1  ;;  %v151_v23 = vmul.f32 %v810_v15, %v1166_v1  ;;  %v1091_v11 = vld [vmem:[%s1490_s0 + $0x48] sm:$0xff]  }
   0x6   :  { %v213_v20 = vadd.f32 %v1180_v7, %v144_v12  ;;  %v214_v21 = vadd.f32 %v1180_v7, %v145_v13  ;;  %v215_v24 = vadd.f32 %v1180_v7, %v146_v16  ;;  %v216_v25 = vadd.f32 %v1180_v7, %v147_v17  ;;  %v1092_v16 = vld [vmem:[%s1490_s0 + $0x50] sm:$0xff]  }
   0x7   :  { %v217_v26 = vadd.f32 %v1180_v7, %v148_v18  ;;  %v218_v27 = vadd.f32 %v1180_v7, %v149_v19  ;;  %v219_v31 = vadd.f32 %v1180_v7, %v150_v22  ;;  %v220_v32 = vadd.f32 %v1180_v7, %v151_v23 }
   0x8   :  { %v277_v29 = vmax.f32 %v213_v20, 0.0  ;;  %v278_v30 = vmax.f32 %v214_v21, 0.0  ;;  %v279_v34 = vmax.f32 %v215_v24, 0.0  ;;  %v280_v35 = vmax.f32 %v216_v25, 0.0  ;;  %v1093_v25 = vld [vmem:[%s1490_s0 + $0x58] sm:$0xff]  }
   0x9   :  { %v281_v36 = vmax.f32 %v217_v26, 0.0  ;;  %v282_v37 = vmax.f32 %v218_v27, 0.0  ;;  %v283_v40 = vmax.f32 %v219_v31, 0.0  ;;  %v284_v41 = vmax.f32 %v220_v32, 0.0 }
   0xa   :  { %v926_v39 = vpack.c.bf16 %v278_v30, %v277_v29  ;;  %v813_v42 = vunpack.c.l.bf16 %v1086_v28  ;;  %v931_v44 = vpack.c.bf16 %v280_v35, %v279_v34  ;;  %v814_v46 = vunpack.c.h.bf16 %v1086_v28 }
   0xb   :  { %v936_v45 = vpack.c.bf16 %v282_v37, %v281_v36  ;;  %v817_v47 = vunpack.c.l.bf16 %v1087_v33  ;;  %v941_v48 = vpack.c.bf16 %v284_v41, %v283_v40  ;;  %v818_v50 = vunpack.c.h.bf16 %v1087_v33 }
   0xc   :  { %927 = vst [vmem:[%s1492_s2] sm:$0xff] %v926_v39   ;;  %v152_v49 = vmul.f32 %v813_v42, %v1166_v1  ;;  %v821_v51 = vunpack.c.l.bf16 %v1088_v38  ;;  %1114 = vst [vmem:[%s1492_s2 + $0x8] sm:$0xff] %v931_v44   ;;  %v153_v52 = vmul.f32 %v814_v46, %v1166_v1  ;;  %v822_v54 = vunpack.c.h.bf16 %v1088_v38  ;;  %v1094_v38 = vld [vmem:[%s1490_s0 + $0x60] sm:$0xff]  }
   0xd   :  { %1115 = vst [vmem:[%s1492_s2 + $0x10] sm:$0xff] %v936_v45   ;;  %v154_v53 = vmul.f32 %v817_v47, %v1166_v1  ;;  %v825_v55 = vunpack.c.l.bf16 %v1089_v43  ;;  %1116 = vst [vmem:[%s1492_s2 + $0x18] sm:$0xff] %v941_v48   ;;  %v155_v57 = vmul.f32 %v818_v50, %v1166_v1  ;;  %v826_v59 = vunpack.c.h.bf16 %v1089_v43 }
   0xe   :  { %v221_v56 = vadd.f32 %v1180_v7, %v152_v49  ;;  %v156_v58 = vmul.f32 %v821_v51, %v1166_v1  ;;  %v222_v60 = vadd.f32 %v1180_v7, %v153_v52  ;;  %v157_v62 = vmul.f32 %v822_v54, %v1166_v1  ;;  %v1095_v51 = vld [vmem:[%s1490_s0 + $0x68] sm:$0xff]  }
   0xf   :  { %v223_v61 = vadd.f32 %v1180_v7, %v154_v53  ;;  %v158_v63 = vmul.f32 %v825_v55, %v1166_v1  ;;  %v224_v3 = vadd.f32 %v1180_v7, %v155_v57  ;;  %v159_v5 = vmul.f32 %v826_v59, %v1166_v1 }
  0x10   :  { %v285_v2 = vmax.f32 %v221_v56, 0.0  ;;  %v225_v4 = vadd.f32 %v1180_v7, %v156_v58  ;;  %v286_v6 = vmax.f32 %v222_v60, 0.0  ;;  %v226_v9 = vadd.f32 %v1180_v7, %v157_v62  ;;  %v1096_v60 = vld [vmem:[%s1490_s0 + $0x70] sm:$0xff]  }
  0x11   :  { %v287_v8 = vmax.f32 %v223_v61, 0.0  ;;  %v227_v10 = vadd.f32 %v1180_v7, %v158_v63  ;;  %v288_v12 = vmax.f32 %v224_v3, 0.0  ;;  %v228_v14 = vadd.f32 %v1180_v7, %v159_v5 }
  0x12   :  { %v289_v13 = vmax.f32 %v225_v4, 0.0  ;;  %v829_v15 = vunpack.c.l.bf16 %v1090_v0  ;;  %v946_v17 = vpack.c.bf16 %v286_v6, %v285_v2  ;;  %v290_v18 = vmax.f32 %v226_v9, 0.0  ;;  %v1097_v2 = vld [vmem:[%s1490_s0 + $0x78] sm:$0xff]  }
  0x13   :  { %v291_v19 = vmax.f32 %v227_v10, 0.0  ;;  %v830_v20 = vunpack.c.h.bf16 %v1090_v0  ;;  %v951_v21 = vpack.c.bf16 %v288_v12, %v287_v8  ;;  %v292_v22 = vmax.f32 %v228_v14, 0.0  ;;  %v1098_v12 = vld [vmem:[%s1490_s0 + $0x80] sm:$0xff]  }
  0x14   :  { %v160_v23 = vmul.f32 %v829_v15, %v1166_v1  ;;  %v833_v24 = vunpack.c.l.bf16 %v1091_v11  ;;  %1117 = vst [vmem:[%s1492_s2 + $0x20] sm:$0xff] %v946_v17   ;;  %v956_v26 = vpack.c.bf16 %v290_v18, %v289_v13  ;;  %v834_v28 = vunpack.c.h.bf16 %v1091_v11 }
  0x15   :  { %v161_v27 = vmul.f32 %v830_v20, %v1166_v1  ;;  %v837_v29 = vunpack.c.l.bf16 %v1092_v16  ;;  %1118 = vst [vmem:[%s1492_s2 + $0x28] sm:$0xff] %v951_v21   ;;  %v961_v30 = vpack.c.bf16 %v292_v22, %v291_v19  ;;  %v838_v33 = vunpack.c.h.bf16 %v1092_v16 }
  0x16   :  { %v229_v31 = vadd.f32 %v1180_v7, %v160_v23  ;;  %v162_v32 = vmul.f32 %v833_v24, %v1166_v1  ;;  %1119 = vst [vmem:[%s1492_s2 + $0x30] sm:$0xff] %v956_v26   ;;  %v163_v35 = vmul.f32 %v834_v28, %v1166_v1  ;;  %v841_v37 = vunpack.c.l.bf16 %v1093_v25 }
  0x17   :  { %v230_v34 = vadd.f32 %v1180_v7, %v161_v27  ;;  %v164_v36 = vmul.f32 %v837_v29, %v1166_v1  ;;  %1120 = vst [vmem:[%s1492_s2 + $0x38] sm:$0xff] %v961_v30   ;;  %v165_v41 = vmul.f32 %v838_v33, %v1166_v1  ;;  %v842_v42 = vunpack.c.h.bf16 %v1093_v25  ;;  %v1099_v29 = vld [vmem:[%s1490_s0 + $0x88] sm:$0xff]  }
  0x18   :  { %v293_v39 = vmax.f32 %v229_v31, 0.0  ;;  %v231_v40 = vadd.f32 %v1180_v7, %v162_v32  ;;  %v232_v44 = vadd.f32 %v1180_v7, %v163_v35  ;;  %v166_v46 = vmul.f32 %v841_v37, %v1166_v1 }
  0x19   :  { %v294_v43 = vmax.f32 %v230_v34, 0.0  ;;  %v233_v45 = vadd.f32 %v1180_v7, %v164_v36  ;;  %v234_v48 = vadd.f32 %v1180_v7, %v165_v41  ;;  %v167_v49 = vmul.f32 %v842_v42, %v1166_v1  ;;  %v1100_v34 = vld [vmem:[%s1490_s0 + $0x90] sm:$0xff]  }
  0x1a   :  { %v295_v47 = vmax.f32 %v231_v40, 0.0  ;;  %v845_v50 = vunpack.c.l.bf16 %v1094_v38  ;;  %v296_v53 = vmax.f32 %v232_v44, 0.0  ;;  %v235_v55 = vadd.f32 %v1180_v7, %v166_v46 }
  0x1b   :  { %v966_v52 = vpack.c.bf16 %v294_v43, %v293_v39  ;;  %v297_v54 = vmax.f32 %v233_v45, 0.0  ;;  %v298_v56 = vmax.f32 %v234_v48, 0.0  ;;  %v236_v57 = vadd.f32 %v1180_v7, %v167_v49  ;;  %v1101_v43 = vld [vmem:[%s1490_s0 + $0x98] sm:$0xff]  }
  0x1c   :  { %v846_v58 = vunpack.c.h.bf16 %v1094_v38  ;;  %v168_v59 = vmul.f32 %v845_v50, %v1166_v1  ;;  %v971_v61 = vpack.c.bf16 %v296_v53, %v295_v47  ;;  %v299_v62 = vmax.f32 %v235_v55, 0.0 }
  0x1d   :  { %1121 = vst [vmem:[%s1492_s2 + $0x40] sm:$0xff] %v966_v52   ;;  %v849_v63 = vunpack.c.l.bf16 %v1095_v51  ;;  %v850_v0 = vunpack.c.h.bf16 %v1095_v51  ;;  %v976_v3 = vpack.c.bf16 %v298_v56, %v297_v54  ;;  %v300_v4 = vmax.f32 %v236_v57, 0.0  ;;  %v1102_v56 = vld [vmem:[%s1490_s0 + $0xa0] sm:$0xff]  }
  0x1e   :  { %v169_v5 = vmul.f32 %v846_v58, %v1166_v1  ;;  %v237_v6 = vadd.f32 %v1180_v7, %v168_v59  ;;  %1122 = vst [vmem:[%s1492_s2 + $0x48] sm:$0xff] %v971_v61   ;;  %v853_v10 = vunpack.c.l.bf16 %v1096_v60  ;;  %v854_v11 = vunpack.c.h.bf16 %v1096_v60 }
  0x1f   :  { %v170_v8 = vmul.f32 %v849_v63, %v1166_v1  ;;  %v171_v9 = vmul.f32 %v850_v0, %v1166_v1  ;;  %1123 = vst [vmem:[%s1492_s2 + $0x50] sm:$0xff] %v976_v3   ;;  %v981_v13 = vpack.c.bf16 %v300_v4, %v299_v62  ;;  %v857_v16 = vunpack.c.l.bf16 %v1097_v2 }
  0x20   :  { %v238_v14 = vadd.f32 %v1180_v7, %v169_v5  ;;  %v301_v15 = vmax.f32 %v237_v6, 0.0  ;;  %v172_v19 = vmul.f32 %v853_v10, %v1166_v1  ;;  %v173_v20 = vmul.f32 %v854_v11, %v1166_v1 }
  0x21   :  { %v239_v17 = vadd.f32 %v1180_v7, %v170_v8  ;;  %v240_v18 = vadd.f32 %v1180_v7, %v171_v9  ;;  %1124 = vst [vmem:[%s1492_s2 + $0x58] sm:$0xff] %v981_v13   ;;  %v858_v22 = vunpack.c.h.bf16 %v1097_v2  ;;  %v174_v23 = vmul.f32 %v857_v16, %v1166_v1  ;;  %v1103_v2 = vld [vmem:[%s1490_s0 + $0xa8] sm:$0xff]   ;;  %v1104_v16 = vld [vmem:[%s1490_s0 + $0xb0] sm:$0xff]  }
  0x22   :  { %v302_v21 = vmax.f32 %v238_v14, 0.0  ;;  %v861_v24 = vunpack.c.l.bf16 %v1098_v12  ;;  %v241_v27 = vadd.f32 %v1180_v7, %v172_v19  ;;  %v242_v28 = vadd.f32 %v1180_v7, %v173_v20 }
  0x23   :  { %v303_v25 = vmax.f32 %v239_v17, 0.0  ;;  %v304_v26 = vmax.f32 %v240_v18, 0.0  ;;  %v175_v31 = vmul.f32 %v858_v22, %v1166_v1  ;;  %v243_v32 = vadd.f32 %v1180_v7, %v174_v23 }
  0x24   :  { %v986_v30 = vpack.c.bf16 %v302_v21, %v301_v15  ;;  %v862_v33 = vunpack.c.h.bf16 %v1098_v12  ;;  %v305_v36 = vmax.f32 %v241_v27, 0.0  ;;  %v306_v37 = vmax.f32 %v242_v28, 0.0  ;;  %v1105_v21 = vld [vmem:[%s1490_s0 + $0xb8] sm:$0xff]  }
  0x25   :  { %v991_v35 = vpack.c.bf16 %v304_v26, %v303_v25  ;;  %v176_v38 = vmul.f32 %v861_v24, %v1166_v1  ;;  %v244_v39 = vadd.f32 %v1180_v7, %v175_v31  ;;  %v307_v40 = vmax.f32 %v243_v32, 0.0 }
  0x26   :  { %1125 = vst [vmem:[%s1492_s2 + $0x60] sm:$0xff] %v986_v30   ;;  %v177_v41 = vmul.f32 %v862_v33, %v1166_v1  ;;  %v865_v42 = vunpack.c.l.bf16 %v1099_v29  ;;  %v996_v44 = vpack.c.bf16 %v306_v37, %v305_v36  ;;  %v866_v46 = vunpack.c.h.bf16 %v1099_v29 }
  0x27   :  { %1126 = vst [vmem:[%s1492_s2 + $0x68] sm:$0xff] %v991_v35   ;;  %v245_v45 = vadd.f32 %v1180_v7, %v176_v38  ;;  %v869_v47 = vunpack.c.l.bf16 %v1100_v34  ;;  %v308_v48 = vmax.f32 %v244_v39, 0.0  ;;  %v870_v51 = vunpack.c.h.bf16 %v1100_v34  ;;  %v1106_v34 = vld [vmem:[%s1490_s0 + $0xc0] sm:$0xff]  }
  0x28   :  { %v246_v49 = vadd.f32 %v1180_v7, %v177_v41  ;;  %v178_v50 = vmul.f32 %v865_v42, %v1166_v1  ;;  %1127 = vst [vmem:[%s1492_s2 + $0x70] sm:$0xff] %v996_v44   ;;  %v179_v53 = vmul.f32 %v866_v46, %v1166_v1  ;;  %v873_v55 = vunpack.c.l.bf16 %v1101_v43 }
  0x29   :  { %v309_v52 = vmax.f32 %v245_v45, 0.0  ;;  %v180_v54 = vmul.f32 %v869_v47, %v1166_v1  ;;  %v1001_v57 = vpack.c.bf16 %v308_v48, %v307_v40  ;;  %v181_v60 = vmul.f32 %v870_v51, %v1166_v1  ;;  %v1107_v47 = vld [vmem:[%s1490_s0 + $0xc8] sm:$0xff]  }
  0x2a   :  { %v310_v58 = vmax.f32 %v246_v49, 0.0  ;;  %v247_v59 = vadd.f32 %v1180_v7, %v178_v50  ;;  %v248_v61 = vadd.f32 %v1180_v7, %v179_v53  ;;  %v874_v63 = vunpack.c.h.bf16 %v1101_v43 }
  0x2b   :  { %v249_v62 = vadd.f32 %v1180_v7, %v180_v54  ;;  %v182_v0 = vmul.f32 %v873_v55, %v1166_v1  ;;  %1128 = vst [vmem:[%s1492_s2 + $0x78] sm:$0xff] %v1001_v57   ;;  %v250_v5 = vadd.f32 %v1180_v7, %v181_v60  ;;  %v877_v6 = vunpack.c.l.bf16 %v1102_v56 }
  0x2c   :  { %v1006_v3 = vpack.c.bf16 %v310_v58, %v309_v52  ;;  %v311_v4 = vmax.f32 %v247_v59, 0.0  ;;  %v312_v8 = vmax.f32 %v248_v61, 0.0  ;;  %v183_v10 = vmul.f32 %v874_v63, %v1166_v1  ;;  %v1108_v52 = vld [vmem:[%s1490_s0 + $0xd0] sm:$0xff]   ;;  %v1109_v61 = vld [vmem:[%s1490_s0 + $0xd8] sm:$0xff]  }
  0x2d   :  { %v313_v9 = vmax.f32 %v249_v62, 0.0  ;;  %v251_v11 = vadd.f32 %v1180_v7, %v182_v0  ;;  %v314_v12 = vmax.f32 %v250_v5, 0.0  ;;  %v878_v13 = vunpack.c.h.bf16 %v1102_v56 }
  0x2e   :  { %1129 = vst [vmem:[%s1492_s2 + $0x80] sm:$0xff] %v1006_v3   ;;  %v184_v14 = vmul.f32 %v877_v6, %v1166_v1  ;;  %v881_v15 = vunpack.c.l.bf16 %v1103_v2  ;;  %v1011_v17 = vpack.c.bf16 %v312_v8, %v311_v4  ;;  %v252_v18 = vadd.f32 %v1180_v7, %v183_v10 }
  0x2f   :  { %v315_v19 = vmax.f32 %v251_v11, 0.0  ;;  %v882_v20 = vunpack.c.h.bf16 %v1103_v2  ;;  %v1016_v22 = vpack.c.bf16 %v314_v12, %v313_v9  ;;  %v185_v23 = vmul.f32 %v878_v13, %v1166_v1  ;;  %v1110_v12 = vld [vmem:[%s1490_s0 + $0xe0] sm:$0xff]  }
  0x30   :  { %v253_v24 = vadd.f32 %v1180_v7, %v184_v14  ;;  %v186_v25 = vmul.f32 %v881_v15, %v1166_v1  ;;  %1130 = vst [vmem:[%s1492_s2 + $0x88] sm:$0xff] %v1011_v17   ;;  %v316_v26 = vmax.f32 %v252_v18, 0.0  ;;  %v885_v28 = vunpack.c.l.bf16 %v1104_v16 }
  0x31   :  { %v187_v27 = vmul.f32 %v882_v20, %v1166_v1  ;;  %v886_v29 = vunpack.c.h.bf16 %v1104_v16  ;;  %1131 = vst [vmem:[%s1492_s2 + $0x90] sm:$0xff] %v1016_v22   ;;  %v254_v30 = vadd.f32 %v1180_v7, %v185_v23  ;;  %v889_v33 = vunpack.c.l.bf16 %v1105_v21 }
  0x32   :  { %v317_v31 = vmax.f32 %v253_v24, 0.0  ;;  %v255_v32 = vadd.f32 %v1180_v7, %v186_v25  ;;  %v1021_v35 = vpack.c.bf16 %v316_v26, %v315_v19  ;;  %v188_v37 = vmul.f32 %v885_v28, %v1166_v1 }
  0x33   :  { %v256_v36 = vadd.f32 %v1180_v7, %v187_v27  ;;  %v189_v38 = vmul.f32 %v886_v29, %v1166_v1  ;;  %v318_v39 = vmax.f32 %v254_v30, 0.0  ;;  %v890_v41 = vunpack.c.h.bf16 %v1105_v21  ;;  %v1111_v21 = vld [vmem:[%s1490_s0 + $0xe8] sm:$0xff]  }
  0x34   :  { %v319_v40 = vmax.f32 %v255_v32, 0.0  ;;  %v190_v42 = vmul.f32 %v889_v33, %v1166_v1  ;;  %1132 = vst [vmem:[%s1492_s2 + $0x98] sm:$0xff] %v1021_v35   ;;  %v257_v44 = vadd.f32 %v1180_v7, %v188_v37  ;;  %v893_v46 = vunpack.c.l.bf16 %v1106_v34 }
  0x35   :  { %v320_v43 = vmax.f32 %v256_v36, 0.0  ;;  %v258_v45 = vadd.f32 %v1180_v7, %v189_v38  ;;  %v1026_v48 = vpack.c.bf16 %v318_v39, %v317_v31  ;;  %v191_v49 = vmul.f32 %v890_v41, %v1166_v1  ;;  %v1113_v39 = vld [vmem:[%s1490_s0 + $0xf8] sm:$0xff]  }
  0x36   :  { %v259_v50 = vadd.f32 %v1180_v7, %v190_v42  ;;  %v894_v51 = vunpack.c.h.bf16 %v1106_v34  ;;  %v321_v54 = vmax.f32 %v257_v44, 0.0  ;;  %v192_v56 = vmul.f32 %v893_v46, %v1166_v1  ;;  %v1112_v34 = vld [vmem:[%s1490_s0 + $0xf0] sm:$0xff]  }
  0x37   :  { %v1031_v53 = vpack.c.bf16 %v320_v43, %v319_v40  ;;  %v322_v55 = vmax.f32 %v258_v45, 0.0  ;;  %1133 = vst [vmem:[%s1492_s2 + $0xa0] sm:$0xff] %v1026_v48   ;;  %v260_v57 = vadd.f32 %v1180_v7, %v191_v49  ;;  %v897_v60 = vunpack.c.l.bf16 %v1107_v47 }
  0x38   :  { %v323_v58 = vmax.f32 %v259_v50, 0.0  ;;  %v193_v59 = vmul.f32 %v894_v51, %v1166_v1  ;;  %v261_v63 = vadd.f32 %v1180_v7, %v192_v56  ;;  %v898_v0 = vunpack.c.h.bf16 %v1107_v47 }
  0x39   :  { %1134 = vst [vmem:[%s1492_s2 + $0xa8] sm:$0xff] %v1031_v53   ;;  %v1036_v62 = vpack.c.bf16 %v322_v55, %v321_v54  ;;  %v901_v2 = vunpack.c.l.bf16 %v1108_v52  ;;  %v324_v3 = vmax.f32 %v260_v57, 0.0  ;;  %v194_v5 = vmul.f32 %v897_v60, %v1166_v1 }
  0x3a   :  { %v262_v4 = vadd.f32 %v1180_v7, %v193_v59  ;;  %v902_v6 = vunpack.c.h.bf16 %v1108_v52  ;;  %v325_v8 = vmax.f32 %v261_v63, 0.0  ;;  %v195_v9 = vmul.f32 %v898_v0, %v1166_v1 }
  0x3b   :  { %1135 = vst [vmem:[%s1492_s2 + $0xb0] sm:$0xff] %v1036_v62   ;;  %v196_v10 = vmul.f32 %v901_v2, %v1166_v1  ;;  %v905_v11 = vunpack.c.l.bf16 %v1109_v61  ;;  %v1041_v13 = vpack.c.bf16 %v324_v3, %v323_v58  ;;  %v263_v15 = vadd.f32 %v1180_v7, %v194_v5 }
  0x3c   :  { %v326_v14 = vmax.f32 %v262_v4, 0.0  ;;  %v197_v16 = vmul.f32 %v902_v6, %v1166_v1  ;;  %v264_v17 = vadd.f32 %v1180_v7, %v195_v9  ;;  %v906_v19 = vunpack.c.h.bf16 %v1109_v61 }
  0x3d   :  { %v265_v18 = vadd.f32 %v1180_v7, %v196_v10  ;;  %v198_v20 = vmul.f32 %v905_v11, %v1166_v1  ;;  %1136 = vst [vmem:[%s1492_s2 + $0xb8] sm:$0xff] %v1041_v13   ;;  %v327_v23 = vmax.f32 %v263_v15, 0.0  ;;  %v909_v25 = vunpack.c.l.bf16 %v1110_v12 }
  0x3e   :  { %v1046_v22 = vpack.c.bf16 %v326_v14, %v325_v8  ;;  %v266_v24 = vadd.f32 %v1180_v7, %v197_v16  ;;  %v328_v26 = vmax.f32 %v264_v17, 0.0  ;;  %v199_v28 = vmul.f32 %v906_v19, %v1166_v1 }
  0x3f   :  { %v329_v27 = vmax.f32 %v265_v18, 0.0  ;;  %v267_v29 = vadd.f32 %v1180_v7, %v198_v20  ;;  %v910_v31 = vunpack.c.h.bf16 %v1110_v12  ;;  %v200_v32 = vmul.f32 %v909_v25, %v1166_v1 }
  0x40   :  { %1137 = vst [vmem:[%s1492_s2 + $0xc0] sm:$0xff] %v1046_v22   ;;  %v330_v30 = vmax.f32 %v266_v24, 0.0  ;;  %v913_v33 = vunpack.c.l.bf16 %v1111_v21  ;;  %v1051_v35 = vpack.c.bf16 %v328_v26, %v327_v23  ;;  %v268_v36 = vadd.f32 %v1180_v7, %v199_v28 }
  0x41   :  { %v331_v37 = vmax.f32 %v267_v29, 0.0  ;;  %v914_v38 = vunpack.c.h.bf16 %v1111_v21  ;;  %v201_v41 = vmul.f32 %v910_v31, %v1166_v1  ;;  %v269_v42 = vadd.f32 %v1180_v7, %v200_v32 }
  0x42   :  { %v1056_v40 = vpack.c.bf16 %v330_v30, %v329_v27  ;;  %v202_v43 = vmul.f32 %v913_v33, %v1166_v1  ;;  %1138 = vst [vmem:[%s1492_s2 + $0xc8] sm:$0xff] %v1051_v35   ;;  %v332_v44 = vmax.f32 %v268_v36, 0.0  ;;  %v917_v46 = vunpack.c.l.bf16 %v1112_v34 }
  0x43   :  { %v203_v45 = vmul.f32 %v914_v38, %v1166_v1  ;;  %v918_v47 = vunpack.c.h.bf16 %v1112_v34  ;;  %v270_v48 = vadd.f32 %v1180_v7, %v201_v41  ;;  %v333_v49 = vmax.f32 %v269_v42, 0.0 }
  0x44   :  { %1139 = vst [vmem:[%s1492_s2 + $0xd0] sm:$0xff] %v1056_v40   ;;  %v271_v50 = vadd.f32 %v1180_v7, %v202_v43  ;;  %v921_v51 = vunpack.c.l.bf16 %v1113_v39  ;;  %v1061_v52 = vpack.c.bf16 %v332_v44, %v331_v37  ;;  %v204_v54 = vmul.f32 %v917_v46, %v1166_v1 }
  0x45   :  { %v272_v53 = vadd.f32 %v1180_v7, %v203_v45  ;;  %v205_v55 = vmul.f32 %v918_v47, %v1166_v1  ;;  %v334_v56 = vmax.f32 %v270_v48, 0.0  ;;  %v922_v58 = vunpack.c.h.bf16 %v1113_v39 }
  0x46   :  { %v335_v57 = vmax.f32 %v271_v50, 0.0  ;;  %v206_v59 = vmul.f32 %v921_v51, %v1166_v1  ;;  %1140 = vst [vmem:[%s1492_s2 + $0xd8] sm:$0xff] %v1061_v52   ;;  %v273_v61 = vadd.f32 %v1180_v7, %v204_v54 }
  0x47   :  { %v336_v60 = vmax.f32 %v272_v53, 0.0  ;;  %v274_v62 = vadd.f32 %v1180_v7, %v205_v55  ;;  %v1066_v63 = vpack.c.bf16 %v334_v56, %v333_v49  ;;  %v207_v0 = vmul.f32 %v922_v58, %v1166_v1 }
  0x48   :  { %v275_v2 = vadd.f32 %v1180_v7, %v206_v59  ;;  %v337_v4 = vmax.f32 %v273_v61, 0.0 }
  0x49   :  { %v1071_v3 = vpack.c.bf16 %v336_v60, %v335_v57  ;;  %v338_v5 = vmax.f32 %v274_v62, 0.0  ;;  %1141 = vst [vmem:[%s1492_s2 + $0xe0] sm:$0xff] %v1066_v63   ;;  %v276_v6 = vadd.f32 %v1180_v7, %v207_v0 }
  0x4a   :  { %v339_v8 = vmax.f32 %v275_v2, 0.0 }
  0x4b   :  { %1142 = vst [vmem:[%s1492_s2 + $0xe8] sm:$0xff] %v1071_v3   ;;  %v1076_v9 = vpack.c.bf16 %v338_v5, %v337_v4  ;;  %v340_v10 = vmax.f32 %v276_v6, 0.0 }
  0x4d   :  { %1143 = vst [vmem:[%s1492_s2 + $0xf0] sm:$0xff] %v1076_v9   ;;  %v1081_v1 = vpack.c.bf16 %v340_v10, %v339_v8 }
  0x4f   :  { %1144 = vst [vmem:[%s1492_s2 + $0xf8] sm:$0xff] %v1081_v1  }

// kernel: basic_block_forward.4
= control target key start
LH: loop header
LB: loop body
LE: loop exit
PB: predicated region body
PF: predicated region fallthrough
CT: control target
= control target key end

     0   :  { %v1769_v40 = vmov 0.0   ;;  %s2201_s1 = inlined_call_operand.vmem [shape: bf16[128,128], index: 1, kind: input, shape index: {}]   ;;  %s2202_s0 = inlined_call_operand.vmem [shape: bf16[512,128], index: 0, kind: input, shape index: {}]   ;;  %s2203_s2 = inlined_call_operand.vmem [shape: bf16[512,128], index: 2, kind: output, shape index: {0}]   ;;  %s2204_s3 = inlined_call_operand.vmem [shape: f32[8,128], index: 3, kind: output, shape index: {1}]  }
   0x1   :  { %v1729_v0 = vld [vmem:[%s2201_s1] sm:$0xff]   ;;  %v1730_v1 = vld [vmem:[%s2201_s1 + $0x8] sm:$0xff]   ;;  %v1731_v2 = vld [vmem:[%s2201_s1 + $0x10] sm:$0xff]   ;;  %983 = vst [vmem:[#allocation2] sm:$0xff] %v1769_v40 }
   0x2   :  { %1632 = vmatprep.subr.bf16.mxu0 %v1729_v0  ;;  %1712 = vmatprep.subr.bf16.mxu1 %v1729_v0  ;;  %v1732_v3 = vld [vmem:[%s2201_s1 + $0x18] sm:$0xff]   ;;  %v1737_v4 = vld [vmem:[%s2202_s0] sm:$0xff]   ;;  %v1734_v6 = vld [vmem:[%s2201_s1 + $0x28] sm:$0xff]  }
   0x3   :  { %1633 = vmatpush3.bf16.msra.mxu0 %v1729_v0  ;;  %1720 = vmatpush3.bf16.msra.mxu1 %v1729_v0  ;;  %v1733_v5 = vld [vmem:[%s2201_s1 + $0x20] sm:$0xff]   ;;  %v1735_v7 = vld [vmem:[%s2201_s1 + $0x30] sm:$0xff]   ;;  %v1736_v8 = vld [vmem:[%s2201_s1 + $0x38] sm:$0xff]  }
   0x4   :  { %1634 = vmatprep.subr.bf16.mxu0 %v1730_v1  ;;  %1713 = vmatprep.subr.bf16.mxu1 %v1730_v1  ;;  %v1753_v9 = vld [vmem:[%s2202_s0 + $0x80] sm:$0xff]   ;;  %v1738_v10 = vld [vmem:[%s2202_s0 + $0x8] sm:$0xff]   ;;  %v1739_v11 = vld [vmem:[%s2202_s0 + $0x10] sm:$0xff]  }
   0x5   :  { %1648 = vmatprep.mubr.bf16.mxu0 %v1737_v4  ;;  %1680 = vmatprep.mubr.bf16.mxu1 %v1753_v9  ;;  %v1754_v12 = vld [vmem:[%s2202_s0 + $0x88] sm:$0xff]   ;;  %v1755_v13 = vld [vmem:[%s2202_s0 + $0x90] sm:$0xff]   ;;  %v1740_v14 = vld [vmem:[%s2202_s0 + $0x18] sm:$0xff]  }
   0x6   :  { %v1741_v15 = vld [vmem:[%s2202_s0 + $0x20] sm:$0xff]   ;;  %v1756_v16 = vld [vmem:[%s2202_s0 + $0x98] sm:$0xff]   ;;  %v1742_v18 = vld [vmem:[%s2202_s0 + $0x28] sm:$0xff]  }
   0x7   :  { %1635 = vmatpush3.bf16.msra.mxu0 %v1730_v1  ;;  %1721 = vmatpush3.bf16.msra.mxu1 %v1730_v1  ;;  %v1757_v17 = vld [vmem:[%s2202_s0 + $0xa0] sm:$0xff]   ;;  %v1758_v19 = vld [vmem:[%s2202_s0 + $0xa8] sm:$0xff]   ;;  %v1743_v20 = vld [vmem:[%s2202_s0 + $0x30] sm:$0xff]  }
   0x8   :  { %1636 = vmatprep.subr.bf16.mxu0 %v1731_v2  ;;  %1714 = vmatprep.subr.bf16.mxu1 %v1731_v2  ;;  %v1759_v21 = vld [vmem:[%s2202_s0 + $0xb0] sm:$0xff]   ;;  %v1744_v22 = vld [vmem:[%s2202_s0 + $0x38] sm:$0xff]   ;;  %v1745_v24 = vld [vmem:[%s2202_s0 + $0x40] sm:$0xff]  }
   0x9   :  { %v1760_v23 = vld [vmem:[%s2202_s0 + $0xb8] sm:$0xff]   ;;  %v1761_v25 = vld [vmem:[%s2202_s0 + $0xc0] sm:$0xff]   ;;  %v1746_v26 = vld [vmem:[%s2202_s0 + $0x48] sm:$0xff]  }
   0xa   :  { %v1762_v27 = vld [vmem:[%s2202_s0 + $0xc8] sm:$0xff]   ;;  %v1747_v28 = vld [vmem:[%s2202_s0 + $0x50] sm:$0xff]   ;;  %v1748_v30 = vld [vmem:[%s2202_s0 + $0x58] sm:$0xff]  }
   0xb   :  { %1637 = vmatpush3.bf16.msra.mxu0 %v1731_v2  ;;  %1722 = vmatpush3.bf16.msra.mxu1 %v1731_v2  ;;  %v1763_v29 = vld [vmem:[%s2202_s0 + $0xd0] sm:$0xff]   ;;  %v1764_v31 = vld [vmem:[%s2202_s0 + $0xd8] sm:$0xff]   ;;  %v1749_v32 = vld [vmem:[%s2202_s0 + $0x60] sm:$0xff]  }
   0xc   :  { %1638 = vmatprep.subr.bf16.mxu0 %v1732_v3  ;;  %1715 = vmatprep.subr.bf16.mxu1 %v1732_v3  ;;  %v1765_v33 = vld [vmem:[%s2202_s0 + $0xe0] sm:$0xff]   ;;  %v1750_v34 = vld [vmem:[%s2202_s0 + $0x68] sm:$0xff]   ;;  %v1751_v36 = vld [vmem:[%s2202_s0 + $0x70] sm:$0xff]  }
   0xd   :  { %v1766_v35 = vld [vmem:[%s2202_s0 + $0xe8] sm:$0xff]   ;;  %v1767_v37 = vld [vmem:[%s2202_s0 + $0xf0] sm:$0xff]   ;;  %v1752_v38 = vld [vmem:[%s2202_s0 + $0x78] sm:$0xff]  }
   0xe   :  { %v1768_v39 = vld [vmem:[%s2202_s0 + $0xf8] sm:$0xff]  }
   0xf   :  { %1639 = vmatpush3.bf16.msra.mxu0 %v1732_v3  ;;  %1723 = vmatpush3.bf16.msra.mxu1 %v1732_v3 }
  0x10   :  { %1640 = vmatprep.subr.bf16.mxu0 %v1733_v5  ;;  %1716 = vmatprep.subr.bf16.mxu1 %v1733_v5 }
  0x13   :  { %1641 = vmatpush3.bf16.msra.mxu0 %v1733_v5  ;;  %1724 = vmatpush3.bf16.msra.mxu1 %v1733_v5 }
  0x14   :  { %1642 = vmatprep.subr.bf16.mxu0 %v1734_v6  ;;  %1717 = vmatprep.subr.bf16.mxu1 %v1734_v6 }
  0x17   :  { %1643 = vmatpush3.bf16.msra.mxu0 %v1734_v6  ;;  %1725 = vmatpush3.bf16.msra.mxu1 %v1734_v6 }
  0x18   :  { %1644 = vmatprep.subr.bf16.mxu0 %v1735_v7  ;;  %1718 = vmatprep.subr.bf16.mxu1 %v1735_v7 }
  0x1b   :  { %1645 = vmatpush3.bf16.msra.mxu0 %v1735_v7  ;;  %1726 = vmatpush3.bf16.msra.mxu1 %v1735_v7 }
  0x1c   :  { %1646 = vmatprep.subr.bf16.mxu0 %v1736_v8  ;;  %1719 = vmatprep.subr.bf16.mxu1 %v1736_v8 }
  0x1f   :  { %1647 = vmatpush3.bf16.msra.mxu0 %v1736_v8  ;;  %1727 = vmatpush3.bf16.msra.mxu1 %v1736_v8 }
  0x22   :  { %1649 = vmatmul.mubr.bf16.vlgmr.msra.gmra.mrb[0].mxu0 %v1738_v10  ;;  %1681 = vmatmul.mubr.bf16.vlgmr.msra.gmra.mrb[0].mxu1 %v1754_v12 }
  0x23   :  { %1652 = vmatprep.mubr.bf16.mxu0 %v1739_v11  ;;  %1684 = vmatprep.mubr.bf16.mxu1 %v1755_v13 }
  0x2a   :  { %1653 = vmatmul.mubr.bf16.gmra.mrb[4].mxu0 %v1740_v14  ;;  %1685 = vmatmul.mubr.bf16.gmra.mrb[4].mxu1 %v1756_v16 }
  0x2b   :  { %1656 = vmatprep.mubr.bf16.mxu0 %v1741_v15  ;;  %1688 = vmatprep.mubr.bf16.mxu1 %v1757_v17 }
  0x32   :  { %1657 = vmatmul.mubr.bf16.gmra.mrb[8].mxu0 %v1742_v18  ;;  %1689 = vmatmul.mubr.bf16.gmra.mrb[8].mxu1 %v1758_v19 }
  0x33   :  { %1660 = vmatprep.mubr.bf16.mxu0 %v1743_v20  ;;  %1692 = vmatprep.mubr.bf16.mxu1 %v1759_v21 }
  0x3a   :  { %1661 = vmatmul.mubr.bf16.gmra.mrb[12].mxu0 %v1744_v22  ;;  %1693 = vmatmul.mubr.bf16.gmra.mrb[12].mxu1 %v1760_v23 }
  0x3b   :  { %1664 = vmatprep.mubr.bf16.mxu0 %v1745_v24  ;;  %1696 = vmatprep.mubr.bf16.mxu1 %v1761_v25 }
  0x42   :  { %1665 = vmatmul.mubr.bf16.gmra.mrb[16].mxu0 %v1746_v26  ;;  %1697 = vmatmul.mubr.bf16.gmra.mrb[16].mxu1 %v1762_v27 }
  0x43   :  { %1668 = vmatprep.mubr.bf16.mxu0 %v1747_v28  ;;  %1700 = vmatprep.mubr.bf16.mxu1 %v1763_v29 }
  0x4a   :  { %1669 = vmatmul.mubr.bf16.gmra.mrb[20].mxu0 %v1748_v30  ;;  %1701 = vmatmul.mubr.bf16.gmra.mrb[20].mxu1 %v1764_v31 }
  0x4b   :  { %1672 = vmatprep.mubr.bf16.mxu0 %v1749_v32  ;;  %1704 = vmatprep.mubr.bf16.mxu1 %v1765_v33 }
  0x52   :  { %1673 = vmatmul.mubr.bf16.gmra.mrb[24].mxu0 %v1750_v34  ;;  %1705 = vmatmul.mubr.bf16.gmra.mrb[24].mxu1 %v1766_v35 }
  0x53   :  { %1676 = vmatprep.mubr.bf16.mxu0 %v1751_v36  ;;  %1708 = vmatprep.mubr.bf16.mxu1 %v1767_v37 }
  0x5a   :  { %1677 = vmatmul.mubr.bf16.gmra.mrb[28].mxu0 %v1752_v38  ;;  %1709 = vmatmul.mubr.bf16.gmra.mrb[28].mxu1 %v1768_v39 }
  0xf5   :  { %v1650_v41 = vpop.f32.mrb[0].mxu0  ;;  %v1910_v42 = vpop.f32.mrb[0].mxu1 }
  0xf6   :  { %v404_v43 = vpop.f32.mrb[1].mxu0  ;;  %v1912_v44 = vpop.f32.mrb[1].mxu1  ;;  %v1059_v56 = vmul.f32 %v1650_v41, %v1650_v41 }
  0xf7   :  { %v1651_v45 = vpop.f32.mrb[2].mxu0  ;;  %v1914_v46 = vpop.f32.mrb[2].mxu1  ;;  %v1057_v47 = vmul.f32 %v404_v43, %v404_v43 }
  0xf8   :  { %v1409_v48 = vpack.c.bf16 %v1651_v45, %v1650_v41  ;;  %v407_v49 = vpop.f32.mrb[3].mxu0  ;;  %v1489_v50 = vpack.c.bf16 %v1914_v46, %v1910_v42  ;;  %v1918_v51 = vpop.f32.mrb[3].mxu1  ;;  %v1060_v59 = vmul.f32 %v1651_v45, %v1651_v45 }
  0xf9   :  { %v1404_v52 = vpack.c.bf16 %v407_v49, %v404_v43  ;;  %v985_v53 = vadd.f32 %v407_v49, %v404_v43  ;;  %v1058_v54 = vmul.f32 %v407_v49, %v407_v49  ;;  %v1484_v55 = vpack.c.bf16 %v1918_v51, %v1912_v44 }
  0xfa   :  { %1561 = vst [vmem:[%s2203_s2 + $0x8] sm:$0xff] %v1409_v48   ;;  %1577 = vst [vmem:[%s2203_s2 + $0x88] sm:$0xff] %v1489_v50  }
  0xfb   :  { %1405 = vst [vmem:[%s2203_s2] sm:$0xff] %v1404_v52   ;;  %v986_v57 = vadd.f32 %v1650_v41, %v985_v53  ;;  %v1121_v58 = vadd.f32 %v1058_v54, %v1057_v47  ;;  %1576 = vst [vmem:[%s2203_s2 + $0x80] sm:$0xff] %v1484_v55  }
  0xfd   :  { %v1122_v60 = vadd.f32 %v1121_v58, %v1059_v56  ;;  %v1654_v61 = vpop.f32.mrb[4].mxu0  ;;  %v987_v62 = vadd.f32 %v1651_v45, %v986_v57  ;;  %v1934_v63 = vpop.f32.mrb[4].mxu1 }
  0xfe   :  { %v420_v0 = vpop.f32.mrb[5].mxu0  ;;  %v1936_v1 = vpop.f32.mrb[5].mxu1  ;;  %v1063_v16 = vmul.f32 %v1654_v61, %v1654_v61 }
  0xff   :  { %v988_v2 = vadd.f32 %v987_v62, %v420_v0  ;;  %v1061_v3 = vmul.f32 %v420_v0, %v420_v0  ;;  %v1123_v4 = vadd.f32 %v1122_v60, %v1060_v59  ;;  %v1655_v5 = vpop.f32.mrb[6].mxu0  ;;  %v1938_v6 = vpop.f32.mrb[6].mxu1 }
 0x100   :  { %v1419_v7 = vpack.c.bf16 %v1655_v5, %v1654_v61  ;;  %v423_v8 = vpop.f32.mrb[7].mxu0  ;;  %v1499_v9 = vpack.c.bf16 %v1938_v6, %v1934_v63  ;;  %v1942_v10 = vpop.f32.mrb[7].mxu1  ;;  %v1064_v19 = vmul.f32 %v1655_v5, %v1655_v5 }
 0x101   :  { %v1124_v11 = vadd.f32 %v1123_v4, %v1061_v3  ;;  %v1414_v12 = vpack.c.bf16 %v423_v8, %v420_v0  ;;  %v989_v13 = vadd.f32 %v988_v2, %v423_v8  ;;  %v1062_v14 = vmul.f32 %v423_v8, %v423_v8 }
 0x102   :  { %1563 = vst [vmem:[%s2203_s2 + $0x18] sm:$0xff] %v1419_v7   ;;  %1579 = vst [vmem:[%s2203_s2 + $0x98] sm:$0xff] %v1499_v9   ;;  %v1494_v15 = vpack.c.bf16 %v1942_v10, %v1936_v1 }
 0x103   :  { %1562 = vst [vmem:[%s2203_s2 + $0x10] sm:$0xff] %v1414_v12   ;;  %v990_v17 = vadd.f32 %v1654_v61, %v989_v13  ;;  %v1125_v18 = vadd.f32 %v1124_v11, %v1062_v14 }
 0x104   :  { %1578 = vst [vmem:[%s2203_s2 + $0x90] sm:$0xff] %v1494_v15  }
 0x105   :  { %v1126_v20 = vadd.f32 %v1125_v18, %v1063_v16  ;;  %v1658_v21 = vpop.f32.mrb[8].mxu0  ;;  %v991_v22 = vadd.f32 %v1655_v5, %v990_v17  ;;  %v1958_v23 = vpop.f32.mrb[8].mxu1 }
 0x106   :  { %v436_v24 = vpop.f32.mrb[9].mxu0  ;;  %v1960_v25 = vpop.f32.mrb[9].mxu1  ;;  %v1067_v40 = vmul.f32 %v1658_v21, %v1658_v21 }
 0x107   :  { %v992_v26 = vadd.f32 %v991_v22, %v436_v24  ;;  %v1065_v27 = vmul.f32 %v436_v24, %v436_v24  ;;  %v1127_v28 = vadd.f32 %v1126_v20, %v1064_v19  ;;  %v1659_v29 = vpop.f32.mrb[10].mxu0  ;;  %v1962_v30 = vpop.f32.mrb[10].mxu1 }
 0x108   :  { %v1429_v31 = vpack.c.bf16 %v1659_v29, %v1658_v21  ;;  %v439_v32 = vpop.f32.mrb[11].mxu0  ;;  %v1509_v33 = vpack.c.bf16 %v1962_v30, %v1958_v23  ;;  %v1966_v34 = vpop.f32.mrb[11].mxu1  ;;  %v1068_v45 = vmul.f32 %v1659_v29, %v1659_v29 }
 0x109   :  { %v1128_v35 = vadd.f32 %v1127_v28, %v1065_v27  ;;  %v1424_v36 = vpack.c.bf16 %v439_v32, %v436_v24  ;;  %v993_v37 = vadd.f32 %v992_v26, %v439_v32  ;;  %v1066_v38 = vmul.f32 %v439_v32, %v439_v32 }
 0x10a   :  { %1565 = vst [vmem:[%s2203_s2 + $0x28] sm:$0xff] %v1429_v31   ;;  %1581 = vst [vmem:[%s2203_s2 + $0xa8] sm:$0xff] %v1509_v33   ;;  %v1504_v39 = vpack.c.bf16 %v1966_v34, %v1960_v25 }
 0x10b   :  { %1564 = vst [vmem:[%s2203_s2 + $0x20] sm:$0xff] %v1424_v36   ;;  %v994_v41 = vadd.f32 %v1658_v21, %v993_v37  ;;  %v1129_v43 = vadd.f32 %v1128_v35, %v1066_v38 }
 0x10c   :  { %1580 = vst [vmem:[%s2203_s2 + $0xa0] sm:$0xff] %v1504_v39  }
 0x10d   :  { %v1130_v47 = vadd.f32 %v1129_v43, %v1067_v40  ;;  %v1662_v48 = vpop.f32.mrb[12].mxu0  ;;  %v995_v49 = vadd.f32 %v1659_v29, %v994_v41  ;;  %v1982_v50 = vpop.f32.mrb[12].mxu1 }
 0x10e   :  { %v452_v52 = vpop.f32.mrb[13].mxu0  ;;  %v1984_v53 = vpop.f32.mrb[13].mxu1  ;;  %v1071_v7 = vmul.f32 %v1662_v48, %v1662_v48 }
 0x10f   :  { %v996_v54 = vadd.f32 %v995_v49, %v452_v52  ;;  %v1069_v55 = vmul.f32 %v452_v52, %v452_v52  ;;  %v1131_v56 = vadd.f32 %v1130_v47, %v1068_v45  ;;  %v1663_v57 = vpop.f32.mrb[14].mxu0  ;;  %v1986_v58 = vpop.f32.mrb[14].mxu1 }
 0x110   :  { %v1439_v59 = vpack.c.bf16 %v1663_v57, %v1662_v48  ;;  %v455_v60 = vpop.f32.mrb[15].mxu0  ;;  %v1519_v61 = vpack.c.bf16 %v1986_v58, %v1982_v50  ;;  %v1990_v62 = vpop.f32.mrb[15].mxu1  ;;  %v1072_v11 = vmul.f32 %v1663_v57, %v1663_v57 }
 0x111   :  { %v1132_v0 = vadd.f32 %v1131_v56, %v1069_v55  ;;  %v1434_v2 = vpack.c.bf16 %v455_v60, %v452_v52  ;;  %v997_v3 = vadd.f32 %v996_v54, %v455_v60  ;;  %v1070_v4 = vmul.f32 %v455_v60, %v455_v60 }
 0x112   :  { %1567 = vst [vmem:[%s2203_s2 + $0x38] sm:$0xff] %v1439_v59   ;;  %1583 = vst [vmem:[%s2203_s2 + $0xb8] sm:$0xff] %v1519_v61   ;;  %v1514_v5 = vpack.c.bf16 %v1990_v62, %v1984_v53 }
 0x113   :  { %1566 = vst [vmem:[%s2203_s2 + $0x30] sm:$0xff] %v1434_v2   ;;  %v998_v8 = vadd.f32 %v1662_v48, %v997_v3  ;;  %v1133_v9 = vadd.f32 %v1132_v0, %v1070_v4 }
 0x114   :  { %1582 = vst [vmem:[%s2203_s2 + $0xb0] sm:$0xff] %v1514_v5  }
 0x115   :  { %v1134_v12 = vadd.f32 %v1133_v9, %v1071_v7  ;;  %v1666_v13 = vpop.f32.mrb[16].mxu0  ;;  %v999_v14 = vadd.f32 %v1663_v57, %v998_v8  ;;  %v2006_v15 = vpop.f32.mrb[16].mxu1 }
 0x116   :  { %v468_v16 = vpop.f32.mrb[17].mxu0  ;;  %v2008_v17 = vpop.f32.mrb[17].mxu1  ;;  %v1075_v36 = vmul.f32 %v1666_v13, %v1666_v13 }
 0x117   :  { %v1000_v18 = vadd.f32 %v999_v14, %v468_v16  ;;  %v1073_v19 = vmul.f32 %v468_v16, %v468_v16  ;;  %v1135_v20 = vadd.f32 %v1134_v12, %v1072_v11  ;;  %v1667_v21 = vpop.f32.mrb[18].mxu0  ;;  %v2010_v22 = vpop.f32.mrb[18].mxu1 }
 0x118   :  { %v1449_v24 = vpack.c.bf16 %v1667_v21, %v1666_v13  ;;  %v471_v26 = vpop.f32.mrb[19].mxu0  ;;  %v1529_v27 = vpack.c.bf16 %v2010_v22, %v2006_v15  ;;  %v2014_v28 = vpop.f32.mrb[19].mxu1  ;;  %v1076_v39 = vmul.f32 %v1667_v21, %v1667_v21 }
 0x119   :  { %v1136_v29 = vadd.f32 %v1135_v20, %v1073_v19  ;;  %v1444_v31 = vpack.c.bf16 %v471_v26, %v468_v16  ;;  %v1001_v32 = vadd.f32 %v1000_v18, %v471_v26  ;;  %v1074_v33 = vmul.f32 %v471_v26, %v471_v26 }
 0x11a   :  { %1569 = vst [vmem:[%s2203_s2 + $0x48] sm:$0xff] %v1449_v24   ;;  %1585 = vst [vmem:[%s2203_s2 + $0xc8] sm:$0xff] %v1529_v27   ;;  %v1524_v35 = vpack.c.bf16 %v2014_v28, %v2008_v17 }
 0x11b   :  { %1568 = vst [vmem:[%s2203_s2 + $0x40] sm:$0xff] %v1444_v31   ;;  %v1002_v37 = vadd.f32 %v1666_v13, %v1001_v32  ;;  %v1137_v38 = vadd.f32 %v1136_v29, %v1074_v33 }
 0x11c   :  { %1584 = vst [vmem:[%s2203_s2 + $0xc0] sm:$0xff] %v1524_v35  }
 0x11d   :  { %v1138_v40 = vadd.f32 %v1137_v38, %v1075_v36  ;;  %v1670_v41 = vpop.f32.mrb[20].mxu0  ;;  %v1003_v43 = vadd.f32 %v1667_v21, %v1002_v37  ;;  %v2030_v45 = vpop.f32.mrb[20].mxu1 }
 0x11e   :  { %v484_v47 = vpop.f32.mrb[21].mxu0  ;;  %v2032_v48 = vpop.f32.mrb[21].mxu1  ;;  %v1079_v7 = vmul.f32 %v1670_v41, %v1670_v41 }
 0x11f   :  { %v1004_v49 = vadd.f32 %v1003_v43, %v484_v47  ;;  %v1077_v52 = vmul.f32 %v484_v47, %v484_v47  ;;  %v1139_v54 = vadd.f32 %v1138_v40, %v1076_v39  ;;  %v1671_v55 = vpop.f32.mrb[22].mxu0  ;;  %v2034_v56 = vpop.f32.mrb[22].mxu1 }
 0x120   :  { %v1459_v57 = vpack.c.bf16 %v1671_v55, %v1670_v41  ;;  %v487_v59 = vpop.f32.mrb[23].mxu0  ;;  %v1539_v60 = vpack.c.bf16 %v2034_v56, %v2030_v45  ;;  %v2038_v61 = vpop.f32.mrb[23].mxu1  ;;  %v1080_v11 = vmul.f32 %v1671_v55, %v1671_v55 }
 0x121   :  { %v1140_v0 = vadd.f32 %v1139_v54, %v1077_v52  ;;  %v1454_v2 = vpack.c.bf16 %v487_v59, %v484_v47  ;;  %v1005_v3 = vadd.f32 %v1004_v49, %v487_v59  ;;  %v1078_v4 = vmul.f32 %v487_v59, %v487_v59 }
 0x122   :  { %1571 = vst [vmem:[%s2203_s2 + $0x58] sm:$0xff] %v1459_v57   ;;  %1587 = vst [vmem:[%s2203_s2 + $0xd8] sm:$0xff] %v1539_v60   ;;  %v1534_v5 = vpack.c.bf16 %v2038_v61, %v2032_v48 }
 0x123   :  { %1570 = vst [vmem:[%s2203_s2 + $0x50] sm:$0xff] %v1454_v2   ;;  %v1006_v8 = vadd.f32 %v1670_v41, %v1005_v3  ;;  %v1141_v9 = vadd.f32 %v1140_v0, %v1078_v4 }
 0x124   :  { %1586 = vst [vmem:[%s2203_s2 + $0xd0] sm:$0xff] %v1534_v5  }
 0x125   :  { %v1142_v12 = vadd.f32 %v1141_v9, %v1079_v7  ;;  %v1674_v13 = vpop.f32.mrb[24].mxu0  ;;  %v1007_v14 = vadd.f32 %v1671_v55, %v1006_v8  ;;  %v2054_v16 = vpop.f32.mrb[24].mxu1 }
 0x126   :  { %v500_v18 = vpop.f32.mrb[25].mxu0  ;;  %v2056_v19 = vpop.f32.mrb[25].mxu1  ;;  %v1083_v40 = vmul.f32 %v1674_v13, %v1674_v13 }
 0x127   :  { %v1008_v20 = vadd.f32 %v1007_v14, %v500_v18  ;;  %v1081_v21 = vmul.f32 %v500_v18, %v500_v18  ;;  %v1143_v24 = vadd.f32 %v1142_v12, %v1080_v11  ;;  %v1675_v26 = vpop.f32.mrb[26].mxu0  ;;  %v2058_v27 = vpop.f32.mrb[26].mxu1 }
 0x128   :  { %v1469_v29 = vpack.c.bf16 %v1675_v26, %v1674_v13  ;;  %v503_v31 = vpop.f32.mrb[27].mxu0  ;;  %v1549_v32 = vpack.c.bf16 %v2058_v27, %v2054_v16  ;;  %v2062_v33 = vpop.f32.mrb[27].mxu1  ;;  %v1084_v47 = vmul.f32 %v1675_v26, %v1675_v26 }
 0x129   :  { %v1144_v35 = vadd.f32 %v1143_v24, %v1081_v21  ;;  %v1464_v36 = vpack.c.bf16 %v503_v31, %v500_v18  ;;  %v1009_v37 = vadd.f32 %v1008_v20, %v503_v31  ;;  %v1082_v38 = vmul.f32 %v503_v31, %v503_v31 }
 0x12a   :  { %1573 = vst [vmem:[%s2203_s2 + $0x68] sm:$0xff] %v1469_v29   ;;  %1589 = vst [vmem:[%s2203_s2 + $0xe8] sm:$0xff] %v1549_v32   ;;  %v1544_v39 = vpack.c.bf16 %v2062_v33, %v2056_v19  ;;  %v1089_v32 = vmul.f32 %v1912_v44, %v1912_v44 }
 0x12b   :  { %1572 = vst [vmem:[%s2203_s2 + $0x60] sm:$0xff] %v1464_v36   ;;  %v1010_v41 = vadd.f32 %v1674_v13, %v1009_v37  ;;  %v1145_v43 = vadd.f32 %v1144_v35, %v1082_v38 }
 0x12c   :  { %1588 = vst [vmem:[%s2203_s2 + $0xe0] sm:$0xff] %v1544_v39   ;;  %v1090_v39 = vmul.f32 %v1918_v51, %v1918_v51 }
 0x12d   :  { %v1146_v49 = vadd.f32 %v1145_v43, %v1083_v40  ;;  %v1678_v52 = vpop.f32.mrb[28].mxu0  ;;  %v1011_v54 = vadd.f32 %v1675_v26, %v1010_v41  ;;  %v2078_v55 = vpop.f32.mrb[28].mxu1  ;;  %v1091_v40 = vmul.f32 %v1910_v42, %v1910_v42 }
 0x12e   :  { %v516_v57 = vpop.f32.mrb[29].mxu0  ;;  %v2080_v59 = vpop.f32.mrb[29].mxu1  ;;  %v1087_v20 = vmul.f32 %v1678_v52, %v1678_v52 }
 0x12f   :  { %v1012_v60 = vadd.f32 %v1011_v54, %v516_v57  ;;  %v1085_v0 = vmul.f32 %v516_v57, %v516_v57  ;;  %v1147_v2 = vadd.f32 %v1146_v49, %v1084_v47  ;;  %v1679_v3 = vpop.f32.mrb[30].mxu0  ;;  %v2082_v4 = vpop.f32.mrb[30].mxu1  ;;  %v1092_v47 = vmul.f32 %v1914_v46, %v1914_v46 }
 0x130   :  { %v1479_v5 = vpack.c.bf16 %v1679_v3, %v1678_v52  ;;  %v519_v7 = vpop.f32.mrb[31].mxu0  ;;  %v1559_v8 = vpack.c.bf16 %v2082_v4, %v2078_v55  ;;  %v2086_v9 = vpop.f32.mrb[31].mxu1  ;;  %v1088_v26 = vmul.f32 %v1679_v3, %v1679_v3 }
 0x131   :  { %v1148_v11 = vadd.f32 %v1147_v2, %v1085_v0  ;;  %v1474_v12 = vpack.c.bf16 %v519_v7, %v516_v57  ;;  %v1013_v13 = vadd.f32 %v1012_v60, %v519_v7  ;;  %v1086_v14 = vmul.f32 %v519_v7, %v519_v7 }
 0x132   :  { %1575 = vst [vmem:[%s2203_s2 + $0x78] sm:$0xff] %v1479_v5   ;;  %1591 = vst [vmem:[%s2203_s2 + $0xf8] sm:$0xff] %v1559_v8   ;;  %v1554_v18 = vpack.c.bf16 %v2086_v9, %v2080_v59  ;;  %v1094_v0 = vmul.f32 %v1942_v10, %v1942_v10 }
 0x133   :  { %1574 = vst [vmem:[%s2203_s2 + $0x70] sm:$0xff] %v1474_v12   ;;  %v1014_v21 = vadd.f32 %v1678_v52, %v1013_v13  ;;  %v1149_v24 = vadd.f32 %v1148_v11, %v1086_v14  ;;  %v1098_v13 = vmul.f32 %v1966_v34, %v1966_v34 }
 0x134   :  { %1590 = vst [vmem:[%s2203_s2 + $0xf0] sm:$0xff] %v1554_v18  }
 0x135   :  { %v1150_v29 = vadd.f32 %v1149_v24, %v1087_v20  ;;  %v1015_v31 = vadd.f32 %v1679_v3, %v1014_v21 }
 0x137   :  { %v1016_v35 = vadd.f32 %v1015_v31, %v1912_v44  ;;  %v1151_v36 = vadd.f32 %v1150_v29, %v1088_v26  ;;  %v1093_v44 = vmul.f32 %v1936_v1, %v1936_v1  ;;  %v1102_v31 = vmul.f32 %v1990_v62, %v1990_v62 }
 0x139   :  { %v1152_v37 = vadd.f32 %v1151_v36, %v1089_v32  ;;  %v1017_v38 = vadd.f32 %v1016_v35, %v1918_v51 }
 0x13b   :  { %v1018_v41 = vadd.f32 %v1910_v42, %v1017_v38  ;;  %v1153_v43 = vadd.f32 %v1152_v37, %v1090_v39  ;;  %v1095_v42 = vmul.f32 %v1934_v63, %v1934_v63 }
 0x13d   :  { %v1154_v49 = vadd.f32 %v1153_v43, %v1091_v40  ;;  %v1019_v52 = vadd.f32 %v1914_v46, %v1018_v41  ;;  %v1096_v46 = vmul.f32 %v1938_v6, %v1938_v6  ;;  %v1106_v41 = vmul.f32 %v2014_v28, %v2014_v28 }
 0x13f   :  { %v1020_v54 = vadd.f32 %v1019_v52, %v1936_v1  ;;  %v1155_v57 = vadd.f32 %v1154_v49, %v1092_v47  ;;  %v1097_v1 = vmul.f32 %v1960_v25, %v1960_v25 }
 0x141   :  { %v1156_v60 = vadd.f32 %v1155_v57, %v1093_v44  ;;  %v1021_v51 = vadd.f32 %v1020_v54, %v1942_v10 }
 0x143   :  { %v1022_v2 = vadd.f32 %v1934_v63, %v1021_v51  ;;  %v1157_v3 = vadd.f32 %v1156_v60, %v1094_v0  ;;  %v1099_v63 = vmul.f32 %v1958_v23, %v1958_v23  ;;  %v1110_v60 = vmul.f32 %v2038_v61, %v2038_v61 }
 0x145   :  { %v1158_v5 = vadd.f32 %v1157_v3, %v1095_v42  ;;  %v1023_v7 = vadd.f32 %v1938_v6, %v1022_v2  ;;  %v1100_v6 = vmul.f32 %v1962_v30, %v1962_v30 }
 0x147   :  { %v1024_v8 = vadd.f32 %v1023_v7, %v1960_v25  ;;  %v1159_v11 = vadd.f32 %v1158_v5, %v1096_v46  ;;  %v1101_v25 = vmul.f32 %v1984_v53, %v1984_v53  ;;  %v1114_v7 = vmul.f32 %v2062_v33, %v2062_v33 }
 0x149   :  { %v1160_v12 = vadd.f32 %v1159_v11, %v1097_v1  ;;  %v1025_v10 = vadd.f32 %v1024_v8, %v1966_v34 }
 0x14b   :  { %v1026_v14 = vadd.f32 %v1958_v23, %v1025_v10  ;;  %v1161_v18 = vadd.f32 %v1160_v12, %v1098_v13  ;;  %v1103_v23 = vmul.f32 %v1982_v50, %v1982_v50 }
 0x14d   :  { %v1162_v20 = vadd.f32 %v1161_v18, %v1099_v63  ;;  %v1027_v21 = vadd.f32 %v1962_v30, %v1026_v14  ;;  %v1104_v30 = vmul.f32 %v1986_v58, %v1986_v58  ;;  %v1118_v14 = vmul.f32 %v2086_v9, %v2086_v9 }
 0x14f   :  { %v1028_v24 = vadd.f32 %v1027_v21, %v1984_v53  ;;  %v1163_v26 = vadd.f32 %v1162_v20, %v1100_v6  ;;  %v1105_v53 = vmul.f32 %v2008_v17, %v2008_v17 }
 0x151   :  { %v1164_v29 = vadd.f32 %v1163_v26, %v1101_v25  ;;  %v1029_v34 = vadd.f32 %v1028_v24, %v1990_v62 }
 0x153   :  { %v1030_v32 = vadd.f32 %v1982_v50, %v1029_v34  ;;  %v1165_v35 = vadd.f32 %v1164_v29, %v1102_v31  ;;  %v1107_v50 = vmul.f32 %v2006_v15, %v2006_v15 }
 0x155   :  { %v1166_v36 = vadd.f32 %v1165_v35, %v1103_v23  ;;  %v1031_v37 = vadd.f32 %v1986_v58, %v1030_v32  ;;  %v1108_v58 = vmul.f32 %v2010_v22, %v2010_v22  ;;  %v984_v35 = vld [vmem:[#allocation2] sm:$0x1] }
 0x157   :  { %v1032_v38 = vadd.f32 %v1031_v37, %v2008_v17  ;;  %v1167_v39 = vadd.f32 %v1166_v36, %v1104_v30  ;;  %v1109_v17 = vmul.f32 %v2032_v48, %v2032_v48  ;;  %v1056_v36 = vld [vmem:[#allocation2 + $0x1] sm:$0x1] }
 0x159   :  { %v1168_v40 = vadd.f32 %v1167_v39, %v1105_v53  ;;  %v1033_v62 = vadd.f32 %v1032_v38, %v2014_v28 }
 0x15b   :  { %v1034_v43 = vadd.f32 %v2006_v15, %v1033_v62  ;;  %v1169_v47 = vadd.f32 %v1168_v40, %v1106_v41  ;;  %v1111_v15 = vmul.f32 %v2030_v45, %v2030_v45 }
 0x15d   :  { %v1170_v49 = vadd.f32 %v1169_v47, %v1107_v50  ;;  %v1035_v52 = vadd.f32 %v2010_v22, %v1034_v43  ;;  %v1112_v22 = vmul.f32 %v2034_v56, %v2034_v56 }
 0x15f   :  { %v1036_v44 = vadd.f32 %v1035_v52, %v2032_v48  ;;  %v1171_v54 = vadd.f32 %v1170_v49, %v1108_v58  ;;  %v1113_v48 = vmul.f32 %v2056_v19, %v2056_v19 }
 0x161   :  { %v1172_v57 = vadd.f32 %v1171_v54, %v1109_v17  ;;  %v1037_v28 = vadd.f32 %v1036_v44, %v2038_v61 }
 0x163   :  { %v1038_v51 = vadd.f32 %v2030_v45, %v1037_v28  ;;  %v1173_v0 = vadd.f32 %v1172_v57, %v1110_v60  ;;  %v1115_v45 = vmul.f32 %v2054_v16, %v2054_v16 }
 0x165   :  { %v1174_v42 = vadd.f32 %v1173_v0, %v1111_v15  ;;  %v1039_v2 = vadd.f32 %v2034_v56, %v1038_v51  ;;  %v1116_v56 = vmul.f32 %v2058_v27, %v2058_v27 }
 0x167   :  { %v1040_v3 = vadd.f32 %v1039_v2, %v2056_v19  ;;  %v1175_v46 = vadd.f32 %v1174_v42, %v1112_v22  ;;  %v1117_v19 = vmul.f32 %v2080_v59, %v2080_v59 }
 0x169   :  { %v1176_v5 = vadd.f32 %v1175_v46, %v1113_v48  ;;  %v1041_v61 = vadd.f32 %v1040_v3, %v2062_v33 }
 0x16b   :  { %v1042_v1 = vadd.f32 %v2054_v16, %v1041_v61  ;;  %v1177_v8 = vadd.f32 %v1176_v5, %v1114_v7  ;;  %v1119_v16 = vmul.f32 %v2078_v55, %v2078_v55 }
 0x16d   :  { %v1178_v11 = vadd.f32 %v1177_v8, %v1115_v45  ;;  %v1043_v12 = vadd.f32 %v2058_v27, %v1042_v1  ;;  %v1120_v27 = vmul.f32 %v2082_v4, %v2082_v4 }
 0x16f   :  { %v1044_v10 = vadd.f32 %v1043_v12, %v2080_v59  ;;  %v1179_v13 = vadd.f32 %v1178_v11, %v1116_v56 }
 0x171   :  { %v1180_v63 = vadd.f32 %v1179_v13, %v1117_v19  ;;  %v1045_v33 = vadd.f32 %v1044_v10, %v2086_v9 }
 0x173   :  { %v1046_v18 = vadd.f32 %v2078_v55, %v1045_v33  ;;  %v1181_v6 = vadd.f32 %v1180_v63, %v1118_v14 }
 0x175   :  { %v1047_v20 = vadd.f32 %v2082_v4, %v1046_v18  ;;  %v1182_v21 = vadd.f32 %v1181_v6, %v1119_v16 }
 0x177   :  { %v1048_v59 = vrot.slane %v1047_v20, 4  ;;  %v1183_v25 = vadd.f32 %v1182_v21, %v1120_v27 }
 0x179   :  { %v1049_v24 = vadd.f32 %v1048_v59, %v1047_v20  ;;  %v1184_v26 = vrot.slane %v1183_v25, 4 }
 0x17b   :  { %v1050_v29 = vrot.slane %v1049_v24, 2  ;;  %v1185_v34 = vadd.f32 %v1184_v26, %v1183_v25 }
 0x17d   :  { %v1051_v31 = vadd.f32 %v1050_v29, %v1049_v24  ;;  %v1186_v9 = vrot.slane %v1185_v34, 2 }
 0x17f   :  { %v1052_v23 = vrot.slane %v1051_v31, 1  ;;  %v1187_v32 = vadd.f32 %v1186_v9, %v1185_v34 }
 0x181   :  { %v1053_v30 = vadd.f32 %v1052_v23, %v1051_v31  ;;  %v1188_v55 = vrot.slane %v1187_v32, 1 }
 0x183   :  { %v1054_v37 = vadd.f32 %v1053_v30, %v984_v35  ;;  %v1189_v53 = vadd.f32 %v1188_v55, %v1187_v32 }
 0x185   :  { %1055 = vst [vmem:[#allocation2] sm:$0x1] %v1054_v37  ;;  %v1190_v38 = vadd.f32 %v1189_v53, %v1056_v36 }
 0x187   :  { %1191 = vst [vmem:[#allocation2 + $0x1] sm:$0x1] %v1190_v38 }
 0x18e   :  { %v1195_v4 = vld [vmem:[#allocation2] sm:$0xff] }
 0x18f   :  { %1196 = vst [vmem:[%s2204_s3] sm:$0xff] %v1195_v4 }

// kernel: basic_block_forward.7
= control target key start
LH: loop header
LB: loop body
LE: loop exit
PB: predicated region body
PF: predicated region fallthrough
CT: control target
= control target key end

     0   :  { %s1776_s0 = inlined_call_operand.vmem [shape: bf16[512,128], index: 0, kind: input, shape index: {}]   ;;  %s1777_s1 = inlined_call_operand.vmem [shape: bf16[512,128], index: 1, kind: input, shape index: {}]   ;;  %s1778_s2 = inlined_call_operand.vmem [shape: f32[8,128], index: 2, kind: input, shape index: {}]   ;;  %s1779_s3 = inlined_call_operand.vmem [shape: f32[8,128], index: 3, kind: input, shape index: {}]   ;;  %s1780_s4 = inlined_call_operand.vmem [shape: f32[512,128], index: 4, kind: output, shape index: {}]  }
   0x1   :  { %v750_v0 = vld [vmem:[%s1776_s0] sm:$0xff]   ;;  %v1005_v9 = vld [vmem:[%s1776_s0 + $0x8] sm:$0xff]   ;;  %v1006_v20 = vld [vmem:[%s1776_s0 + $0x10] sm:$0xff]  }
   0x2   :  { %v1102_v1 = vld [vmem:[%s1778_s2] ss:$0 sm:$0xff]  ;;  %v751_v2 = vunpack.c.l.bf16 %v750_v0  ;;  %v752_v5 = vunpack.c.h.bf16 %v750_v0  ;;  %v1115_v6 = vld [vmem:[%s1778_s2 + $0x1] ss:$0 sm:$0xff]  ;;  %v1036_v10 = vld [vmem:[%s1777_s1 + $0x8] sm:$0xff]   ;;  %v755_v14 = vunpack.c.l.bf16 %v1005_v9  ;;  %v756_v18 = vunpack.c.h.bf16 %v1005_v9 }
   0x3   :  { %v878_v3 = vld [vmem:[%s1777_s1] sm:$0xff]   ;;  %v883_v15 = vunpack.c.l.bf16 %v1036_v10  ;;  %v884_v19 = vunpack.c.h.bf16 %v1036_v10  ;;  %v1037_v21 = vld [vmem:[%s1777_s1 + $0x10] sm:$0xff]   ;;  %v759_v32 = vunpack.c.l.bf16 %v1006_v20  ;;  %v760_v41 = vunpack.c.h.bf16 %v1006_v20  ;;  %v1007_v42 = vld [vmem:[%s1776_s0 + $0x18] sm:$0xff]  }
   0x4   :  { %v1110_v4 = vld [vmem:[%s1779_s3] ss:$0 sm:$0xff]  ;;  %v879_v7 = vunpack.c.l.bf16 %v878_v3  ;;  %v880_v8 = vunpack.c.h.bf16 %v878_v3  ;;  %v150_v11 = vmul.f32 %v751_v2, %v1102_v1  ;;  %v1127_v12 = vld [vmem:[%s1779_s3 + $0x1] ss:$0 sm:$0xff]  ;;  %v151_v13 = vmul.f32 %v752_v5, %v1102_v1  ;;  %v1038_v43 = vld [vmem:[%s1777_s1 + $0x18] sm:$0xff]  }
   0x5   :  { %v152_v24 = vmul.f32 %v755_v14, %v1102_v1  ;;  %v418_v25 = vmul.f32 %v883_v15, %v1110_v4  ;;  %v153_v28 = vmul.f32 %v756_v18, %v1102_v1  ;;  %v419_v29 = vmul.f32 %v884_v19, %v1110_v4  ;;  %v1008_v52 = vld [vmem:[%s1776_s0 + $0x20] sm:$0xff]   ;;  %v1009_v14 = vld [vmem:[%s1776_s0 + $0x28] sm:$0xff]  }
   0x6   :  { %v416_v16 = vmul.f32 %v879_v7, %v1110_v4  ;;  %v417_v17 = vmul.f32 %v880_v8, %v1110_v4  ;;  %v219_v22 = vadd.f32 %v1115_v6, %v150_v11  ;;  %v220_v23 = vadd.f32 %v1115_v6, %v151_v13  ;;  %v1039_v57 = vld [vmem:[%s1777_s1 + $0x20] sm:$0xff]   ;;  %v1040_v19 = vld [vmem:[%s1777_s1 + $0x28] sm:$0xff]  }
   0x7   :  { %v221_v30 = vadd.f32 %v1115_v6, %v152_v24  ;;  %v487_v31 = vadd.f32 %v1127_v12, %v418_v25  ;;  %v887_v33 = vunpack.c.l.bf16 %v1037_v21  ;;  %v222_v36 = vadd.f32 %v1115_v6, %v153_v28 }
   0x8   :  { %v485_v26 = vadd.f32 %v1127_v12, %v416_v16  ;;  %v486_v27 = vadd.f32 %v1127_v12, %v417_v17  ;;  %v488_v37 = vadd.f32 %v1127_v12, %v419_v29  ;;  %v154_v39 = vmul.f32 %v759_v32, %v1102_v1  ;;  %v1010_v32 = vld [vmem:[%s1776_s0 + $0x30] sm:$0xff]  }
   0x9   :  { %v551_v38 = vadd.f32 %v487_v31, %v221_v30  ;;  %v420_v40 = vmul.f32 %v887_v33, %v1110_v4  ;;  %v888_v47 = vunpack.c.h.bf16 %v1037_v21  ;;  %v155_v51 = vmul.f32 %v760_v41, %v1102_v1  ;;  %v1041_v33 = vld [vmem:[%s1777_s1 + $0x30] sm:$0xff]  }
   0xa   :  { %v549_v34 = vadd.f32 %v485_v26, %v219_v22  ;;  %v550_v35 = vadd.f32 %v486_v27, %v220_v23  ;;  %v552_v46 = vadd.f32 %v488_v37, %v222_v36  ;;  %v223_v49 = vadd.f32 %v1115_v6, %v154_v39 }
   0xb   :  { %v615_v48 = vmax.f32 %v551_v38, 0.0  ;;  %v489_v50 = vadd.f32 %v1127_v12, %v420_v40  ;;  %v421_v54 = vmul.f32 %v888_v47, %v1110_v4  ;;  %v763_v55 = vunpack.c.l.bf16 %v1007_v42 }
   0xc   :  { %v613_v44 = vmax.f32 %v549_v34, 0.0  ;;  %v614_v45 = vmax.f32 %v550_v35, 0.0  ;;  %v616_v53 = vmax.f32 %v552_v46, 0.0  ;;  %v891_v56 = vunpack.c.l.bf16 %v1038_v43  ;;  %v1011_v46 = vld [vmem:[%s1776_s0 + $0x38] sm:$0xff]  }
   0xd   :  { %679 = vst [vmem:[%s1780_s4 + $0x10] sm:$0xff] %v615_v48  ;;  %v553_v58 = vadd.f32 %v489_v50, %v223_v49  ;;  %v224_v59 = vadd.f32 %v1115_v6, %v155_v51  ;;  %v764_v60 = vunpack.c.h.bf16 %v1007_v42  ;;  %v892_v61 = vunpack.c.h.bf16 %v1038_v43 }
   0xe   :  { %677 = vst [vmem:[%s1780_s4] sm:$0xff] %v613_v44  ;;  %678 = vst [vmem:[%s1780_s4 + $0x8] sm:$0xff] %v614_v45  ;;  %v490_v62 = vadd.f32 %v1127_v12, %v421_v54  ;;  %v156_v63 = vmul.f32 %v763_v55, %v1102_v1  ;;  %v422_v0 = vmul.f32 %v891_v56, %v1110_v4  ;;  %v767_v2 = vunpack.c.l.bf16 %v1008_v52  ;;  %v1042_v55 = vld [vmem:[%s1777_s1 + $0x38] sm:$0xff]  }
   0xf   :  { %680 = vst [vmem:[%s1780_s4 + $0x18] sm:$0xff] %v616_v53  ;;  %v617_v3 = vmax.f32 %v553_v58, 0.0  ;;  %v157_v5 = vmul.f32 %v764_v60, %v1102_v1  ;;  %v423_v7 = vmul.f32 %v892_v61, %v1110_v4  ;;  %v895_v8 = vunpack.c.l.bf16 %v1039_v57 }
  0x10   :  { %v554_v9 = vadd.f32 %v490_v62, %v224_v59  ;;  %v225_v10 = vadd.f32 %v1115_v6, %v156_v63  ;;  %v491_v11 = vadd.f32 %v1127_v12, %v422_v0  ;;  %v158_v13 = vmul.f32 %v767_v2, %v1102_v1 }
  0x11   :  { %681 = vst [vmem:[%s1780_s4 + $0x20] sm:$0xff] %v617_v3  ;;  %v226_v15 = vadd.f32 %v1115_v6, %v157_v5  ;;  %v492_v16 = vadd.f32 %v1127_v12, %v423_v7  ;;  %v424_v17 = vmul.f32 %v895_v8, %v1110_v4  ;;  %v768_v18 = vunpack.c.h.bf16 %v1008_v52  ;;  %v1012_v7 = vld [vmem:[%s1776_s0 + $0x40] sm:$0xff]  }
  0x12   :  { %v618_v20 = vmax.f32 %v554_v9, 0.0  ;;  %v555_v21 = vadd.f32 %v491_v11, %v225_v10  ;;  %v227_v22 = vadd.f32 %v1115_v6, %v158_v13  ;;  %v896_v23 = vunpack.c.h.bf16 %v1039_v57  ;;  %v1043_v13 = vld [vmem:[%s1777_s1 + $0x40] sm:$0xff]  }
  0x13   :  { %v556_v24 = vadd.f32 %v492_v16, %v226_v15  ;;  %v493_v25 = vadd.f32 %v1127_v12, %v424_v17  ;;  %v159_v26 = vmul.f32 %v768_v18, %v1102_v1  ;;  %v771_v27 = vunpack.c.l.bf16 %v1009_v14 }
  0x14   :  { %682 = vst [vmem:[%s1780_s4 + $0x28] sm:$0xff] %v618_v20  ;;  %v619_v28 = vmax.f32 %v555_v21, 0.0  ;;  %v425_v29 = vmul.f32 %v896_v23, %v1110_v4  ;;  %v899_v30 = vunpack.c.l.bf16 %v1040_v19  ;;  %v772_v31 = vunpack.c.h.bf16 %v1009_v14 }
  0x15   :  { %v620_v34 = vmax.f32 %v556_v24, 0.0  ;;  %v557_v35 = vadd.f32 %v493_v25, %v227_v22  ;;  %v228_v36 = vadd.f32 %v1115_v6, %v159_v26  ;;  %v160_v37 = vmul.f32 %v771_v27, %v1102_v1  ;;  %v1013_v26 = vld [vmem:[%s1776_s0 + $0x48] sm:$0xff]  }
  0x16   :  { %683 = vst [vmem:[%s1780_s4 + $0x30] sm:$0xff] %v619_v28  ;;  %v494_v38 = vadd.f32 %v1127_v12, %v425_v29  ;;  %v426_v39 = vmul.f32 %v899_v30, %v1110_v4  ;;  %v161_v40 = vmul.f32 %v772_v31, %v1102_v1  ;;  %v900_v41 = vunpack.c.h.bf16 %v1040_v19  ;;  %v1044_v27 = vld [vmem:[%s1777_s1 + $0x48] sm:$0xff]  }
  0x17   :  { %684 = vst [vmem:[%s1780_s4 + $0x38] sm:$0xff] %v620_v34  ;;  %v621_v42 = vmax.f32 %v557_v35, 0.0  ;;  %v229_v43 = vadd.f32 %v1115_v6, %v160_v37  ;;  %v775_v44 = vunpack.c.l.bf16 %v1010_v32  ;;  %v903_v45 = vunpack.c.l.bf16 %v1041_v33 }
  0x18   :  { %v558_v47 = vadd.f32 %v494_v38, %v228_v36  ;;  %v495_v48 = vadd.f32 %v1127_v12, %v426_v39  ;;  %v230_v49 = vadd.f32 %v1115_v6, %v161_v40  ;;  %v427_v50 = vmul.f32 %v900_v41, %v1110_v4  ;;  %v1014_v40 = vld [vmem:[%s1776_s0 + $0x50] sm:$0xff]  }
  0x19   :  { %685 = vst [vmem:[%s1780_s4 + $0x40] sm:$0xff] %v621_v42  ;;  %v162_v51 = vmul.f32 %v775_v44, %v1102_v1  ;;  %v428_v52 = vmul.f32 %v903_v45, %v1110_v4  ;;  %v776_v53 = vunpack.c.h.bf16 %v1010_v32  ;;  %v904_v54 = vunpack.c.h.bf16 %v1041_v33 }
  0x1a   :  { %v622_v56 = vmax.f32 %v558_v47, 0.0  ;;  %v559_v57 = vadd.f32 %v495_v48, %v229_v43  ;;  %v496_v58 = vadd.f32 %v1127_v12, %v427_v50  ;;  %v779_v59 = vunpack.c.l.bf16 %v1011_v46 }
  0x1b   :  { %v231_v60 = vadd.f32 %v1115_v6, %v162_v51  ;;  %v497_v61 = vadd.f32 %v1127_v12, %v428_v52  ;;  %v163_v62 = vmul.f32 %v776_v53, %v1102_v1  ;;  %v429_v63 = vmul.f32 %v904_v54, %v1110_v4 }
  0x1c   :  { %686 = vst [vmem:[%s1780_s4 + $0x48] sm:$0xff] %v622_v56  ;;  %v623_v0 = vmax.f32 %v559_v57, 0.0  ;;  %v560_v2 = vadd.f32 %v496_v58, %v230_v49  ;;  %v164_v3 = vmul.f32 %v779_v59, %v1102_v1  ;;  %v907_v5 = vunpack.c.l.bf16 %v1042_v55  ;;  %v1045_v49 = vld [vmem:[%s1777_s1 + $0x50] sm:$0xff]  }
  0x1d   :  { %v561_v8 = vadd.f32 %v497_v61, %v231_v60  ;;  %v232_v9 = vadd.f32 %v1115_v6, %v163_v62  ;;  %v498_v10 = vadd.f32 %v1127_v12, %v429_v63  ;;  %v780_v11 = vunpack.c.h.bf16 %v1011_v46  ;;  %v1015_v62 = vld [vmem:[%s1776_s0 + $0x58] sm:$0xff]  }
  0x1e   :  { %687 = vst [vmem:[%s1780_s4 + $0x50] sm:$0xff] %v623_v0  ;;  %v624_v14 = vmax.f32 %v560_v2, 0.0  ;;  %v233_v15 = vadd.f32 %v1115_v6, %v164_v3  ;;  %v430_v16 = vmul.f32 %v907_v5, %v1110_v4  ;;  %v908_v17 = vunpack.c.h.bf16 %v1042_v55  ;;  %v1046_v63 = vld [vmem:[%s1777_s1 + $0x58] sm:$0xff]  }
  0x1f   :  { %v625_v18 = vmax.f32 %v561_v8, 0.0  ;;  %v562_v19 = vadd.f32 %v498_v10, %v232_v9  ;;  %v165_v20 = vmul.f32 %v780_v11, %v1102_v1  ;;  %v783_v21 = vunpack.c.l.bf16 %v1012_v7 }
  0x20   :  { %688 = vst [vmem:[%s1780_s4 + $0x58] sm:$0xff] %v624_v14  ;;  %v499_v22 = vadd.f32 %v1127_v12, %v430_v16  ;;  %v431_v23 = vmul.f32 %v908_v17, %v1110_v4  ;;  %v911_v24 = vunpack.c.l.bf16 %v1043_v13  ;;  %v784_v25 = vunpack.c.h.bf16 %v1012_v7 }
  0x21   :  { %689 = vst [vmem:[%s1780_s4 + $0x60] sm:$0xff] %v625_v18  ;;  %v626_v28 = vmax.f32 %v562_v19, 0.0  ;;  %v234_v29 = vadd.f32 %v1115_v6, %v165_v20  ;;  %v166_v30 = vmul.f32 %v783_v21, %v1102_v1  ;;  %v912_v31 = vunpack.c.h.bf16 %v1043_v13  ;;  %v1016_v20 = vld [vmem:[%s1776_s0 + $0x60] sm:$0xff]  }
  0x22   :  { %v563_v32 = vadd.f32 %v499_v22, %v233_v15  ;;  %v500_v33 = vadd.f32 %v1127_v12, %v431_v23  ;;  %v432_v34 = vmul.f32 %v911_v24, %v1110_v4  ;;  %v167_v35 = vmul.f32 %v784_v25, %v1102_v1  ;;  %v1047_v25 = vld [vmem:[%s1777_s1 + $0x60] sm:$0xff]  }
  0x23   :  { %690 = vst [vmem:[%s1780_s4 + $0x68] sm:$0xff] %v626_v28  ;;  %v235_v36 = vadd.f32 %v1115_v6, %v166_v30  ;;  %v433_v37 = vmul.f32 %v912_v31, %v1110_v4  ;;  %v787_v38 = vunpack.c.l.bf16 %v1013_v26  ;;  %v915_v39 = vunpack.c.l.bf16 %v1044_v27 }
  0x24   :  { %v627_v41 = vmax.f32 %v563_v32, 0.0  ;;  %v564_v42 = vadd.f32 %v500_v33, %v234_v29  ;;  %v501_v43 = vadd.f32 %v1127_v12, %v432_v34  ;;  %v236_v44 = vadd.f32 %v1115_v6, %v167_v35  ;;  %v1017_v34 = vld [vmem:[%s1776_s0 + $0x68] sm:$0xff]  }
  0x25   :  { %v502_v45 = vadd.f32 %v1127_v12, %v433_v37  ;;  %v168_v46 = vmul.f32 %v787_v38, %v1102_v1  ;;  %v434_v47 = vmul.f32 %v915_v39, %v1110_v4  ;;  %v788_v48 = vunpack.c.h.bf16 %v1013_v26 }
  0x26   :  { %691 = vst [vmem:[%s1780_s4 + $0x70] sm:$0xff] %v627_v41  ;;  %v628_v50 = vmax.f32 %v564_v42, 0.0  ;;  %v565_v51 = vadd.f32 %v501_v43, %v235_v36  ;;  %v916_v52 = vunpack.c.h.bf16 %v1044_v27  ;;  %v791_v53 = vunpack.c.l.bf16 %v1014_v40  ;;  %v1048_v43 = vld [vmem:[%s1777_s1 + $0x68] sm:$0xff]  }
  0x27   :  { %v566_v54 = vadd.f32 %v502_v45, %v236_v44  ;;  %v237_v55 = vadd.f32 %v1115_v6, %v168_v46  ;;  %v503_v56 = vadd.f32 %v1127_v12, %v434_v47  ;;  %v169_v57 = vmul.f32 %v788_v48, %v1102_v1 }
  0x28   :  { %692 = vst [vmem:[%s1780_s4 + $0x78] sm:$0xff] %v628_v50  ;;  %v629_v58 = vmax.f32 %v565_v51, 0.0  ;;  %v435_v59 = vmul.f32 %v916_v52, %v1110_v4  ;;  %v170_v60 = vmul.f32 %v791_v53, %v1102_v1  ;;  %v919_v61 = vunpack.c.l.bf16 %v1045_v49 }
  0x29   :  { %v630_v0 = vmax.f32 %v566_v54, 0.0  ;;  %v567_v2 = vadd.f32 %v503_v56, %v237_v55  ;;  %v238_v3 = vadd.f32 %v1115_v6, %v169_v57  ;;  %v792_v5 = vunpack.c.h.bf16 %v1014_v40  ;;  %v1018_v56 = vld [vmem:[%s1776_s0 + $0x70] sm:$0xff]  }
  0x2a   :  { %693 = vst [vmem:[%s1780_s4 + $0x80] sm:$0xff] %v629_v58  ;;  %v504_v7 = vadd.f32 %v1127_v12, %v435_v59  ;;  %v239_v8 = vadd.f32 %v1115_v6, %v170_v60  ;;  %v436_v9 = vmul.f32 %v919_v61, %v1110_v4  ;;  %v920_v10 = vunpack.c.h.bf16 %v1045_v49  ;;  %v1049_v57 = vld [vmem:[%s1777_s1 + $0x70] sm:$0xff]  }
  0x2b   :  { %694 = vst [vmem:[%s1780_s4 + $0x88] sm:$0xff] %v630_v0  ;;  %v631_v11 = vmax.f32 %v567_v2, 0.0  ;;  %v171_v13 = vmul.f32 %v792_v5, %v1102_v1  ;;  %v795_v14 = vunpack.c.l.bf16 %v1015_v62  ;;  %v923_v15 = vunpack.c.l.bf16 %v1046_v63 }
  0x2c   :  { %v568_v16 = vadd.f32 %v504_v7, %v238_v3  ;;  %v505_v17 = vadd.f32 %v1127_v12, %v436_v9  ;;  %v437_v18 = vmul.f32 %v920_v10, %v1110_v4  ;;  %v796_v19 = vunpack.c.h.bf16 %v1015_v62 }
  0x2d   :  { %695 = vst [vmem:[%s1780_s4 + $0x90] sm:$0xff] %v631_v11  ;;  %v240_v21 = vadd.f32 %v1115_v6, %v171_v13  ;;  %v172_v22 = vmul.f32 %v795_v14, %v1102_v1  ;;  %v438_v23 = vmul.f32 %v923_v15, %v1110_v4  ;;  %v924_v24 = vunpack.c.h.bf16 %v1046_v63  ;;  %v1019_v14 = vld [vmem:[%s1776_s0 + $0x78] sm:$0xff]  }
  0x2e   :  { %v632_v26 = vmax.f32 %v568_v16, 0.0  ;;  %v569_v27 = vadd.f32 %v505_v17, %v239_v8  ;;  %v506_v28 = vadd.f32 %v1127_v12, %v437_v18  ;;  %v173_v29 = vmul.f32 %v796_v19, %v1102_v1  ;;  %v1050_v19 = vld [vmem:[%s1777_s1 + $0x78] sm:$0xff]  }
  0x2f   :  { %v241_v30 = vadd.f32 %v1115_v6, %v172_v22  ;;  %v507_v31 = vadd.f32 %v1127_v12, %v438_v23  ;;  %v439_v32 = vmul.f32 %v924_v24, %v1110_v4  ;;  %v799_v33 = vunpack.c.l.bf16 %v1016_v20 }
  0x30   :  { %696 = vst [vmem:[%s1780_s4 + $0x98] sm:$0xff] %v632_v26  ;;  %v633_v35 = vmax.f32 %v569_v27, 0.0  ;;  %v570_v36 = vadd.f32 %v506_v28, %v240_v21  ;;  %v242_v37 = vadd.f32 %v1115_v6, %v173_v29  ;;  %v927_v38 = vunpack.c.l.bf16 %v1047_v25  ;;  %v1020_v28 = vld [vmem:[%s1776_s0 + $0x80] sm:$0xff]  }
  0x31   :  { %v571_v39 = vadd.f32 %v507_v31, %v241_v30  ;;  %v508_v40 = vadd.f32 %v1127_v12, %v439_v32  ;;  %v174_v41 = vmul.f32 %v799_v33, %v1102_v1  ;;  %v800_v42 = vunpack.c.h.bf16 %v1016_v20  ;;  %v1051_v33 = vld [vmem:[%s1777_s1 + $0x80] sm:$0xff]  }
  0x32   :  { %697 = vst [vmem:[%s1780_s4 + $0xa0] sm:$0xff] %v633_v35  ;;  %v634_v44 = vmax.f32 %v570_v36, 0.0  ;;  %v440_v45 = vmul.f32 %v927_v38, %v1110_v4  ;;  %v928_v46 = vunpack.c.h.bf16 %v1047_v25  ;;  %v803_v47 = vunpack.c.l.bf16 %v1017_v34 }
  0x33   :  { %v635_v48 = vmax.f32 %v571_v39, 0.0  ;;  %v572_v49 = vadd.f32 %v508_v40, %v242_v37  ;;  %v243_v50 = vadd.f32 %v1115_v6, %v174_v41  ;;  %v175_v51 = vmul.f32 %v800_v42, %v1102_v1 }
  0x34   :  { %698 = vst [vmem:[%s1780_s4 + $0xa8] sm:$0xff] %v634_v44  ;;  %v509_v52 = vadd.f32 %v1127_v12, %v440_v45  ;;  %v441_v53 = vmul.f32 %v928_v46, %v1110_v4  ;;  %v176_v54 = vmul.f32 %v803_v47, %v1102_v1  ;;  %v931_v55 = vunpack.c.l.bf16 %v1048_v43 }
  0x35   :  { %699 = vst [vmem:[%s1780_s4 + $0xb0] sm:$0xff] %v635_v48  ;;  %v636_v58 = vmax.f32 %v572_v49, 0.0  ;;  %v244_v59 = vadd.f32 %v1115_v6, %v175_v51  ;;  %v804_v60 = vunpack.c.h.bf16 %v1017_v34  ;;  %v932_v61 = vunpack.c.h.bf16 %v1048_v43 }
  0x36   :  { %v573_v62 = vadd.f32 %v509_v52, %v243_v50  ;;  %v510_v63 = vadd.f32 %v1127_v12, %v441_v53  ;;  %v245_v0 = vadd.f32 %v1115_v6, %v176_v54  ;;  %v442_v2 = vmul.f32 %v931_v55, %v1110_v4  ;;  %v1021_v50 = vld [vmem:[%s1776_s0 + $0x88] sm:$0xff]  }
  0x37   :  { %700 = vst [vmem:[%s1780_s4 + $0xb8] sm:$0xff] %v636_v58  ;;  %v177_v3 = vmul.f32 %v804_v60, %v1102_v1  ;;  %v443_v5 = vmul.f32 %v932_v61, %v1110_v4  ;;  %v807_v7 = vunpack.c.l.bf16 %v1018_v56  ;;  %v935_v8 = vunpack.c.l.bf16 %v1049_v57  ;;  %v1052_v55 = vld [vmem:[%s1777_s1 + $0x88] sm:$0xff]  }
  0x38   :  { %v637_v9 = vmax.f32 %v573_v62, 0.0  ;;  %v574_v10 = vadd.f32 %v510_v63, %v244_v59  ;;  %v511_v11 = vadd.f32 %v1127_v12, %v442_v2  ;;  %v808_v13 = vunpack.c.h.bf16 %v1018_v56 }
  0x39   :  { %v246_v15 = vadd.f32 %v1115_v6, %v177_v3  ;;  %v512_v16 = vadd.f32 %v1127_v12, %v443_v5  ;;  %v178_v17 = vmul.f32 %v807_v7, %v1102_v1  ;;  %v444_v18 = vmul.f32 %v935_v8, %v1110_v4  ;;  %v1022_v7 = vld [vmem:[%s1776_s0 + $0x90] sm:$0xff]  }
  0x3a   :  { %701 = vst [vmem:[%s1780_s4 + $0xc0] sm:$0xff] %v637_v9  ;;  %v638_v20 = vmax.f32 %v574_v10, 0.0  ;;  %v575_v21 = vadd.f32 %v511_v11, %v245_v0  ;;  %v179_v22 = vmul.f32 %v808_v13, %v1102_v1  ;;  %v936_v23 = vunpack.c.h.bf16 %v1049_v57  ;;  %v1053_v13 = vld [vmem:[%s1777_s1 + $0x90] sm:$0xff]  }
  0x3b   :  { %v576_v24 = vadd.f32 %v512_v16, %v246_v15  ;;  %v247_v25 = vadd.f32 %v1115_v6, %v178_v17  ;;  %v513_v26 = vadd.f32 %v1127_v12, %v444_v18  ;;  %v811_v27 = vunpack.c.l.bf16 %v1019_v14 }
  0x3c   :  { %702 = vst [vmem:[%s1780_s4 + $0xc8] sm:$0xff] %v638_v20  ;;  %v639_v29 = vmax.f32 %v575_v21, 0.0  ;;  %v248_v30 = vadd.f32 %v1115_v6, %v179_v22  ;;  %v445_v31 = vmul.f32 %v936_v23, %v1110_v4  ;;  %v939_v32 = vunpack.c.l.bf16 %v1050_v19  ;;  %v1023_v22 = vld [vmem:[%s1776_s0 + $0x98] sm:$0xff]  }
  0x3d   :  { %v640_v34 = vmax.f32 %v576_v24, 0.0  ;;  %v577_v35 = vadd.f32 %v513_v26, %v247_v25  ;;  %v180_v36 = vmul.f32 %v811_v27, %v1102_v1  ;;  %v812_v37 = vunpack.c.h.bf16 %v1019_v14  ;;  %v1054_v27 = vld [vmem:[%s1777_s1 + $0x98] sm:$0xff]  }
  0x3e   :  { %703 = vst [vmem:[%s1780_s4 + $0xd0] sm:$0xff] %v639_v29  ;;  %v514_v38 = vadd.f32 %v1127_v12, %v445_v31  ;;  %v446_v39 = vmul.f32 %v939_v32, %v1110_v4  ;;  %v940_v40 = vunpack.c.h.bf16 %v1050_v19  ;;  %v815_v41 = vunpack.c.l.bf16 %v1020_v28 }
  0x3f   :  { %704 = vst [vmem:[%s1780_s4 + $0xd8] sm:$0xff] %v640_v34  ;;  %v641_v42 = vmax.f32 %v577_v35, 0.0  ;;  %v249_v43 = vadd.f32 %v1115_v6, %v180_v36  ;;  %v181_v44 = vmul.f32 %v812_v37, %v1102_v1  ;;  %v943_v45 = vunpack.c.l.bf16 %v1051_v33 }
  0x40   :  { %v578_v46 = vadd.f32 %v514_v38, %v248_v30  ;;  %v515_v47 = vadd.f32 %v1127_v12, %v446_v39  ;;  %v447_v48 = vmul.f32 %v940_v40, %v1110_v4  ;;  %v182_v49 = vmul.f32 %v815_v41, %v1102_v1 }
  0x41   :  { %705 = vst [vmem:[%s1780_s4 + $0xe0] sm:$0xff] %v641_v42  ;;  %v250_v51 = vadd.f32 %v1115_v6, %v181_v44  ;;  %v448_v52 = vmul.f32 %v943_v45, %v1110_v4  ;;  %v816_v53 = vunpack.c.h.bf16 %v1020_v28  ;;  %v944_v54 = vunpack.c.h.bf16 %v1051_v33  ;;  %v1024_v44 = vld [vmem:[%s1776_s0 + $0xa0] sm:$0xff]  }
  0x42   :  { %v642_v56 = vmax.f32 %v578_v46, 0.0  ;;  %v579_v57 = vadd.f32 %v515_v47, %v249_v43  ;;  %v516_v58 = vadd.f32 %v1127_v12, %v447_v48  ;;  %v251_v59 = vadd.f32 %v1115_v6, %v182_v49  ;;  %v1055_v49 = vld [vmem:[%s1777_s1 + $0xa0] sm:$0xff]  }
  0x43   :  { %v517_v60 = vadd.f32 %v1127_v12, %v448_v52  ;;  %v183_v61 = vmul.f32 %v816_v53, %v1102_v1  ;;  %v449_v62 = vmul.f32 %v944_v54, %v1110_v4  ;;  %v819_v63 = vunpack.c.l.bf16 %v1021_v50 }
  0x44   :  { %706 = vst [vmem:[%s1780_s4 + $0xe8] sm:$0xff] %v642_v56  ;;  %v643_v0 = vmax.f32 %v579_v57, 0.0  ;;  %v580_v2 = vadd.f32 %v516_v58, %v250_v51  ;;  %v947_v3 = vunpack.c.l.bf16 %v1052_v55  ;;  %v820_v5 = vunpack.c.h.bf16 %v1021_v50 }
  0x45   :  { %v581_v8 = vadd.f32 %v517_v60, %v251_v59  ;;  %v252_v9 = vadd.f32 %v1115_v6, %v183_v61  ;;  %v518_v10 = vadd.f32 %v1127_v12, %v449_v62  ;;  %v184_v11 = vmul.f32 %v819_v63, %v1102_v1  ;;  %v1025_v62 = vld [vmem:[%s1776_s0 + $0xa8] sm:$0xff]  }
  0x46   :  { %707 = vst [vmem:[%s1780_s4 + $0xf0] sm:$0xff] %v643_v0  ;;  %v644_v14 = vmax.f32 %v580_v2, 0.0  ;;  %v450_v15 = vmul.f32 %v947_v3, %v1110_v4  ;;  %v185_v16 = vmul.f32 %v820_v5, %v1102_v1  ;;  %v948_v17 = vunpack.c.h.bf16 %v1052_v55  ;;  %v1056_v63 = vld [vmem:[%s1777_s1 + $0xa8] sm:$0xff]  }
  0x47   :  { %v645_v18 = vmax.f32 %v581_v8, 0.0  ;;  %v582_v19 = vadd.f32 %v518_v10, %v252_v9  ;;  %v253_v20 = vadd.f32 %v1115_v6, %v184_v11  ;;  %v823_v21 = vunpack.c.l.bf16 %v1022_v7 }
  0x48   :  { %708 = vst [vmem:[%s1780_s4 + $0xf8] sm:$0xff] %v644_v14  ;;  %v519_v23 = vadd.f32 %v1127_v12, %v450_v15  ;;  %v254_v24 = vadd.f32 %v1115_v6, %v185_v16  ;;  %v451_v25 = vmul.f32 %v948_v17, %v1110_v4  ;;  %v951_v26 = vunpack.c.l.bf16 %v1053_v13  ;;  %v1026_v16 = vld [vmem:[%s1776_s0 + $0xb0] sm:$0xff]  }
  0x49   :  { %709 = vst [vmem:[%s1780_s4 + $0x100] sm:$0xff] %v645_v18  ;;  %v646_v28 = vmax.f32 %v582_v19, 0.0  ;;  %v186_v29 = vmul.f32 %v823_v21, %v1102_v1  ;;  %v824_v30 = vunpack.c.h.bf16 %v1022_v7  ;;  %v952_v31 = vunpack.c.h.bf16 %v1053_v13 }
  0x4a   :  { %v583_v32 = vadd.f32 %v519_v23, %v253_v20  ;;  %v520_v33 = vadd.f32 %v1127_v12, %v451_v25  ;;  %v452_v34 = vmul.f32 %v951_v26, %v1110_v4  ;;  %v827_v35 = vunpack.c.l.bf16 %v1023_v22  ;;  %v1057_v25 = vld [vmem:[%s1777_s1 + $0xb0] sm:$0xff]  }
  0x4b   :  { %710 = vst [vmem:[%s1780_s4 + $0x108] sm:$0xff] %v646_v28  ;;  %v255_v36 = vadd.f32 %v1115_v6, %v186_v29  ;;  %v187_v37 = vmul.f32 %v824_v30, %v1102_v1  ;;  %v453_v38 = vmul.f32 %v952_v31, %v1110_v4  ;;  %v955_v39 = vunpack.c.l.bf16 %v1054_v27 }
  0x4c   :  { %v647_v40 = vmax.f32 %v583_v32, 0.0  ;;  %v584_v41 = vadd.f32 %v520_v33, %v254_v24  ;;  %v521_v42 = vadd.f32 %v1127_v12, %v452_v34  ;;  %v188_v43 = vmul.f32 %v827_v35, %v1102_v1 }
  0x4d   :  { %v256_v45 = vadd.f32 %v1115_v6, %v187_v37  ;;  %v522_v46 = vadd.f32 %v1127_v12, %v453_v38  ;;  %v454_v47 = vmul.f32 %v955_v39, %v1110_v4  ;;  %v828_v48 = vunpack.c.h.bf16 %v1023_v22  ;;  %v1027_v38 = vld [vmem:[%s1776_s0 + $0xb8] sm:$0xff]  }
  0x4e   :  { %711 = vst [vmem:[%s1780_s4 + $0x110] sm:$0xff] %v647_v40  ;;  %v648_v50 = vmax.f32 %v584_v41, 0.0  ;;  %v585_v51 = vadd.f32 %v521_v42, %v255_v36  ;;  %v257_v52 = vadd.f32 %v1115_v6, %v188_v43  ;;  %v956_v53 = vunpack.c.h.bf16 %v1054_v27  ;;  %v1058_v43 = vld [vmem:[%s1777_s1 + $0xb8] sm:$0xff]  }
  0x4f   :  { %v586_v54 = vadd.f32 %v522_v46, %v256_v45  ;;  %v523_v55 = vadd.f32 %v1127_v12, %v454_v47  ;;  %v189_v56 = vmul.f32 %v828_v48, %v1102_v1  ;;  %v831_v57 = vunpack.c.l.bf16 %v1024_v44 }
  0x50   :  { %712 = vst [vmem:[%s1780_s4 + $0x118] sm:$0xff] %v648_v50  ;;  %v649_v58 = vmax.f32 %v585_v51, 0.0  ;;  %v455_v59 = vmul.f32 %v956_v53, %v1110_v4  ;;  %v959_v60 = vunpack.c.l.bf16 %v1055_v49  ;;  %v832_v61 = vunpack.c.h.bf16 %v1024_v44 }
  0x51   :  { %v650_v0 = vmax.f32 %v586_v54, 0.0  ;;  %v587_v2 = vadd.f32 %v523_v55, %v257_v52  ;;  %v258_v3 = vadd.f32 %v1115_v6, %v189_v56  ;;  %v190_v5 = vmul.f32 %v831_v57, %v1102_v1  ;;  %v1028_v56 = vld [vmem:[%s1776_s0 + $0xc0] sm:$0xff]  }
  0x52   :  { %713 = vst [vmem:[%s1780_s4 + $0x120] sm:$0xff] %v649_v58  ;;  %v524_v7 = vadd.f32 %v1127_v12, %v455_v59  ;;  %v456_v8 = vmul.f32 %v959_v60, %v1110_v4  ;;  %v191_v9 = vmul.f32 %v832_v61, %v1102_v1  ;;  %v960_v10 = vunpack.c.h.bf16 %v1055_v49  ;;  %v1059_v57 = vld [vmem:[%s1777_s1 + $0xc0] sm:$0xff]  }
  0x53   :  { %714 = vst [vmem:[%s1780_s4 + $0x128] sm:$0xff] %v650_v0  ;;  %v651_v11 = vmax.f32 %v587_v2, 0.0  ;;  %v259_v13 = vadd.f32 %v1115_v6, %v190_v5  ;;  %v835_v14 = vunpack.c.l.bf16 %v1025_v62  ;;  %v963_v15 = vunpack.c.l.bf16 %v1056_v63 }
  0x54   :  { %v588_v17 = vadd.f32 %v524_v7, %v258_v3  ;;  %v525_v18 = vadd.f32 %v1127_v12, %v456_v8  ;;  %v260_v19 = vadd.f32 %v1115_v6, %v191_v9  ;;  %v457_v20 = vmul.f32 %v960_v10, %v1110_v4  ;;  %v1029_v9 = vld [vmem:[%s1776_s0 + $0xc8] sm:$0xff]  }
  0x55   :  { %715 = vst [vmem:[%s1780_s4 + $0x130] sm:$0xff] %v651_v11  ;;  %v192_v21 = vmul.f32 %v835_v14, %v1102_v1  ;;  %v458_v22 = vmul.f32 %v963_v15, %v1110_v4  ;;  %v836_v23 = vunpack.c.h.bf16 %v1025_v62  ;;  %v964_v24 = vunpack.c.h.bf16 %v1056_v63 }
  0x56   :  { %v652_v26 = vmax.f32 %v588_v17, 0.0  ;;  %v589_v27 = vadd.f32 %v525_v18, %v259_v13  ;;  %v526_v28 = vadd.f32 %v1127_v12, %v457_v20  ;;  %v839_v29 = vunpack.c.l.bf16 %v1026_v16 }
  0x57   :  { %v261_v30 = vadd.f32 %v1115_v6, %v192_v21  ;;  %v527_v31 = vadd.f32 %v1127_v12, %v458_v22  ;;  %v193_v32 = vmul.f32 %v836_v23, %v1102_v1  ;;  %v459_v33 = vmul.f32 %v964_v24, %v1110_v4 }
  0x58   :  { %716 = vst [vmem:[%s1780_s4 + $0x138] sm:$0xff] %v652_v26  ;;  %v653_v34 = vmax.f32 %v589_v27, 0.0  ;;  %v590_v35 = vadd.f32 %v526_v28, %v260_v19  ;;  %v194_v36 = vmul.f32 %v839_v29, %v1102_v1  ;;  %v967_v37 = vunpack.c.l.bf16 %v1057_v25  ;;  %v1060_v19 = vld [vmem:[%s1777_s1 + $0xc8] sm:$0xff]  }
  0x59   :  { %v591_v39 = vadd.f32 %v527_v31, %v261_v30  ;;  %v262_v40 = vadd.f32 %v1115_v6, %v193_v32  ;;  %v528_v41 = vadd.f32 %v1127_v12, %v459_v33  ;;  %v840_v42 = vunpack.c.h.bf16 %v1026_v16  ;;  %v1030_v32 = vld [vmem:[%s1776_s0 + $0xd0] sm:$0xff]  }
  0x5a   :  { %717 = vst [vmem:[%s1780_s4 + $0x140] sm:$0xff] %v653_v34  ;;  %v654_v44 = vmax.f32 %v590_v35, 0.0  ;;  %v263_v45 = vadd.f32 %v1115_v6, %v194_v36  ;;  %v460_v46 = vmul.f32 %v967_v37, %v1110_v4  ;;  %v968_v47 = vunpack.c.h.bf16 %v1057_v25  ;;  %v1061_v33 = vld [vmem:[%s1777_s1 + $0xd0] sm:$0xff]  }
  0x5b   :  { %v655_v48 = vmax.f32 %v591_v39, 0.0  ;;  %v592_v49 = vadd.f32 %v528_v41, %v262_v40  ;;  %v195_v50 = vmul.f32 %v840_v42, %v1102_v1  ;;  %v843_v51 = vunpack.c.l.bf16 %v1027_v38 }
  0x5c   :  { %718 = vst [vmem:[%s1780_s4 + $0x148] sm:$0xff] %v654_v44  ;;  %v529_v52 = vadd.f32 %v1127_v12, %v460_v46  ;;  %v461_v53 = vmul.f32 %v968_v47, %v1110_v4  ;;  %v971_v54 = vunpack.c.l.bf16 %v1058_v43  ;;  %v844_v55 = vunpack.c.h.bf16 %v1027_v38 }
  0x5d   :  { %719 = vst [vmem:[%s1780_s4 + $0x150] sm:$0xff] %v655_v48  ;;  %v656_v58 = vmax.f32 %v592_v49, 0.0  ;;  %v264_v59 = vadd.f32 %v1115_v6, %v195_v50  ;;  %v196_v60 = vmul.f32 %v843_v51, %v1102_v1  ;;  %v972_v61 = vunpack.c.h.bf16 %v1058_v43  ;;  %v1630_v48 = vld [vmem:[%s1779_s3] ss:$0 sm:$0xff]  ;;  %v1031_v49 = vld [vmem:[%s1776_s0 + $0xd8] sm:$0xff]  }
  0x5e   :  { %v593_v62 = vadd.f32 %v529_v52, %v263_v45  ;;  %v530_v63 = vadd.f32 %v1127_v12, %v461_v53  ;;  %v462_v0 = vmul.f32 %v971_v54, %v1110_v4  ;;  %v197_v2 = vmul.f32 %v844_v55, %v1102_v1  ;;  %v1648_v50 = vld [vmem:[%s1778_s2] ss:$0 sm:$0xff]  ;;  %v1062_v54 = vld [vmem:[%s1777_s1 + $0xd8] sm:$0xff]  }
  0x5f   :  { %720 = vst [vmem:[%s1780_s4 + $0x158] sm:$0xff] %v656_v58  ;;  %v265_v3 = vadd.f32 %v1115_v6, %v196_v60  ;;  %v463_v5 = vmul.f32 %v972_v61, %v1110_v4  ;;  %v847_v7 = vunpack.c.l.bf16 %v1028_v56  ;;  %v975_v8 = vunpack.c.l.bf16 %v1059_v57 }
  0x60   :  { %v657_v10 = vmax.f32 %v593_v62, 0.0  ;;  %v594_v11 = vadd.f32 %v530_v63, %v264_v59  ;;  %v531_v13 = vadd.f32 %v1127_v12, %v462_v0  ;;  %v266_v14 = vadd.f32 %v1115_v6, %v197_v2  ;;  %v1032_v0 = vld [vmem:[%s1776_s0 + $0xe0] sm:$0xff]  }
  0x61   :  { %v532_v15 = vadd.f32 %v1127_v12, %v463_v5  ;;  %v198_v16 = vmul.f32 %v847_v7, %v1102_v1  ;;  %v464_v17 = vmul.f32 %v975_v8, %v1110_v4  ;;  %v848_v18 = vunpack.c.h.bf16 %v1028_v56 }
  0x62   :  { %721 = vst [vmem:[%s1780_s4 + $0x160] sm:$0xff] %v657_v10  ;;  %v658_v20 = vmax.f32 %v594_v11, 0.0  ;;  %v595_v21 = vadd.f32 %v531_v13, %v265_v3  ;;  %v976_v22 = vunpack.c.h.bf16 %v1059_v57  ;;  %v851_v23 = vunpack.c.l.bf16 %v1029_v9  ;;  %v1658_v57 = vld [vmem:[%s1779_s3 + $0x1] ss:$0 sm:$0xff] }
  0x63   :  { %v596_v24 = vadd.f32 %v532_v15, %v266_v14  ;;  %v267_v25 = vadd.f32 %v1115_v6, %v198_v16  ;;  %v533_v26 = vadd.f32 %v1127_v12, %v464_v17  ;;  %v199_v27 = vmul.f32 %v848_v18, %v1102_v1  ;;  %v1063_v13 = vld [vmem:[%s1777_s1 + $0xe0] sm:$0xff]  }
  0x64   :  { %722 = vst [vmem:[%s1780_s4 + $0x168] sm:$0xff] %v658_v20  ;;  %v659_v28 = vmax.f32 %v595_v21, 0.0  ;;  %v465_v29 = vmul.f32 %v976_v22, %v1110_v4  ;;  %v200_v30 = vmul.f32 %v851_v23, %v1102_v1  ;;  %v979_v31 = vunpack.c.l.bf16 %v1060_v19 }
  0x65   :  { %v660_v34 = vmax.f32 %v596_v24, 0.0  ;;  %v597_v35 = vadd.f32 %v533_v26, %v267_v25  ;;  %v268_v36 = vadd.f32 %v1115_v6, %v199_v27  ;;  %v852_v37 = vunpack.c.h.bf16 %v1029_v9  ;;  %v1033_v26 = vld [vmem:[%s1776_s0 + $0xe8] sm:$0xff]  }
  0x66   :  { %723 = vst [vmem:[%s1780_s4 + $0x170] sm:$0xff] %v659_v28  ;;  %v534_v38 = vadd.f32 %v1127_v12, %v465_v29  ;;  %v269_v39 = vadd.f32 %v1115_v6, %v200_v30  ;;  %v466_v40 = vmul.f32 %v979_v31, %v1110_v4  ;;  %v980_v41 = vunpack.c.h.bf16 %v1060_v19  ;;  %v1064_v27 = vld [vmem:[%s1777_s1 + $0xe8] sm:$0xff]  }
  0x67   :  { %724 = vst [vmem:[%s1780_s4 + $0x178] sm:$0xff] %v660_v34  ;;  %v661_v42 = vmax.f32 %v597_v35, 0.0  ;;  %v201_v43 = vmul.f32 %v852_v37, %v1102_v1  ;;  %v855_v44 = vunpack.c.l.bf16 %v1030_v32  ;;  %v983_v45 = vunpack.c.l.bf16 %v1061_v33  ;;  %v1642_v1 = vld [vmem:[%s1778_s2 + $0x1] ss:$0 sm:$0xff] }
  0x68   :  { %v598_v46 = vadd.f32 %v534_v38, %v268_v36  ;;  %v535_v47 = vadd.f32 %v1127_v12, %v466_v40  ;;  %v467_v4 = vmul.f32 %v1630_v48, %v980_v41  ;;  %v856_v6 = vunpack.c.h.bf16 %v1030_v32 }
  0x69   :  { %725 = vst [vmem:[%s1780_s4 + $0x180] sm:$0xff] %v661_v42  ;;  %v270_v12 = vadd.f32 %v1642_v1, %v201_v43  ;;  %v202_v51 = vmul.f32 %v1648_v50, %v855_v44  ;;  %v468_v52 = vmul.f32 %v1630_v48, %v983_v45  ;;  %v984_v53 = vunpack.c.h.bf16 %v1061_v33  ;;  %v1034_v44 = vld [vmem:[%s1776_s0 + $0xf0] sm:$0xff]  }
  0x6a   :  { %v662_v55 = vmax.f32 %v598_v46, 0.0  ;;  %v599_v56 = vadd.f32 %v535_v47, %v269_v39  ;;  %v536_v58 = vadd.f32 %v1658_v57, %v467_v4  ;;  %v203_v59 = vmul.f32 %v1648_v50, %v856_v6  ;;  %v1065_v6 = vld [vmem:[%s1777_s1 + $0xf0] sm:$0xff]  }
  0x6b   :  { %v271_v60 = vadd.f32 %v1642_v1, %v202_v51  ;;  %v537_v61 = vadd.f32 %v1658_v57, %v468_v52  ;;  %v469_v62 = vmul.f32 %v1630_v48, %v984_v53  ;;  %v859_v63 = vunpack.c.l.bf16 %v1031_v49 }
  0x6c   :  { %726 = vst [vmem:[%s1780_s4 + $0x188] sm:$0xff] %v662_v55  ;;  %v663_v2 = vmax.f32 %v599_v56, 0.0  ;;  %v600_v3 = vadd.f32 %v536_v58, %v270_v12  ;;  %v272_v5 = vadd.f32 %v1642_v1, %v203_v59  ;;  %v987_v7 = vunpack.c.l.bf16 %v1062_v54  ;;  %v1035_v58 = vld [vmem:[%s1776_s0 + $0xf8] sm:$0xff]  }
  0x6d   :  { %v601_v8 = vadd.f32 %v537_v61, %v271_v60  ;;  %v538_v9 = vadd.f32 %v1658_v57, %v469_v62  ;;  %v204_v10 = vmul.f32 %v1648_v50, %v859_v63  ;;  %v860_v11 = vunpack.c.h.bf16 %v1031_v49  ;;  %v1066_v63 = vld [vmem:[%s1777_s1 + $0xf8] sm:$0xff]  }
  0x6e   :  { %727 = vst [vmem:[%s1780_s4 + $0x190] sm:$0xff] %v663_v2  ;;  %v664_v14 = vmax.f32 %v600_v3, 0.0  ;;  %v470_v15 = vmul.f32 %v1630_v48, %v987_v7  ;;  %v988_v16 = vunpack.c.h.bf16 %v1062_v54  ;;  %v863_v17 = vunpack.c.l.bf16 %v1032_v0 }
  0x6f   :  { %v665_v18 = vmax.f32 %v601_v8, 0.0  ;;  %v602_v19 = vadd.f32 %v538_v9, %v272_v5  ;;  %v273_v20 = vadd.f32 %v1642_v1, %v204_v10  ;;  %v205_v21 = vmul.f32 %v1648_v50, %v860_v11 }
  0x70   :  { %728 = vst [vmem:[%s1780_s4 + $0x198] sm:$0xff] %v664_v14  ;;  %v539_v22 = vadd.f32 %v1658_v57, %v470_v15  ;;  %v471_v23 = vmul.f32 %v1630_v48, %v988_v16  ;;  %v206_v24 = vmul.f32 %v1648_v50, %v863_v17  ;;  %v991_v25 = vunpack.c.l.bf16 %v1063_v13 }
  0x71   :  { %729 = vst [vmem:[%s1780_s4 + $0x1a0] sm:$0xff] %v665_v18  ;;  %v666_v28 = vmax.f32 %v602_v19, 0.0  ;;  %v274_v29 = vadd.f32 %v1642_v1, %v205_v21  ;;  %v864_v30 = vunpack.c.h.bf16 %v1032_v0  ;;  %v992_v31 = vunpack.c.h.bf16 %v1063_v13 }
  0x72   :  { %v603_v32 = vadd.f32 %v539_v22, %v273_v20  ;;  %v540_v33 = vadd.f32 %v1658_v57, %v471_v23  ;;  %v275_v34 = vadd.f32 %v1642_v1, %v206_v24  ;;  %v472_v35 = vmul.f32 %v1630_v48, %v991_v25 }
  0x73   :  { %730 = vst [vmem:[%s1780_s4 + $0x1a8] sm:$0xff] %v666_v28  ;;  %v207_v36 = vmul.f32 %v1648_v50, %v864_v30  ;;  %v473_v37 = vmul.f32 %v1630_v48, %v992_v31  ;;  %v867_v38 = vunpack.c.l.bf16 %v1033_v26  ;;  %v995_v39 = vunpack.c.l.bf16 %v1064_v27 }
  0x74   :  { %v667_v40 = vmax.f32 %v603_v32, 0.0  ;;  %v604_v41 = vadd.f32 %v540_v33, %v274_v29  ;;  %v541_v42 = vadd.f32 %v1658_v57, %v472_v35  ;;  %v868_v43 = vunpack.c.h.bf16 %v1033_v26 }
  0x75   :  { %v276_v45 = vadd.f32 %v1642_v1, %v207_v36  ;;  %v542_v46 = vadd.f32 %v1658_v57, %v473_v37  ;;  %v208_v47 = vmul.f32 %v1648_v50, %v867_v38  ;;  %v474_v4 = vmul.f32 %v1630_v48, %v995_v39 }
  0x76   :  { %731 = vst [vmem:[%s1780_s4 + $0x1b0] sm:$0xff] %v667_v40  ;;  %v668_v49 = vmax.f32 %v604_v41, 0.0  ;;  %v605_v12 = vadd.f32 %v541_v42, %v275_v34  ;;  %v209_v51 = vmul.f32 %v1648_v50, %v868_v43  ;;  %v996_v52 = vunpack.c.h.bf16 %v1064_v27 }
  0x77   :  { %v606_v53 = vadd.f32 %v542_v46, %v276_v45  ;;  %v277_v54 = vadd.f32 %v1642_v1, %v208_v47  ;;  %v543_v55 = vadd.f32 %v1658_v57, %v474_v4  ;;  %v871_v56 = vunpack.c.l.bf16 %v1034_v44 }
  0x78   :  { %732 = vst [vmem:[%s1780_s4 + $0x1b8] sm:$0xff] %v668_v49  ;;  %v669_v59 = vmax.f32 %v605_v12, 0.0  ;;  %v278_v60 = vadd.f32 %v1642_v1, %v209_v51  ;;  %v475_v61 = vmul.f32 %v1630_v48, %v996_v52  ;;  %v999_v62 = vunpack.c.l.bf16 %v1065_v6 }
  0x79   :  { %v670_v0 = vmax.f32 %v606_v53, 0.0  ;;  %v607_v2 = vadd.f32 %v543_v55, %v277_v54  ;;  %v210_v3 = vmul.f32 %v1648_v50, %v871_v56  ;;  %v872_v5 = vunpack.c.h.bf16 %v1034_v44 }
  0x7a   :  { %733 = vst [vmem:[%s1780_s4 + $0x1c0] sm:$0xff] %v669_v59  ;;  %v544_v7 = vadd.f32 %v1658_v57, %v475_v61  ;;  %v476_v8 = vmul.f32 %v1630_v48, %v999_v62  ;;  %v1000_v9 = vunpack.c.h.bf16 %v1065_v6  ;;  %v875_v10 = vunpack.c.l.bf16 %v1035_v58 }
  0x7b   :  { %734 = vst [vmem:[%s1780_s4 + $0x1c8] sm:$0xff] %v670_v0  ;;  %v671_v11 = vmax.f32 %v607_v2, 0.0  ;;  %v279_v13 = vadd.f32 %v1642_v1, %v210_v3  ;;  %v211_v14 = vmul.f32 %v1648_v50, %v872_v5  ;;  %v1003_v15 = vunpack.c.l.bf16 %v1066_v63 }
  0x7c   :  { %v608_v16 = vadd.f32 %v544_v7, %v278_v60  ;;  %v545_v17 = vadd.f32 %v1658_v57, %v476_v8  ;;  %v477_v18 = vmul.f32 %v1630_v48, %v1000_v9  ;;  %v212_v19 = vmul.f32 %v1648_v50, %v875_v10 }
  0x7d   :  { %735 = vst [vmem:[%s1780_s4 + $0x1d0] sm:$0xff] %v671_v11  ;;  %v280_v20 = vadd.f32 %v1642_v1, %v211_v14  ;;  %v478_v21 = vmul.f32 %v1630_v48, %v1003_v15  ;;  %v876_v22 = vunpack.c.h.bf16 %v1035_v58  ;;  %v1004_v23 = vunpack.c.h.bf16 %v1066_v63 }
  0x7e   :  { %v672_v24 = vmax.f32 %v608_v16, 0.0  ;;  %v609_v25 = vadd.f32 %v545_v17, %v279_v13  ;;  %v546_v26 = vadd.f32 %v1658_v57, %v477_v18  ;;  %v281_v27 = vadd.f32 %v1642_v1, %v212_v19 }
  0x7f   :  { %v547_v28 = vadd.f32 %v1658_v57, %v478_v21  ;;  %v213_v29 = vmul.f32 %v1648_v50, %v876_v22  ;;  %v479_v30 = vmul.f32 %v1630_v48, %v1004_v23 }
  0x80   :  { %736 = vst [vmem:[%s1780_s4 + $0x1d8] sm:$0xff] %v672_v24  ;;  %v673_v31 = vmax.f32 %v609_v25, 0.0  ;;  %v610_v32 = vadd.f32 %v546_v26, %v280_v20 }
  0x81   :  { %v611_v33 = vadd.f32 %v547_v28, %v281_v27  ;;  %v282_v34 = vadd.f32 %v1642_v1, %v213_v29  ;;  %v548_v35 = vadd.f32 %v1658_v57, %v479_v30 }
  0x82   :  { %737 = vst [vmem:[%s1780_s4 + $0x1e0] sm:$0xff] %v673_v31  ;;  %v674_v36 = vmax.f32 %v610_v32, 0.0 }
  0x83   :  { %v675_v37 = vmax.f32 %v611_v33, 0.0  ;;  %v612_v50 = vadd.f32 %v548_v35, %v282_v34 }
  0x84   :  { %738 = vst [vmem:[%s1780_s4 + $0x1e8] sm:$0xff] %v674_v36 }
  0x85   :  { %739 = vst [vmem:[%s1780_s4 + $0x1f0] sm:$0xff] %v675_v37  ;;  %v676_v48 = vmax.f32 %v612_v50, 0.0 }
  0x87   :  { %740 = vst [vmem:[%s1780_s4 + $0x1f8] sm:$0xff] %v676_v48 }

// kernel: basic_block_forward.6
= control target key start
LH: loop header
LB: loop body
LE: loop exit
PB: predicated region body
PF: predicated region fallthrough
CT: control target
= control target key end

     0   :  { %s3961_s2 = inlined_call_operand.vmem [shape: bf16[128,128], index: 2, kind: input, shape index: {}]   ;;  %s3962_s3 = inlined_call_operand.vmem [shape: bf16[128,128], index: 3, kind: input, shape index: {}]   ;;  %s3963_s0 = inlined_call_operand.vmem [shape: bf16[512,128], index: 0, kind: input, shape index: {}]   ;;  %s3964_s1 = inlined_call_operand.vmem [shape: bf16[512,128], index: 1, kind: input, shape index: {}]   ;;  %s3965_s4 = inlined_call_operand.vmem [shape: bf16[512,128], index: 4, kind: output, shape index: {0}]   ;;  %s3966_s5 = inlined_call_operand.vmem [shape: bf16[512,128], index: 5, kind: output, shape index: {1}]   ;;  %s3967_s6 = inlined_call_operand.vmem [shape: f32[16,128], index: 6, kind: output, shape index: {2}]  }
   0x1   :  { %v3407_v0 = vld [vmem:[%s3961_s2] sm:$0xff]   ;;  %v3409_v2 = vld [vmem:[%s3961_s2 + $0x8] sm:$0xff]   ;;  %v3411_v4 = vld [vmem:[%s3961_s2 + $0x10] sm:$0xff]  }
   0x2   :  { %v3408_v1 = vld [vmem:[%s3962_s3] sm:$0xff]   ;;  %3246 = vmatprep.subr.bf16.mxu0 %v3407_v0  ;;  %v3410_v3 = vld [vmem:[%s3962_s3 + $0x8] sm:$0xff]   ;;  %v3412_v5 = vld [vmem:[%s3962_s3 + $0x10] sm:$0xff]  }
   0x3   :  { %3326 = vmatprep.subr.bf16.mxu1 %v3408_v1  ;;  %3247 = vmatpush3.bf16.msra.mxu0 %v3407_v0  ;;  %v3413_v6 = vld [vmem:[%s3961_s2 + $0x18] sm:$0xff]   ;;  %v3415_v8 = vld [vmem:[%s3961_s2 + $0x20] sm:$0xff]   ;;  %v3417_v10 = vld [vmem:[%s3961_s2 + $0x28] sm:$0xff]  }
   0x4   :  { %3327 = vmatpush3.bf16.msra.mxu1 %v3408_v1  ;;  %3248 = vmatprep.subr.bf16.mxu0 %v3409_v2  ;;  %v3414_v7 = vld [vmem:[%s3962_s3 + $0x18] sm:$0xff]   ;;  %v3416_v9 = vld [vmem:[%s3962_s3 + $0x20] sm:$0xff]   ;;  %v3418_v11 = vld [vmem:[%s3962_s3 + $0x28] sm:$0xff]  }
   0x5   :  { %3328 = vmatprep.subr.bf16.mxu1 %v3410_v3  ;;  %v3423_v12 = vld [vmem:[%s3963_s0] sm:$0xff]   ;;  %v3419_v14 = vld [vmem:[%s3961_s2 + $0x30] sm:$0xff]   ;;  %v3421_v16 = vld [vmem:[%s3961_s2 + $0x38] sm:$0xff]  }
   0x6   :  { %v3424_v13 = vld [vmem:[%s3964_s1] sm:$0xff]   ;;  %3262 = vmatprep.mubr.bf16.mxu0 %v3423_v12  ;;  %v3420_v15 = vld [vmem:[%s3962_s3 + $0x30] sm:$0xff]   ;;  %v3422_v17 = vld [vmem:[%s3962_s3 + $0x38] sm:$0xff]  }
   0x7   :  { %3249 = vmatpush3.bf16.msra.mxu0 %v3409_v2  ;;  %3342 = vmatprep.mubr.bf16.mxu1 %v3424_v13  ;;  %v3425_v18 = vld [vmem:[%s3963_s0 + $0x8] sm:$0xff]   ;;  %v3427_v20 = vld [vmem:[%s3963_s0 + $0x10] sm:$0xff]   ;;  %v3429_v22 = vld [vmem:[%s3963_s0 + $0x18] sm:$0xff]  }
   0x8   :  { %3329 = vmatpush3.bf16.msra.mxu1 %v3410_v3  ;;  %3250 = vmatprep.subr.bf16.mxu0 %v3411_v4  ;;  %v3426_v19 = vld [vmem:[%s3964_s1 + $0x8] sm:$0xff]   ;;  %v3428_v21 = vld [vmem:[%s3964_s1 + $0x10] sm:$0xff]   ;;  %v3430_v23 = vld [vmem:[%s3964_s1 + $0x18] sm:$0xff]  }
   0x9   :  { %3330 = vmatprep.subr.bf16.mxu1 %v3412_v5  ;;  %v3431_v24 = vld [vmem:[%s3963_s0 + $0x20] sm:$0xff]   ;;  %v3433_v26 = vld [vmem:[%s3963_s0 + $0x28] sm:$0xff]   ;;  %v3435_v28 = vld [vmem:[%s3963_s0 + $0x30] sm:$0xff]  }
   0xa   :  { %v3432_v25 = vld [vmem:[%s3964_s1 + $0x20] sm:$0xff]   ;;  %v3434_v27 = vld [vmem:[%s3964_s1 + $0x28] sm:$0xff]   ;;  %v3436_v29 = vld [vmem:[%s3964_s1 + $0x30] sm:$0xff]  }
   0xb   :  { %3251 = vmatpush3.bf16.msra.mxu0 %v3411_v4  ;;  %v3437_v30 = vld [vmem:[%s3963_s0 + $0x38] sm:$0xff]   ;;  %v3439_v32 = vld [vmem:[%s3963_s0 + $0x40] sm:$0xff]   ;;  %v3441_v34 = vld [vmem:[%s3963_s0 + $0x48] sm:$0xff]  }
   0xc   :  { %3331 = vmatpush3.bf16.msra.mxu1 %v3412_v5  ;;  %3252 = vmatprep.subr.bf16.mxu0 %v3413_v6  ;;  %v3438_v31 = vld [vmem:[%s3964_s1 + $0x38] sm:$0xff]   ;;  %v3440_v33 = vld [vmem:[%s3964_s1 + $0x40] sm:$0xff]   ;;  %v3442_v35 = vld [vmem:[%s3964_s1 + $0x48] sm:$0xff]  }
   0xd   :  { %3332 = vmatprep.subr.bf16.mxu1 %v3414_v7  ;;  %v3443_v36 = vld [vmem:[%s3963_s0 + $0x50] sm:$0xff]   ;;  %v3445_v38 = vld [vmem:[%s3963_s0 + $0x58] sm:$0xff]   ;;  %v3447_v40 = vld [vmem:[%s3963_s0 + $0x60] sm:$0xff]  }
   0xe   :  { %v3444_v37 = vld [vmem:[%s3964_s1 + $0x50] sm:$0xff]   ;;  %v3446_v39 = vld [vmem:[%s3964_s1 + $0x58] sm:$0xff]   ;;  %v3448_v41 = vld [vmem:[%s3964_s1 + $0x60] sm:$0xff]  }
   0xf   :  { %3253 = vmatpush3.bf16.msra.mxu0 %v3413_v6  ;;  %v3449_v42 = vld [vmem:[%s3963_s0 + $0x68] sm:$0xff]   ;;  %v3451_v44 = vld [vmem:[%s3963_s0 + $0x70] sm:$0xff]   ;;  %v3453_v46 = vld [vmem:[%s3963_s0 + $0x78] sm:$0xff]  }
  0x10   :  { %3333 = vmatpush3.bf16.msra.mxu1 %v3414_v7  ;;  %3254 = vmatprep.subr.bf16.mxu0 %v3415_v8  ;;  %v3450_v43 = vld [vmem:[%s3964_s1 + $0x68] sm:$0xff]   ;;  %v3452_v45 = vld [vmem:[%s3964_s1 + $0x70] sm:$0xff]   ;;  %v3454_v47 = vld [vmem:[%s3964_s1 + $0x78] sm:$0xff]  }
  0x11   :  { %3334 = vmatprep.subr.bf16.mxu1 %v3416_v9  ;;  %v3455_v48 = vld [vmem:[%s3963_s0 + $0x80] sm:$0xff]   ;;  %v3457_v50 = vld [vmem:[%s3963_s0 + $0x88] sm:$0xff]   ;;  %v3459_v52 = vld [vmem:[%s3963_s0 + $0x90] sm:$0xff]  }
  0x12   :  { %v3456_v49 = vld [vmem:[%s3964_s1 + $0x80] sm:$0xff]   ;;  %v3458_v51 = vld [vmem:[%s3964_s1 + $0x88] sm:$0xff]   ;;  %v3460_v53 = vld [vmem:[%s3964_s1 + $0x90] sm:$0xff]  }
  0x13   :  { %3255 = vmatpush3.bf16.msra.mxu0 %v3415_v8  ;;  %v3461_v54 = vld [vmem:[%s3963_s0 + $0x98] sm:$0xff]   ;;  %v3463_v56 = vld [vmem:[%s3963_s0 + $0xa0] sm:$0xff]   ;;  %v3465_v58 = vld [vmem:[%s3963_s0 + $0xa8] sm:$0xff]  }
  0x14   :  { %3335 = vmatpush3.bf16.msra.mxu1 %v3416_v9  ;;  %3256 = vmatprep.subr.bf16.mxu0 %v3417_v10  ;;  %v3462_v55 = vld [vmem:[%s3964_s1 + $0x98] sm:$0xff]   ;;  %v3464_v57 = vld [vmem:[%s3964_s1 + $0xa0] sm:$0xff]   ;;  %v3466_v59 = vld [vmem:[%s3964_s1 + $0xa8] sm:$0xff]  }
  0x15   :  { %3336 = vmatprep.subr.bf16.mxu1 %v3418_v11  ;;  %v3467_v60 = vld [vmem:[%s3963_s0 + $0xb0] sm:$0xff]   ;;  %v3469_v62 = vld [vmem:[%s3963_s0 + $0xb8] sm:$0xff]   ;;  %v3471_v0 = vld [vmem:[%s3963_s0 + $0xc0] sm:$0xff]  }
  0x16   :  { %v3468_v61 = vld [vmem:[%s3964_s1 + $0xb0] sm:$0xff]   ;;  %v3470_v63 = vld [vmem:[%s3964_s1 + $0xb8] sm:$0xff]   ;;  %v3472_v1 = vld [vmem:[%s3964_s1 + $0xc0] sm:$0xff]  }
  0x17   :  { %3257 = vmatpush3.bf16.msra.mxu0 %v3417_v10  ;;  %v3473_v2 = vld [vmem:[%s3963_s0 + $0xc8] sm:$0xff]   ;;  %v3475_v4 = vld [vmem:[%s3963_s0 + $0xd0] sm:$0xff]   ;;  %v3477_v6 = vld [vmem:[%s3963_s0 + $0xd8] sm:$0xff]  }
  0x18   :  { %3337 = vmatpush3.bf16.msra.mxu1 %v3418_v11  ;;  %3258 = vmatprep.subr.bf16.mxu0 %v3419_v14  ;;  %v3474_v3 = vld [vmem:[%s3964_s1 + $0xc8] sm:$0xff]   ;;  %v3476_v5 = vld [vmem:[%s3964_s1 + $0xd0] sm:$0xff]   ;;  %v3478_v7 = vld [vmem:[%s3964_s1 + $0xd8] sm:$0xff]  }
  0x19   :  { %3338 = vmatprep.subr.bf16.mxu1 %v3420_v15  ;;  %v3479_v8 = vld [vmem:[%s3963_s0 + $0xe0] sm:$0xff]   ;;  %v3481_v10 = vld [vmem:[%s3963_s0 + $0xe8] sm:$0xff]   ;;  %v3483_v12 = vld [vmem:[%s3963_s0 + $0xf0] sm:$0xff]  }
  0x1a   :  { %v3480_v9 = vld [vmem:[%s3964_s1 + $0xe0] sm:$0xff]   ;;  %v3482_v11 = vld [vmem:[%s3964_s1 + $0xe8] sm:$0xff]   ;;  %v3484_v13 = vld [vmem:[%s3964_s1 + $0xf0] sm:$0xff]  }
  0x1b   :  { %3259 = vmatpush3.bf16.msra.mxu0 %v3419_v14  ;;  %v3485_v14 = vld [vmem:[%s3963_s0 + $0xf8] sm:$0xff]  }
  0x1c   :  { %3339 = vmatpush3.bf16.msra.mxu1 %v3420_v15  ;;  %3260 = vmatprep.subr.bf16.mxu0 %v3421_v16  ;;  %v3486_v15 = vld [vmem:[%s3964_s1 + $0xf8] sm:$0xff]  }
  0x1d   :  { %3340 = vmatprep.subr.bf16.mxu1 %v3422_v17 }
  0x1f   :  { %3261 = vmatpush3.bf16.msra.mxu0 %v3421_v16 }
  0x20   :  { %3341 = vmatpush3.bf16.msra.mxu1 %v3422_v17  ;;  %v3487_v17 = vmov 0.0  }
  0x21   :  { %1955 = vst [vmem:[#allocation2] sm:$0xff] %v3487_v17  ;;  %1956 = vst [vmem:[#allocation2 + $0x8] sm:$0xff] %v3487_v17 }
  0x22   :  { %3263 = vmatmul.mubr.bf16.vlgmr.msra.gmra.mrb[0].mxu0 %v3425_v18 }
  0x23   :  { %3343 = vmatmul.mubr.bf16.vlgmr.msra.gmra.mrb[0].mxu1 %v3426_v19  ;;  %3266 = vmatprep.mubr.bf16.mxu0 %v3427_v20 }
  0x24   :  { %3346 = vmatprep.mubr.bf16.mxu1 %v3428_v21 }
  0x2a   :  { %3267 = vmatmul.mubr.bf16.gmra.mrb[4].mxu0 %v3429_v22 }
  0x2b   :  { %3347 = vmatmul.mubr.bf16.gmra.mrb[4].mxu1 %v3430_v23  ;;  %3270 = vmatprep.mubr.bf16.mxu0 %v3431_v24 }
  0x2c   :  { %3350 = vmatprep.mubr.bf16.mxu1 %v3432_v25 }
  0x32   :  { %3271 = vmatmul.mubr.bf16.gmra.mrb[8].mxu0 %v3433_v26 }
  0x33   :  { %3351 = vmatmul.mubr.bf16.gmra.mrb[8].mxu1 %v3434_v27  ;;  %3274 = vmatprep.mubr.bf16.mxu0 %v3435_v28 }
  0x34   :  { %3354 = vmatprep.mubr.bf16.mxu1 %v3436_v29 }
  0x3a   :  { %3275 = vmatmul.mubr.bf16.gmra.mrb[12].mxu0 %v3437_v30 }
  0x3b   :  { %3355 = vmatmul.mubr.bf16.gmra.mrb[12].mxu1 %v3438_v31  ;;  %3278 = vmatprep.mubr.bf16.mxu0 %v3439_v32 }
  0x3c   :  { %3358 = vmatprep.mubr.bf16.mxu1 %v3440_v33 }
  0x42   :  { %3279 = vmatmul.mubr.bf16.gmra.mrb[16].mxu0 %v3441_v34 }
  0x43   :  { %3359 = vmatmul.mubr.bf16.gmra.mrb[16].mxu1 %v3442_v35  ;;  %3282 = vmatprep.mubr.bf16.mxu0 %v3443_v36 }
  0x44   :  { %3362 = vmatprep.mubr.bf16.mxu1 %v3444_v37 }
  0x4a   :  { %3283 = vmatmul.mubr.bf16.gmra.mrb[20].mxu0 %v3445_v38 }
  0x4b   :  { %3363 = vmatmul.mubr.bf16.gmra.mrb[20].mxu1 %v3446_v39  ;;  %3286 = vmatprep.mubr.bf16.mxu0 %v3447_v40 }
  0x4c   :  { %3366 = vmatprep.mubr.bf16.mxu1 %v3448_v41 }
  0x52   :  { %3287 = vmatmul.mubr.bf16.gmra.mrb[24].mxu0 %v3449_v42 }
  0x53   :  { %3367 = vmatmul.mubr.bf16.gmra.mrb[24].mxu1 %v3450_v43  ;;  %3290 = vmatprep.mubr.bf16.mxu0 %v3451_v44 }
  0x54   :  { %3370 = vmatprep.mubr.bf16.mxu1 %v3452_v45 }
  0x5a   :  { %3291 = vmatmul.mubr.bf16.gmra.mrb[28].mxu0 %v3453_v46 }
  0x5b   :  { %3371 = vmatmul.mubr.bf16.gmra.mrb[28].mxu1 %v3454_v47  ;;  %3294 = vmatprep.mubr.bf16.mxu0 %v3455_v48 }
  0x5c   :  { %3374 = vmatprep.mubr.bf16.mxu1 %v3456_v49 }
  0x62   :  { %3295 = vmatmul.mubr.bf16.gmra.mrb[32].mxu0 %v3457_v50 }
  0x63   :  { %3375 = vmatmul.mubr.bf16.gmra.mrb[32].mxu1 %v3458_v51  ;;  %3298 = vmatprep.mubr.bf16.mxu0 %v3459_v52 }
  0x64   :  { %3378 = vmatprep.mubr.bf16.mxu1 %v3460_v53 }
  0x6a   :  { %3299 = vmatmul.mubr.bf16.gmra.mrb[36].mxu0 %v3461_v54 }
  0x6b   :  { %3379 = vmatmul.mubr.bf16.gmra.mrb[36].mxu1 %v3462_v55  ;;  %3302 = vmatprep.mubr.bf16.mxu0 %v3463_v56 }
  0x6c   :  { %3382 = vmatprep.mubr.bf16.mxu1 %v3464_v57 }
  0x72   :  { %3303 = vmatmul.mubr.bf16.gmra.mrb[40].mxu0 %v3465_v58 }
  0x73   :  { %3383 = vmatmul.mubr.bf16.gmra.mrb[40].mxu1 %v3466_v59  ;;  %3306 = vmatprep.mubr.bf16.mxu0 %v3467_v60 }
  0x74   :  { %3386 = vmatprep.mubr.bf16.mxu1 %v3468_v61 }
  0x7a   :  { %3307 = vmatmul.mubr.bf16.gmra.mrb[44].mxu0 %v3469_v62 }
  0x7b   :  { %3387 = vmatmul.mubr.bf16.gmra.mrb[44].mxu1 %v3470_v63  ;;  %3310 = vmatprep.mubr.bf16.mxu0 %v3471_v0 }
  0x7c   :  { %3390 = vmatprep.mubr.bf16.mxu1 %v3472_v1 }
  0x82   :  { %3311 = vmatmul.mubr.bf16.gmra.mrb[48].mxu0 %v3473_v2 }
  0x83   :  { %3391 = vmatmul.mubr.bf16.gmra.mrb[48].mxu1 %v3474_v3  ;;  %3314 = vmatprep.mubr.bf16.mxu0 %v3475_v4 }
  0x84   :  { %3394 = vmatprep.mubr.bf16.mxu1 %v3476_v5 }
  0x8a   :  { %3315 = vmatmul.mubr.bf16.gmra.mrb[52].mxu0 %v3477_v6 }
  0x8b   :  { %3395 = vmatmul.mubr.bf16.gmra.mrb[52].mxu1 %v3478_v7  ;;  %3318 = vmatprep.mubr.bf16.mxu0 %v3479_v8 }
  0x8c   :  { %3398 = vmatprep.mubr.bf16.mxu1 %v3480_v9 }
  0x92   :  { %3319 = vmatmul.mubr.bf16.gmra.mrb[56].mxu0 %v3481_v10 }
  0x93   :  { %3399 = vmatmul.mubr.bf16.gmra.mrb[56].mxu1 %v3482_v11  ;;  %3322 = vmatprep.mubr.bf16.mxu0 %v3483_v12 }
  0x94   :  { %3402 = vmatprep.mubr.bf16.mxu1 %v3484_v13 }
  0x9a   :  { %3323 = vmatmul.mubr.bf16.gmra.mrb[60].mxu0 %v3485_v14 }
  0x9b   :  { %3403 = vmatmul.mubr.bf16.gmra.mrb[60].mxu1 %v3486_v15 }
  0xf5   :  { %v3264_v16 = vpop.f32.mrb[0].mxu0 }
  0xf6   :  { %v3344_v18 = vpop.f32.mrb[0].mxu1  ;;  %v447_v19 = vpop.f32.mrb[1].mxu0  ;;  %v2032_v35 = vmul.f32 %v3264_v16, %v3264_v16 }
  0xf7   :  { %v1056_v20 = vpop.f32.mrb[1].mxu1  ;;  %v3265_v21 = vpop.f32.mrb[2].mxu0  ;;  %v2030_v22 = vmul.f32 %v447_v19, %v447_v19  ;;  %v2240_v37 = vmul.f32 %v3344_v18, %v3344_v18 }
  0xf8   :  { %v2792_v23 = vpack.c.bf16 %v3265_v21, %v3264_v16  ;;  %v3345_v24 = vpop.f32.mrb[2].mxu1  ;;  %v450_v25 = vpop.f32.mrb[3].mxu0  ;;  %v2238_v26 = vmul.f32 %v1056_v20, %v1056_v20  ;;  %v2033_v41 = vmul.f32 %v3265_v21, %v3265_v21 }
  0xf9   :  { %v2952_v27 = vpack.c.bf16 %v3345_v24, %v3344_v18  ;;  %v2787_v28 = vpack.c.bf16 %v450_v25, %v447_v19  ;;  %v1958_v29 = vadd.f32 %v450_v25, %v447_v19  ;;  %v1059_v30 = vpop.f32.mrb[3].mxu1  ;;  %v2031_v31 = vmul.f32 %v450_v25, %v450_v25 }
  0xfa   :  { %3104 = vst [vmem:[%s3965_s4 + $0x8] sm:$0xff] %v2792_v23   ;;  %v2947_v32 = vpack.c.bf16 %v1059_v30, %v1056_v20  ;;  %v2166_v33 = vadd.f32 %v1059_v30, %v1056_v20  ;;  %v2239_v34 = vmul.f32 %v1059_v30, %v1059_v30  ;;  %v2241_v44 = vmul.f32 %v3345_v24, %v3345_v24 }
  0xfb   :  { %3135 = vst [vmem:[%s3966_s5 + $0x8] sm:$0xff] %v2952_v27   ;;  %2788 = vst [vmem:[%s3965_s4] sm:$0xff] %v2787_v28   ;;  %v1959_v36 = vadd.f32 %v3264_v16, %v1958_v29  ;;  %v2094_v38 = vadd.f32 %v2031_v31, %v2030_v22 }
  0xfc   :  { %2948 = vst [vmem:[%s3966_s5] sm:$0xff] %v2947_v32   ;;  %v2167_v39 = vadd.f32 %v3344_v18, %v2166_v33  ;;  %v2302_v40 = vadd.f32 %v2239_v34, %v2238_v26 }
  0xfd   :  { %v3268_v42 = vpop.f32.mrb[4].mxu0  ;;  %v1960_v43 = vadd.f32 %v3265_v21, %v1959_v36  ;;  %v2095_v45 = vadd.f32 %v2094_v38, %v2032_v35 }
  0xfe   :  { %v2303_v46 = vadd.f32 %v2302_v40, %v2240_v37  ;;  %v3348_v47 = vpop.f32.mrb[4].mxu1  ;;  %v463_v48 = vpop.f32.mrb[5].mxu0  ;;  %v2168_v49 = vadd.f32 %v3345_v24, %v2167_v39  ;;  %v2036_v7 = vmul.f32 %v3268_v42, %v3268_v42 }
  0xff   :  { %v1961_v50 = vadd.f32 %v1960_v43, %v463_v48  ;;  %v2034_v51 = vmul.f32 %v463_v48, %v463_v48  ;;  %v1072_v52 = vpop.f32.mrb[5].mxu1  ;;  %v3269_v53 = vpop.f32.mrb[6].mxu0  ;;  %v2096_v54 = vadd.f32 %v2095_v45, %v2033_v41  ;;  %v2244_v9 = vmul.f32 %v3348_v47, %v3348_v47 }
 0x100   :  { %v2169_v55 = vadd.f32 %v2168_v49, %v1072_v52  ;;  %v2242_v56 = vmul.f32 %v1072_v52, %v1072_v52  ;;  %v2304_v57 = vadd.f32 %v2303_v46, %v2241_v44  ;;  %v3349_v58 = vpop.f32.mrb[6].mxu1  ;;  %v466_v59 = vpop.f32.mrb[7].mxu0  ;;  %v2802_v60 = vpack.c.bf16 %v3269_v53, %v3268_v42 }
 0x101   :  { %v2962_v61 = vpack.c.bf16 %v3349_v58, %v3348_v47  ;;  %v1075_v62 = vpop.f32.mrb[7].mxu1  ;;  %v2097_v63 = vadd.f32 %v2096_v54, %v2034_v51  ;;  %v2797_v1 = vpack.c.bf16 %v466_v59, %v463_v48  ;;  %v1962_v2 = vadd.f32 %v1961_v50, %v466_v59 }
 0x102   :  { %v2305_v0 = vadd.f32 %v2304_v57, %v2242_v56  ;;  %3106 = vst [vmem:[%s3965_s4 + $0x18] sm:$0xff] %v2802_v60   ;;  %v2035_v3 = vmul.f32 %v466_v59, %v466_v59  ;;  %v2957_v4 = vpack.c.bf16 %v1075_v62, %v1072_v52  ;;  %v2170_v5 = vadd.f32 %v2169_v55, %v1075_v62 }
 0x103   :  { %3137 = vst [vmem:[%s3966_s5 + $0x18] sm:$0xff] %v2962_v61   ;;  %v2243_v6 = vmul.f32 %v1075_v62, %v1075_v62  ;;  %3105 = vst [vmem:[%s3965_s4 + $0x10] sm:$0xff] %v2797_v1   ;;  %v1963_v8 = vadd.f32 %v3268_v42, %v1962_v2  ;;  %v2037_v14 = vmul.f32 %v3269_v53, %v3269_v53 }
 0x104   :  { %v2098_v10 = vadd.f32 %v2097_v63, %v2035_v3  ;;  %3136 = vst [vmem:[%s3966_s5 + $0x10] sm:$0xff] %v2957_v4   ;;  %v2171_v11 = vadd.f32 %v3348_v47, %v2170_v5  ;;  %v2245_v18 = vmul.f32 %v3349_v58, %v3349_v58 }
 0x105   :  { %v2306_v12 = vadd.f32 %v2305_v0, %v2243_v6  ;;  %v3272_v13 = vpop.f32.mrb[8].mxu0  ;;  %v1964_v17 = vadd.f32 %v3269_v53, %v1963_v8 }
 0x106   :  { %v3352_v15 = vpop.f32.mrb[8].mxu1  ;;  %v479_v16 = vpop.f32.mrb[9].mxu0  ;;  %v2099_v19 = vadd.f32 %v2098_v10, %v2036_v7  ;;  %v2172_v25 = vadd.f32 %v3349_v58, %v2171_v11  ;;  %v2040_v44 = vmul.f32 %v3272_v13, %v3272_v13 }
 0x107   :  { %v2307_v20 = vadd.f32 %v2306_v12, %v2244_v9  ;;  %v2038_v21 = vmul.f32 %v479_v16, %v479_v16  ;;  %v1088_v22 = vpop.f32.mrb[9].mxu1  ;;  %v3273_v23 = vpop.f32.mrb[10].mxu0  ;;  %v1965_v24 = vadd.f32 %v1964_v17, %v479_v16  ;;  %v2248_v47 = vmul.f32 %v3352_v15, %v3352_v15 }
 0x108   :  { %v2246_v26 = vmul.f32 %v1088_v22, %v1088_v22  ;;  %v2812_v27 = vpack.c.bf16 %v3273_v23, %v3272_v13  ;;  %v3353_v28 = vpop.f32.mrb[10].mxu1  ;;  %v482_v29 = vpop.f32.mrb[11].mxu0  ;;  %v2100_v30 = vadd.f32 %v2099_v19, %v2037_v14  ;;  %v2173_v34 = vadd.f32 %v2172_v25, %v1088_v22 }
 0x109   :  { %v2308_v31 = vadd.f32 %v2307_v20, %v2245_v18  ;;  %v2972_v32 = vpack.c.bf16 %v3353_v28, %v3352_v15  ;;  %v1091_v33 = vpop.f32.mrb[11].mxu1  ;;  %v2807_v35 = vpack.c.bf16 %v482_v29, %v479_v16  ;;  %v1966_v36 = vadd.f32 %v1965_v24, %v482_v29 }
 0x10a   :  { %3108 = vst [vmem:[%s3965_s4 + $0x28] sm:$0xff] %v2812_v27   ;;  %v2101_v37 = vadd.f32 %v2100_v30, %v2038_v21  ;;  %v2039_v39 = vmul.f32 %v482_v29, %v482_v29  ;;  %v2967_v40 = vpack.c.bf16 %v1091_v33, %v1088_v22  ;;  %v2174_v42 = vadd.f32 %v2173_v34, %v1091_v33 }
 0x10b   :  { %v2309_v38 = vadd.f32 %v2308_v31, %v2246_v26  ;;  %3139 = vst [vmem:[%s3966_s5 + $0x28] sm:$0xff] %v2972_v32   ;;  %3107 = vst [vmem:[%s3965_s4 + $0x20] sm:$0xff] %v2807_v35   ;;  %v1967_v41 = vadd.f32 %v3272_v13, %v1966_v36  ;;  %v2247_v43 = vmul.f32 %v1091_v33, %v1091_v33 }
 0x10c   :  { %v2102_v45 = vadd.f32 %v2101_v37, %v2039_v39  ;;  %3138 = vst [vmem:[%s3966_s5 + $0x20] sm:$0xff] %v2967_v40   ;;  %v2175_v48 = vadd.f32 %v3352_v15, %v2174_v42  ;;  %v2041_v53 = vmul.f32 %v3273_v23, %v3273_v23  ;;  %v2249_v54 = vmul.f32 %v3353_v28, %v3353_v28 }
 0x10d   :  { %v3276_v46 = vpop.f32.mrb[12].mxu0  ;;  %v2310_v49 = vadd.f32 %v2309_v38, %v2247_v43  ;;  %v1968_v52 = vadd.f32 %v3273_v23, %v1967_v41 }
 0x10e   :  { %v3356_v50 = vpop.f32.mrb[12].mxu1  ;;  %v495_v51 = vpop.f32.mrb[13].mxu0  ;;  %v2103_v55 = vadd.f32 %v2102_v45, %v2040_v44  ;;  %v2176_v61 = vadd.f32 %v3353_v28, %v2175_v48  ;;  %v2044_v15 = vmul.f32 %v3276_v46, %v3276_v46 }
 0x10f   :  { %v2042_v56 = vmul.f32 %v495_v51, %v495_v51  ;;  %v1104_v57 = vpop.f32.mrb[13].mxu1  ;;  %v3277_v58 = vpop.f32.mrb[14].mxu0  ;;  %v2311_v59 = vadd.f32 %v2310_v49, %v2248_v47  ;;  %v1969_v60 = vadd.f32 %v1968_v52, %v495_v51  ;;  %v2252_v19 = vmul.f32 %v3356_v50, %v3356_v50 }
 0x110   :  { %v2250_v62 = vmul.f32 %v1104_v57, %v1104_v57  ;;  %v3357_v63 = vpop.f32.mrb[14].mxu1  ;;  %v498_v0 = vpop.f32.mrb[15].mxu0  ;;  %v2104_v1 = vadd.f32 %v2103_v55, %v2041_v53  ;;  %v2822_v2 = vpack.c.bf16 %v3277_v58, %v3276_v46  ;;  %v2177_v5 = vadd.f32 %v2176_v61, %v1104_v57 }
 0x111   :  { %v2982_v3 = vpack.c.bf16 %v3357_v63, %v3356_v50  ;;  %v1107_v4 = vpop.f32.mrb[15].mxu1  ;;  %v2312_v6 = vadd.f32 %v2311_v59, %v2249_v54  ;;  %v2817_v7 = vpack.c.bf16 %v498_v0, %v495_v51  ;;  %v1970_v9 = vadd.f32 %v1969_v60, %v498_v0 }
 0x112   :  { %v2105_v8 = vadd.f32 %v2104_v1, %v2042_v56  ;;  %3110 = vst [vmem:[%s3965_s4 + $0x38] sm:$0xff] %v2822_v2   ;;  %v2043_v10 = vmul.f32 %v498_v0, %v498_v0  ;;  %v2977_v11 = vpack.c.bf16 %v1107_v4, %v1104_v57  ;;  %v2178_v13 = vadd.f32 %v2177_v5, %v1107_v4 }
 0x113   :  { %3141 = vst [vmem:[%s3966_s5 + $0x38] sm:$0xff] %v2982_v3   ;;  %v2313_v12 = vadd.f32 %v2312_v6, %v2250_v62  ;;  %3109 = vst [vmem:[%s3965_s4 + $0x30] sm:$0xff] %v2817_v7   ;;  %v2251_v14 = vmul.f32 %v1107_v4, %v1107_v4  ;;  %v1971_v16 = vadd.f32 %v3276_v46, %v1970_v9 }
 0x114   :  { %v2106_v17 = vadd.f32 %v2105_v8, %v2043_v10  ;;  %3140 = vst [vmem:[%s3966_s5 + $0x30] sm:$0xff] %v2977_v11   ;;  %v2045_v20 = vmul.f32 %v3277_v58, %v3277_v58  ;;  %v2179_v21 = vadd.f32 %v3356_v50, %v2178_v13  ;;  %v2253_v25 = vmul.f32 %v3357_v63, %v3357_v63 }
 0x115   :  { %v3280_v18 = vpop.f32.mrb[16].mxu0  ;;  %v2314_v22 = vadd.f32 %v2313_v12, %v2251_v14  ;;  %v1972_v27 = vadd.f32 %v3277_v58, %v1971_v16 }
 0x116   :  { %v3360_v23 = vpop.f32.mrb[16].mxu1  ;;  %v511_v24 = vpop.f32.mrb[17].mxu0  ;;  %v2107_v26 = vadd.f32 %v2106_v17, %v2044_v15  ;;  %v2180_v32 = vadd.f32 %v3357_v63, %v2179_v21  ;;  %v2048_v51 = vmul.f32 %v3280_v18, %v3280_v18 }
 0x117   :  { %v2046_v28 = vmul.f32 %v511_v24, %v511_v24  ;;  %v1120_v29 = vpop.f32.mrb[17].mxu1  ;;  %v3281_v30 = vpop.f32.mrb[18].mxu0  ;;  %v2315_v31 = vadd.f32 %v2314_v22, %v2252_v19  ;;  %v1973_v37 = vadd.f32 %v1972_v27, %v511_v24  ;;  %v2256_v55 = vmul.f32 %v3360_v23, %v3360_v23 }
 0x118   :  { %v2254_v33 = vmul.f32 %v1120_v29, %v1120_v29  ;;  %v2832_v34 = vpack.c.bf16 %v3281_v30, %v3280_v18  ;;  %v3361_v35 = vpop.f32.mrb[18].mxu1  ;;  %v514_v36 = vpop.f32.mrb[19].mxu0  ;;  %v2108_v38 = vadd.f32 %v2107_v26, %v2045_v20  ;;  %v2181_v41 = vadd.f32 %v2180_v32, %v1120_v29 }
 0x119   :  { %v2992_v39 = vpack.c.bf16 %v3361_v35, %v3360_v23  ;;  %v1123_v40 = vpop.f32.mrb[19].mxu1  ;;  %v2316_v42 = vadd.f32 %v2315_v31, %v2253_v25  ;;  %v2827_v43 = vpack.c.bf16 %v514_v36, %v511_v24  ;;  %v1974_v45 = vadd.f32 %v1973_v37, %v514_v36 }
 0x11a   :  { %3112 = vst [vmem:[%s3965_s4 + $0x48] sm:$0xff] %v2832_v34   ;;  %v2109_v44 = vadd.f32 %v2108_v38, %v2046_v28  ;;  %v2047_v46 = vmul.f32 %v514_v36, %v514_v36  ;;  %v2987_v47 = vpack.c.bf16 %v1123_v40, %v1120_v29  ;;  %v2182_v49 = vadd.f32 %v2181_v41, %v1123_v40 }
 0x11b   :  { %3143 = vst [vmem:[%s3966_s5 + $0x48] sm:$0xff] %v2992_v39   ;;  %v2317_v48 = vadd.f32 %v2316_v42, %v2254_v33  ;;  %3111 = vst [vmem:[%s3965_s4 + $0x40] sm:$0xff] %v2827_v43   ;;  %v2255_v50 = vmul.f32 %v1123_v40, %v1123_v40  ;;  %v1975_v52 = vadd.f32 %v3280_v18, %v1974_v45 }
 0x11c   :  { %v2110_v53 = vadd.f32 %v2109_v44, %v2047_v46  ;;  %3142 = vst [vmem:[%s3966_s5 + $0x40] sm:$0xff] %v2987_v47   ;;  %v2049_v56 = vmul.f32 %v3281_v30, %v3281_v30  ;;  %v2183_v57 = vadd.f32 %v3360_v23, %v2182_v49  ;;  %v2257_v61 = vmul.f32 %v3361_v35, %v3361_v35 }
 0x11d   :  { %v3284_v54 = vpop.f32.mrb[20].mxu0  ;;  %v2318_v58 = vadd.f32 %v2317_v48, %v2255_v50  ;;  %v1976_v63 = vadd.f32 %v3281_v30, %v1975_v52 }
 0x11e   :  { %v3364_v59 = vpop.f32.mrb[20].mxu1  ;;  %v527_v60 = vpop.f32.mrb[21].mxu0  ;;  %v2111_v62 = vadd.f32 %v2110_v53, %v2048_v51  ;;  %v2184_v4 = vadd.f32 %v3361_v35, %v2183_v57  ;;  %v2052_v23 = vmul.f32 %v3284_v54, %v3284_v54 }
 0x11f   :  { %v2050_v0 = vmul.f32 %v527_v60, %v527_v60  ;;  %v1136_v1 = vpop.f32.mrb[21].mxu1  ;;  %v3285_v2 = vpop.f32.mrb[22].mxu0  ;;  %v2319_v3 = vadd.f32 %v2318_v58, %v2256_v55  ;;  %v1977_v9 = vadd.f32 %v1976_v63, %v527_v60  ;;  %v2260_v27 = vmul.f32 %v3364_v59, %v3364_v59 }
 0x120   :  { %v2258_v5 = vmul.f32 %v1136_v1, %v1136_v1  ;;  %v2842_v6 = vpack.c.bf16 %v3285_v2, %v3284_v54  ;;  %v3365_v7 = vpop.f32.mrb[22].mxu1  ;;  %v530_v8 = vpop.f32.mrb[23].mxu0  ;;  %v2112_v10 = vadd.f32 %v2111_v62, %v2049_v56  ;;  %v2185_v13 = vadd.f32 %v2184_v4, %v1136_v1 }
 0x121   :  { %v3002_v11 = vpack.c.bf16 %v3365_v7, %v3364_v59  ;;  %v1139_v12 = vpop.f32.mrb[23].mxu1  ;;  %v2320_v14 = vadd.f32 %v2319_v3, %v2257_v61  ;;  %v2837_v15 = vpack.c.bf16 %v530_v8, %v527_v60  ;;  %v1978_v17 = vadd.f32 %v1977_v9, %v530_v8 }
 0x122   :  { %3114 = vst [vmem:[%s3965_s4 + $0x58] sm:$0xff] %v2842_v6   ;;  %v2113_v16 = vadd.f32 %v2112_v10, %v2050_v0  ;;  %v2051_v18 = vmul.f32 %v530_v8, %v530_v8  ;;  %v2997_v19 = vpack.c.bf16 %v1139_v12, %v1136_v1  ;;  %v2186_v21 = vadd.f32 %v2185_v13, %v1139_v12 }
 0x123   :  { %3145 = vst [vmem:[%s3966_s5 + $0x58] sm:$0xff] %v3002_v11   ;;  %v2321_v20 = vadd.f32 %v2320_v14, %v2258_v5  ;;  %3113 = vst [vmem:[%s3965_s4 + $0x50] sm:$0xff] %v2837_v15   ;;  %v2259_v22 = vmul.f32 %v1139_v12, %v1139_v12  ;;  %v1979_v24 = vadd.f32 %v3284_v54, %v1978_v17 }
 0x124   :  { %v2114_v25 = vadd.f32 %v2113_v16, %v2051_v18  ;;  %3144 = vst [vmem:[%s3966_s5 + $0x50] sm:$0xff] %v2997_v19   ;;  %v2053_v28 = vmul.f32 %v3285_v2, %v3285_v2  ;;  %v2187_v29 = vadd.f32 %v3364_v59, %v2186_v21  ;;  %v2261_v33 = vmul.f32 %v3365_v7, %v3365_v7 }
 0x125   :  { %v3288_v26 = vpop.f32.mrb[24].mxu0  ;;  %v2322_v30 = vadd.f32 %v2321_v20, %v2259_v22  ;;  %v1980_v35 = vadd.f32 %v3285_v2, %v1979_v24 }
 0x126   :  { %v3368_v31 = vpop.f32.mrb[24].mxu1  ;;  %v543_v32 = vpop.f32.mrb[25].mxu0  ;;  %v2115_v34 = vadd.f32 %v2114_v25, %v2052_v23  ;;  %v2188_v40 = vadd.f32 %v3365_v7, %v2187_v29  ;;  %v2056_v59 = vmul.f32 %v3288_v26, %v3288_v26 }
 0x127   :  { %v2054_v36 = vmul.f32 %v543_v32, %v543_v32  ;;  %v1152_v37 = vpop.f32.mrb[25].mxu1  ;;  %v3289_v38 = vpop.f32.mrb[26].mxu0  ;;  %v2323_v39 = vadd.f32 %v2322_v30, %v2260_v27  ;;  %v1981_v45 = vadd.f32 %v1980_v35, %v543_v32  ;;  %v2264_v63 = vmul.f32 %v3368_v31, %v3368_v31 }
 0x128   :  { %v2262_v41 = vmul.f32 %v1152_v37, %v1152_v37  ;;  %v2852_v42 = vpack.c.bf16 %v3289_v38, %v3288_v26  ;;  %v3369_v43 = vpop.f32.mrb[26].mxu1  ;;  %v546_v44 = vpop.f32.mrb[27].mxu0  ;;  %v2116_v46 = vadd.f32 %v2115_v34, %v2053_v28  ;;  %v2189_v49 = vadd.f32 %v2188_v40, %v1152_v37 }
 0x129   :  { %v3012_v47 = vpack.c.bf16 %v3369_v43, %v3368_v31  ;;  %v1155_v48 = vpop.f32.mrb[27].mxu1  ;;  %v2324_v50 = vadd.f32 %v2323_v39, %v2261_v33  ;;  %v2847_v51 = vpack.c.bf16 %v546_v44, %v543_v32  ;;  %v1982_v53 = vadd.f32 %v1981_v45, %v546_v44 }
 0x12a   :  { %3116 = vst [vmem:[%s3965_s4 + $0x68] sm:$0xff] %v2852_v42   ;;  %v2117_v52 = vadd.f32 %v2116_v46, %v2054_v36  ;;  %v2055_v54 = vmul.f32 %v546_v44, %v546_v44  ;;  %v3007_v55 = vpack.c.bf16 %v1155_v48, %v1152_v37  ;;  %v2190_v57 = vadd.f32 %v2189_v49, %v1155_v48 }
 0x12b   :  { %3147 = vst [vmem:[%s3966_s5 + $0x68] sm:$0xff] %v3012_v47   ;;  %v2325_v56 = vadd.f32 %v2324_v50, %v2262_v41  ;;  %3115 = vst [vmem:[%s3965_s4 + $0x60] sm:$0xff] %v2847_v51   ;;  %v2263_v58 = vmul.f32 %v1155_v48, %v1155_v48  ;;  %v1983_v60 = vadd.f32 %v3288_v26, %v1982_v53 }
 0x12c   :  { %v2118_v61 = vadd.f32 %v2117_v52, %v2055_v54  ;;  %3146 = vst [vmem:[%s3966_s5 + $0x60] sm:$0xff] %v3007_v55   ;;  %v2057_v0 = vmul.f32 %v3289_v38, %v3289_v38  ;;  %v2191_v1 = vadd.f32 %v3368_v31, %v2190_v57  ;;  %v2265_v5 = vmul.f32 %v3369_v43, %v3369_v43 }
 0x12d   :  { %v3292_v62 = vpop.f32.mrb[28].mxu0  ;;  %v2326_v2 = vadd.f32 %v2325_v56, %v2263_v58  ;;  %v1984_v7 = vadd.f32 %v3289_v38, %v1983_v60 }
 0x12e   :  { %v3372_v3 = vpop.f32.mrb[28].mxu1  ;;  %v559_v4 = vpop.f32.mrb[29].mxu0  ;;  %v2119_v6 = vadd.f32 %v2118_v61, %v2056_v59  ;;  %v2192_v12 = vadd.f32 %v3369_v43, %v2191_v1  ;;  %v2060_v31 = vmul.f32 %v3292_v62, %v3292_v62 }
 0x12f   :  { %v2058_v8 = vmul.f32 %v559_v4, %v559_v4  ;;  %v1168_v9 = vpop.f32.mrb[29].mxu1  ;;  %v3293_v10 = vpop.f32.mrb[30].mxu0  ;;  %v2327_v11 = vadd.f32 %v2326_v2, %v2264_v63  ;;  %v1985_v17 = vadd.f32 %v1984_v7, %v559_v4  ;;  %v2268_v35 = vmul.f32 %v3372_v3, %v3372_v3 }
 0x130   :  { %v2266_v13 = vmul.f32 %v1168_v9, %v1168_v9  ;;  %v2862_v14 = vpack.c.bf16 %v3293_v10, %v3292_v62  ;;  %v3373_v15 = vpop.f32.mrb[30].mxu1  ;;  %v562_v16 = vpop.f32.mrb[31].mxu0  ;;  %v2120_v18 = vadd.f32 %v2119_v6, %v2057_v0  ;;  %v2193_v21 = vadd.f32 %v2192_v12, %v1168_v9 }
 0x131   :  { %v3022_v19 = vpack.c.bf16 %v3373_v15, %v3372_v3  ;;  %v1171_v20 = vpop.f32.mrb[31].mxu1  ;;  %v2328_v22 = vadd.f32 %v2327_v11, %v2265_v5  ;;  %v2857_v23 = vpack.c.bf16 %v562_v16, %v559_v4  ;;  %v1986_v25 = vadd.f32 %v1985_v17, %v562_v16 }
 0x132   :  { %3118 = vst [vmem:[%s3965_s4 + $0x78] sm:$0xff] %v2862_v14   ;;  %v2121_v24 = vadd.f32 %v2120_v18, %v2058_v8  ;;  %v2059_v26 = vmul.f32 %v562_v16, %v562_v16  ;;  %v3017_v27 = vpack.c.bf16 %v1171_v20, %v1168_v9  ;;  %v2194_v29 = vadd.f32 %v2193_v21, %v1171_v20 }
 0x133   :  { %3149 = vst [vmem:[%s3966_s5 + $0x78] sm:$0xff] %v3022_v19   ;;  %v2329_v28 = vadd.f32 %v2328_v22, %v2266_v13  ;;  %3117 = vst [vmem:[%s3965_s4 + $0x70] sm:$0xff] %v2857_v23   ;;  %v2267_v30 = vmul.f32 %v1171_v20, %v1171_v20  ;;  %v1987_v32 = vadd.f32 %v3292_v62, %v1986_v25 }
 0x134   :  { %v2122_v33 = vadd.f32 %v2121_v24, %v2059_v26  ;;  %3148 = vst [vmem:[%s3966_s5 + $0x70] sm:$0xff] %v3017_v27   ;;  %v2061_v36 = vmul.f32 %v3293_v10, %v3293_v10  ;;  %v2195_v37 = vadd.f32 %v3372_v3, %v2194_v29  ;;  %v2269_v41 = vmul.f32 %v3373_v15, %v3373_v15 }
 0x135   :  { %v3296_v34 = vpop.f32.mrb[32].mxu0  ;;  %v2330_v38 = vadd.f32 %v2329_v28, %v2267_v30  ;;  %v1988_v43 = vadd.f32 %v3293_v10, %v1987_v32 }
 0x136   :  { %v3376_v39 = vpop.f32.mrb[32].mxu1  ;;  %v575_v40 = vpop.f32.mrb[33].mxu0  ;;  %v2123_v42 = vadd.f32 %v2122_v33, %v2060_v31  ;;  %v2196_v48 = vadd.f32 %v3373_v15, %v2195_v37  ;;  %v2064_v3 = vmul.f32 %v3296_v34, %v3296_v34 }
 0x137   :  { %v2062_v44 = vmul.f32 %v575_v40, %v575_v40  ;;  %v1184_v45 = vpop.f32.mrb[33].mxu1  ;;  %v3297_v46 = vpop.f32.mrb[34].mxu0  ;;  %v2331_v47 = vadd.f32 %v2330_v38, %v2268_v35  ;;  %v1989_v53 = vadd.f32 %v1988_v43, %v575_v40  ;;  %v2272_v7 = vmul.f32 %v3376_v39, %v3376_v39 }
 0x138   :  { %v2270_v49 = vmul.f32 %v1184_v45, %v1184_v45  ;;  %v2872_v50 = vpack.c.bf16 %v3297_v46, %v3296_v34  ;;  %v3377_v51 = vpop.f32.mrb[34].mxu1  ;;  %v578_v52 = vpop.f32.mrb[35].mxu0  ;;  %v2124_v54 = vadd.f32 %v2123_v42, %v2061_v36  ;;  %v2197_v57 = vadd.f32 %v2196_v48, %v1184_v45 }
 0x139   :  { %v3032_v55 = vpack.c.bf16 %v3377_v51, %v3376_v39  ;;  %v1187_v56 = vpop.f32.mrb[35].mxu1  ;;  %v2332_v58 = vadd.f32 %v2331_v47, %v2269_v41  ;;  %v2867_v59 = vpack.c.bf16 %v578_v52, %v575_v40  ;;  %v1990_v61 = vadd.f32 %v1989_v53, %v578_v52 }
 0x13a   :  { %3120 = vst [vmem:[%s3965_s4 + $0x88] sm:$0xff] %v2872_v50   ;;  %v2125_v60 = vadd.f32 %v2124_v54, %v2062_v44  ;;  %v2063_v62 = vmul.f32 %v578_v52, %v578_v52  ;;  %v3027_v63 = vpack.c.bf16 %v1187_v56, %v1184_v45  ;;  %v2198_v1 = vadd.f32 %v2197_v57, %v1187_v56 }
 0x13b   :  { %3151 = vst [vmem:[%s3966_s5 + $0x88] sm:$0xff] %v3032_v55   ;;  %v2333_v0 = vadd.f32 %v2332_v58, %v2270_v49  ;;  %3119 = vst [vmem:[%s3965_s4 + $0x80] sm:$0xff] %v2867_v59   ;;  %v2271_v2 = vmul.f32 %v1187_v56, %v1187_v56  ;;  %v1991_v4 = vadd.f32 %v3296_v34, %v1990_v61 }
 0x13c   :  { %v2126_v5 = vadd.f32 %v2125_v60, %v2063_v62  ;;  %3150 = vst [vmem:[%s3966_s5 + $0x80] sm:$0xff] %v3027_v63   ;;  %v2065_v8 = vmul.f32 %v3297_v46, %v3297_v46  ;;  %v2199_v9 = vadd.f32 %v3376_v39, %v2198_v1  ;;  %v2273_v13 = vmul.f32 %v3377_v51, %v3377_v51 }
 0x13d   :  { %v3300_v6 = vpop.f32.mrb[36].mxu0  ;;  %v2334_v10 = vadd.f32 %v2333_v0, %v2271_v2  ;;  %v1992_v15 = vadd.f32 %v3297_v46, %v1991_v4 }
 0x13e   :  { %v3380_v11 = vpop.f32.mrb[36].mxu1  ;;  %v591_v12 = vpop.f32.mrb[37].mxu0  ;;  %v2127_v14 = vadd.f32 %v2126_v5, %v2064_v3  ;;  %v2200_v20 = vadd.f32 %v3377_v51, %v2199_v9  ;;  %v2068_v39 = vmul.f32 %v3300_v6, %v3300_v6 }
 0x13f   :  { %v2066_v16 = vmul.f32 %v591_v12, %v591_v12  ;;  %v1200_v17 = vpop.f32.mrb[37].mxu1  ;;  %v3301_v18 = vpop.f32.mrb[38].mxu0  ;;  %v2335_v19 = vadd.f32 %v2334_v10, %v2272_v7  ;;  %v1993_v25 = vadd.f32 %v1992_v15, %v591_v12  ;;  %v2276_v43 = vmul.f32 %v3380_v11, %v3380_v11 }
 0x140   :  { %v2274_v21 = vmul.f32 %v1200_v17, %v1200_v17  ;;  %v2882_v22 = vpack.c.bf16 %v3301_v18, %v3300_v6  ;;  %v3381_v23 = vpop.f32.mrb[38].mxu1  ;;  %v594_v24 = vpop.f32.mrb[39].mxu0  ;;  %v2128_v26 = vadd.f32 %v2127_v14, %v2065_v8  ;;  %v2201_v29 = vadd.f32 %v2200_v20, %v1200_v17 }
 0x141   :  { %v3042_v27 = vpack.c.bf16 %v3381_v23, %v3380_v11  ;;  %v1203_v28 = vpop.f32.mrb[39].mxu1  ;;  %v2336_v30 = vadd.f32 %v2335_v19, %v2273_v13  ;;  %v2877_v31 = vpack.c.bf16 %v594_v24, %v591_v12  ;;  %v1994_v33 = vadd.f32 %v1993_v25, %v594_v24 }
 0x142   :  { %3122 = vst [vmem:[%s3965_s4 + $0x98] sm:$0xff] %v2882_v22   ;;  %v2129_v32 = vadd.f32 %v2128_v26, %v2066_v16  ;;  %v2067_v34 = vmul.f32 %v594_v24, %v594_v24  ;;  %v3037_v35 = vpack.c.bf16 %v1203_v28, %v1200_v17  ;;  %v2202_v37 = vadd.f32 %v2201_v29, %v1203_v28 }
 0x143   :  { %3153 = vst [vmem:[%s3966_s5 + $0x98] sm:$0xff] %v3042_v27   ;;  %v2337_v36 = vadd.f32 %v2336_v30, %v2274_v21  ;;  %3121 = vst [vmem:[%s3965_s4 + $0x90] sm:$0xff] %v2877_v31   ;;  %v2275_v38 = vmul.f32 %v1203_v28, %v1203_v28  ;;  %v1995_v40 = vadd.f32 %v3300_v6, %v1994_v33 }
 0x144   :  { %v2130_v41 = vadd.f32 %v2129_v32, %v2067_v34  ;;  %3152 = vst [vmem:[%s3966_s5 + $0x90] sm:$0xff] %v3037_v35   ;;  %v2069_v44 = vmul.f32 %v3301_v18, %v3301_v18  ;;  %v2203_v45 = vadd.f32 %v3380_v11, %v2202_v37  ;;  %v2277_v49 = vmul.f32 %v3381_v23, %v3381_v23 }
 0x145   :  { %v3304_v42 = vpop.f32.mrb[40].mxu0  ;;  %v2338_v46 = vadd.f32 %v2337_v36, %v2275_v38  ;;  %v1996_v51 = vadd.f32 %v3301_v18, %v1995_v40 }
 0x146   :  { %v3384_v47 = vpop.f32.mrb[40].mxu1  ;;  %v607_v48 = vpop.f32.mrb[41].mxu0  ;;  %v2131_v50 = vadd.f32 %v2130_v41, %v2068_v39  ;;  %v2204_v56 = vadd.f32 %v3381_v23, %v2203_v45  ;;  %v2072_v11 = vmul.f32 %v3304_v42, %v3304_v42 }
 0x147   :  { %v2070_v52 = vmul.f32 %v607_v48, %v607_v48  ;;  %v1216_v53 = vpop.f32.mrb[41].mxu1  ;;  %v3305_v54 = vpop.f32.mrb[42].mxu0  ;;  %v2339_v55 = vadd.f32 %v2338_v46, %v2276_v43  ;;  %v1997_v61 = vadd.f32 %v1996_v51, %v607_v48  ;;  %v2280_v15 = vmul.f32 %v3384_v47, %v3384_v47 }
 0x148   :  { %v2278_v57 = vmul.f32 %v1216_v53, %v1216_v53  ;;  %v2892_v58 = vpack.c.bf16 %v3305_v54, %v3304_v42  ;;  %v3385_v59 = vpop.f32.mrb[42].mxu1  ;;  %v610_v60 = vpop.f32.mrb[43].mxu0  ;;  %v2132_v62 = vadd.f32 %v2131_v50, %v2069_v44  ;;  %v2205_v1 = vadd.f32 %v2204_v56, %v1216_v53 }
 0x149   :  { %v3052_v63 = vpack.c.bf16 %v3385_v59, %v3384_v47  ;;  %v1219_v0 = vpop.f32.mrb[43].mxu1  ;;  %v2340_v2 = vadd.f32 %v2339_v55, %v2277_v49  ;;  %v2887_v3 = vpack.c.bf16 %v610_v60, %v607_v48  ;;  %v1998_v5 = vadd.f32 %v1997_v61, %v610_v60 }
 0x14a   :  { %3124 = vst [vmem:[%s3965_s4 + $0xa8] sm:$0xff] %v2892_v58   ;;  %v2133_v4 = vadd.f32 %v2132_v62, %v2070_v52  ;;  %v2071_v6 = vmul.f32 %v610_v60, %v610_v60  ;;  %v3047_v7 = vpack.c.bf16 %v1219_v0, %v1216_v53  ;;  %v2206_v9 = vadd.f32 %v2205_v1, %v1219_v0 }
 0x14b   :  { %3155 = vst [vmem:[%s3966_s5 + $0xa8] sm:$0xff] %v3052_v63   ;;  %v2341_v8 = vadd.f32 %v2340_v2, %v2278_v57  ;;  %3123 = vst [vmem:[%s3965_s4 + $0xa0] sm:$0xff] %v2887_v3   ;;  %v2279_v10 = vmul.f32 %v1219_v0, %v1219_v0  ;;  %v1999_v12 = vadd.f32 %v3304_v42, %v1998_v5 }
 0x14c   :  { %v2134_v13 = vadd.f32 %v2133_v4, %v2071_v6  ;;  %3154 = vst [vmem:[%s3966_s5 + $0xa0] sm:$0xff] %v3047_v7   ;;  %v2073_v16 = vmul.f32 %v3305_v54, %v3305_v54  ;;  %v2207_v17 = vadd.f32 %v3384_v47, %v2206_v9  ;;  %v2281_v21 = vmul.f32 %v3385_v59, %v3385_v59 }
 0x14d   :  { %v3308_v14 = vpop.f32.mrb[44].mxu0  ;;  %v2342_v18 = vadd.f32 %v2341_v8, %v2279_v10  ;;  %v2000_v23 = vadd.f32 %v3305_v54, %v1999_v12 }
 0x14e   :  { %v3388_v19 = vpop.f32.mrb[44].mxu1  ;;  %v623_v20 = vpop.f32.mrb[45].mxu0  ;;  %v2135_v22 = vadd.f32 %v2134_v13, %v2072_v11  ;;  %v2208_v28 = vadd.f32 %v3385_v59, %v2207_v17  ;;  %v2076_v47 = vmul.f32 %v3308_v14, %v3308_v14 }
 0x14f   :  { %v2074_v24 = vmul.f32 %v623_v20, %v623_v20  ;;  %v1232_v25 = vpop.f32.mrb[45].mxu1  ;;  %v3309_v26 = vpop.f32.mrb[46].mxu0  ;;  %v2343_v27 = vadd.f32 %v2342_v18, %v2280_v15  ;;  %v2001_v33 = vadd.f32 %v2000_v23, %v623_v20  ;;  %v2284_v51 = vmul.f32 %v3388_v19, %v3388_v19 }
 0x150   :  { %v2282_v29 = vmul.f32 %v1232_v25, %v1232_v25  ;;  %v2902_v30 = vpack.c.bf16 %v3309_v26, %v3308_v14  ;;  %v3389_v31 = vpop.f32.mrb[46].mxu1  ;;  %v626_v32 = vpop.f32.mrb[47].mxu0  ;;  %v2136_v34 = vadd.f32 %v2135_v22, %v2073_v16  ;;  %v2209_v37 = vadd.f32 %v2208_v28, %v1232_v25 }
 0x151   :  { %v3062_v35 = vpack.c.bf16 %v3389_v31, %v3388_v19  ;;  %v1235_v36 = vpop.f32.mrb[47].mxu1  ;;  %v2344_v38 = vadd.f32 %v2343_v27, %v2281_v21  ;;  %v2897_v39 = vpack.c.bf16 %v626_v32, %v623_v20  ;;  %v2002_v41 = vadd.f32 %v2001_v33, %v626_v32 }
 0x152   :  { %3126 = vst [vmem:[%s3965_s4 + $0xb8] sm:$0xff] %v2902_v30   ;;  %v2137_v40 = vadd.f32 %v2136_v34, %v2074_v24  ;;  %v2075_v42 = vmul.f32 %v626_v32, %v626_v32  ;;  %v3057_v43 = vpack.c.bf16 %v1235_v36, %v1232_v25  ;;  %v2210_v45 = vadd.f32 %v2209_v37, %v1235_v36 }
 0x153   :  { %3157 = vst [vmem:[%s3966_s5 + $0xb8] sm:$0xff] %v3062_v35   ;;  %v2345_v44 = vadd.f32 %v2344_v38, %v2282_v29  ;;  %3125 = vst [vmem:[%s3965_s4 + $0xb0] sm:$0xff] %v2897_v39   ;;  %v2283_v46 = vmul.f32 %v1235_v36, %v1235_v36  ;;  %v2003_v48 = vadd.f32 %v3308_v14, %v2002_v41 }
 0x154   :  { %v2138_v49 = vadd.f32 %v2137_v40, %v2075_v42  ;;  %3156 = vst [vmem:[%s3966_s5 + $0xb0] sm:$0xff] %v3057_v43   ;;  %v2077_v52 = vmul.f32 %v3309_v26, %v3309_v26  ;;  %v2211_v53 = vadd.f32 %v3388_v19, %v2210_v45  ;;  %v2285_v57 = vmul.f32 %v3389_v31, %v3389_v31 }
 0x155   :  { %v3312_v50 = vpop.f32.mrb[48].mxu0  ;;  %v2346_v54 = vadd.f32 %v2345_v44, %v2283_v46  ;;  %v2004_v59 = vadd.f32 %v3309_v26, %v2003_v48 }
 0x156   :  { %v3392_v55 = vpop.f32.mrb[48].mxu1  ;;  %v639_v56 = vpop.f32.mrb[49].mxu0  ;;  %v2139_v58 = vadd.f32 %v2138_v49, %v2076_v47  ;;  %v2212_v0 = vadd.f32 %v3389_v31, %v2211_v53  ;;  %v2080_v19 = vmul.f32 %v3312_v50, %v3312_v50 }
 0x157   :  { %v2078_v60 = vmul.f32 %v639_v56, %v639_v56  ;;  %v1248_v61 = vpop.f32.mrb[49].mxu1  ;;  %v3313_v62 = vpop.f32.mrb[50].mxu0  ;;  %v2347_v63 = vadd.f32 %v2346_v54, %v2284_v51  ;;  %v2005_v5 = vadd.f32 %v2004_v59, %v639_v56  ;;  %v2288_v23 = vmul.f32 %v3392_v55, %v3392_v55 }
 0x158   :  { %v2286_v1 = vmul.f32 %v1248_v61, %v1248_v61  ;;  %v2912_v2 = vpack.c.bf16 %v3313_v62, %v3312_v50  ;;  %v3393_v3 = vpop.f32.mrb[50].mxu1  ;;  %v642_v4 = vpop.f32.mrb[51].mxu0  ;;  %v2140_v6 = vadd.f32 %v2139_v58, %v2077_v52  ;;  %v2213_v9 = vadd.f32 %v2212_v0, %v1248_v61 }
 0x159   :  { %v3072_v7 = vpack.c.bf16 %v3393_v3, %v3392_v55  ;;  %v1251_v8 = vpop.f32.mrb[51].mxu1  ;;  %v2348_v10 = vadd.f32 %v2347_v63, %v2285_v57  ;;  %v2907_v11 = vpack.c.bf16 %v642_v4, %v639_v56  ;;  %v2006_v13 = vadd.f32 %v2005_v5, %v642_v4 }
 0x15a   :  { %3128 = vst [vmem:[%s3965_s4 + $0xc8] sm:$0xff] %v2912_v2   ;;  %v2141_v12 = vadd.f32 %v2140_v6, %v2078_v60  ;;  %v2079_v14 = vmul.f32 %v642_v4, %v642_v4  ;;  %v3067_v15 = vpack.c.bf16 %v1251_v8, %v1248_v61  ;;  %v2214_v17 = vadd.f32 %v2213_v9, %v1251_v8 }
 0x15b   :  { %3159 = vst [vmem:[%s3966_s5 + $0xc8] sm:$0xff] %v3072_v7   ;;  %v2349_v16 = vadd.f32 %v2348_v10, %v2286_v1  ;;  %3127 = vst [vmem:[%s3965_s4 + $0xc0] sm:$0xff] %v2907_v11   ;;  %v2287_v18 = vmul.f32 %v1251_v8, %v1251_v8  ;;  %v2007_v20 = vadd.f32 %v3312_v50, %v2006_v13 }
 0x15c   :  { %v2142_v21 = vadd.f32 %v2141_v12, %v2079_v14  ;;  %3158 = vst [vmem:[%s3966_s5 + $0xc0] sm:$0xff] %v3067_v15   ;;  %v2081_v24 = vmul.f32 %v3313_v62, %v3313_v62  ;;  %v2215_v25 = vadd.f32 %v3392_v55, %v2214_v17  ;;  %v2289_v29 = vmul.f32 %v3393_v3, %v3393_v3 }
 0x15d   :  { %v3316_v22 = vpop.f32.mrb[52].mxu0  ;;  %v2350_v26 = vadd.f32 %v2349_v16, %v2287_v18  ;;  %v2008_v31 = vadd.f32 %v3313_v62, %v2007_v20 }
 0x15e   :  { %v3396_v27 = vpop.f32.mrb[52].mxu1  ;;  %v655_v28 = vpop.f32.mrb[53].mxu0  ;;  %v2143_v30 = vadd.f32 %v2142_v21, %v2080_v19  ;;  %v2216_v36 = vadd.f32 %v3393_v3, %v2215_v25  ;;  %v2084_v55 = vmul.f32 %v3316_v22, %v3316_v22 }
 0x15f   :  { %v2082_v32 = vmul.f32 %v655_v28, %v655_v28  ;;  %v1264_v33 = vpop.f32.mrb[53].mxu1  ;;  %v3317_v34 = vpop.f32.mrb[54].mxu0  ;;  %v2351_v35 = vadd.f32 %v2350_v26, %v2288_v23  ;;  %v2009_v41 = vadd.f32 %v2008_v31, %v655_v28  ;;  %v2292_v59 = vmul.f32 %v3396_v27, %v3396_v27 }
 0x160   :  { %v2290_v37 = vmul.f32 %v1264_v33, %v1264_v33  ;;  %v2922_v38 = vpack.c.bf16 %v3317_v34, %v3316_v22  ;;  %v3397_v39 = vpop.f32.mrb[54].mxu1  ;;  %v658_v40 = vpop.f32.mrb[55].mxu0  ;;  %v2144_v42 = vadd.f32 %v2143_v30, %v2081_v24  ;;  %v2217_v45 = vadd.f32 %v2216_v36, %v1264_v33 }
 0x161   :  { %v3082_v43 = vpack.c.bf16 %v3397_v39, %v3396_v27  ;;  %v1267_v44 = vpop.f32.mrb[55].mxu1  ;;  %v2352_v46 = vadd.f32 %v2351_v35, %v2289_v29  ;;  %v2917_v47 = vpack.c.bf16 %v658_v40, %v655_v28  ;;  %v2010_v49 = vadd.f32 %v2009_v41, %v658_v40 }
 0x162   :  { %3130 = vst [vmem:[%s3965_s4 + $0xd8] sm:$0xff] %v2922_v38   ;;  %v2145_v48 = vadd.f32 %v2144_v42, %v2082_v32  ;;  %v2083_v50 = vmul.f32 %v658_v40, %v658_v40  ;;  %v3077_v51 = vpack.c.bf16 %v1267_v44, %v1264_v33  ;;  %v2218_v53 = vadd.f32 %v2217_v45, %v1267_v44 }
 0x163   :  { %3161 = vst [vmem:[%s3966_s5 + $0xd8] sm:$0xff] %v3082_v43   ;;  %v2353_v52 = vadd.f32 %v2352_v46, %v2290_v37  ;;  %3129 = vst [vmem:[%s3965_s4 + $0xd0] sm:$0xff] %v2917_v47   ;;  %v2291_v54 = vmul.f32 %v1267_v44, %v1267_v44  ;;  %v2011_v56 = vadd.f32 %v3316_v22, %v2010_v49 }
 0x164   :  { %v2146_v57 = vadd.f32 %v2145_v48, %v2083_v50  ;;  %3160 = vst [vmem:[%s3966_s5 + $0xd0] sm:$0xff] %v3077_v51   ;;  %v2085_v60 = vmul.f32 %v3317_v34, %v3317_v34  ;;  %v2219_v61 = vadd.f32 %v3396_v27, %v2218_v53  ;;  %v2293_v1 = vmul.f32 %v3397_v39, %v3397_v39 }
 0x165   :  { %v3320_v58 = vpop.f32.mrb[56].mxu0  ;;  %v2354_v62 = vadd.f32 %v2353_v52, %v2291_v54  ;;  %v2012_v3 = vadd.f32 %v3317_v34, %v2011_v56 }
 0x166   :  { %v3400_v63 = vpop.f32.mrb[56].mxu1  ;;  %v671_v0 = vpop.f32.mrb[57].mxu0  ;;  %v2147_v2 = vadd.f32 %v2146_v57, %v2084_v55  ;;  %v2220_v8 = vadd.f32 %v3397_v39, %v2219_v61  ;;  %v2088_v27 = vmul.f32 %v3320_v58, %v3320_v58 }
 0x167   :  { %v2086_v4 = vmul.f32 %v671_v0, %v671_v0  ;;  %v1280_v5 = vpop.f32.mrb[57].mxu1  ;;  %v3321_v6 = vpop.f32.mrb[58].mxu0  ;;  %v2355_v7 = vadd.f32 %v2354_v62, %v2292_v59  ;;  %v2013_v13 = vadd.f32 %v2012_v3, %v671_v0  ;;  %v2296_v31 = vmul.f32 %v3400_v63, %v3400_v63 }
 0x168   :  { %v2294_v9 = vmul.f32 %v1280_v5, %v1280_v5  ;;  %v2932_v10 = vpack.c.bf16 %v3321_v6, %v3320_v58  ;;  %v3401_v11 = vpop.f32.mrb[58].mxu1  ;;  %v674_v12 = vpop.f32.mrb[59].mxu0  ;;  %v2148_v14 = vadd.f32 %v2147_v2, %v2085_v60  ;;  %v2221_v17 = vadd.f32 %v2220_v8, %v1280_v5 }
 0x169   :  { %v3092_v15 = vpack.c.bf16 %v3401_v11, %v3400_v63  ;;  %v1283_v16 = vpop.f32.mrb[59].mxu1  ;;  %v2356_v18 = vadd.f32 %v2355_v7, %v2293_v1  ;;  %v2927_v19 = vpack.c.bf16 %v674_v12, %v671_v0  ;;  %v2014_v21 = vadd.f32 %v2013_v13, %v674_v12 }
 0x16a   :  { %3132 = vst [vmem:[%s3965_s4 + $0xe8] sm:$0xff] %v2932_v10   ;;  %v2149_v20 = vadd.f32 %v2148_v14, %v2086_v4  ;;  %v2087_v22 = vmul.f32 %v674_v12, %v674_v12  ;;  %v3087_v23 = vpack.c.bf16 %v1283_v16, %v1280_v5  ;;  %v2222_v25 = vadd.f32 %v2221_v17, %v1283_v16 }
 0x16b   :  { %3163 = vst [vmem:[%s3966_s5 + $0xe8] sm:$0xff] %v3092_v15   ;;  %v2357_v24 = vadd.f32 %v2356_v18, %v2294_v9  ;;  %3131 = vst [vmem:[%s3965_s4 + $0xe0] sm:$0xff] %v2927_v19   ;;  %v2295_v26 = vmul.f32 %v1283_v16, %v1283_v16  ;;  %v2015_v28 = vadd.f32 %v3320_v58, %v2014_v21 }
 0x16c   :  { %v2150_v29 = vadd.f32 %v2149_v20, %v2087_v22  ;;  %3162 = vst [vmem:[%s3966_s5 + $0xe0] sm:$0xff] %v3087_v23   ;;  %v2089_v32 = vmul.f32 %v3321_v6, %v3321_v6  ;;  %v2223_v33 = vadd.f32 %v3400_v63, %v2222_v25  ;;  %v2297_v37 = vmul.f32 %v3401_v11, %v3401_v11 }
 0x16d   :  { %v3324_v30 = vpop.f32.mrb[60].mxu0  ;;  %v2358_v34 = vadd.f32 %v2357_v24, %v2295_v26  ;;  %v2016_v39 = vadd.f32 %v3321_v6, %v2015_v28 }
 0x16e   :  { %v3404_v35 = vpop.f32.mrb[60].mxu1  ;;  %v687_v36 = vpop.f32.mrb[61].mxu0  ;;  %v2151_v38 = vadd.f32 %v2150_v29, %v2088_v27  ;;  %v2224_v44 = vadd.f32 %v3401_v11, %v2223_v33  ;;  %v2092_v63 = vmul.f32 %v3324_v30, %v3324_v30  ;;  %v1957_v29 = vld [vmem:[#allocation2] sm:$0x1] }
 0x16f   :  { %v2090_v40 = vmul.f32 %v687_v36, %v687_v36  ;;  %v1296_v41 = vpop.f32.mrb[61].mxu1  ;;  %v3325_v42 = vpop.f32.mrb[62].mxu0  ;;  %v2359_v43 = vadd.f32 %v2358_v34, %v2296_v31  ;;  %v2017_v49 = vadd.f32 %v2016_v39, %v687_v36  ;;  %v2300_v2 = vmul.f32 %v3404_v35, %v3404_v35  ;;  %v2165_v34 = vld [vmem:[#allocation2 + $0x8] sm:$0x1] }
 0x170   :  { %v2298_v45 = vmul.f32 %v1296_v41, %v1296_v41  ;;  %v2942_v46 = vpack.c.bf16 %v3325_v42, %v3324_v30  ;;  %v3405_v47 = vpop.f32.mrb[62].mxu1  ;;  %v690_v48 = vpop.f32.mrb[63].mxu0  ;;  %v2152_v50 = vadd.f32 %v2151_v38, %v2089_v32  ;;  %v2225_v53 = vadd.f32 %v2224_v44, %v1296_v41 }
 0x171   :  { %v3102_v51 = vpack.c.bf16 %v3405_v47, %v3404_v35  ;;  %v1299_v52 = vpop.f32.mrb[63].mxu1  ;;  %v2360_v54 = vadd.f32 %v2359_v43, %v2297_v37  ;;  %v2937_v55 = vpack.c.bf16 %v690_v48, %v687_v36  ;;  %v2018_v57 = vadd.f32 %v2017_v49, %v690_v48 }
 0x172   :  { %3134 = vst [vmem:[%s3965_s4 + $0xf8] sm:$0xff] %v2942_v46   ;;  %v2153_v56 = vadd.f32 %v2152_v50, %v2090_v40  ;;  %v2091_v58 = vmul.f32 %v690_v48, %v690_v48  ;;  %v3097_v59 = vpack.c.bf16 %v1299_v52, %v1296_v41  ;;  %v2226_v61 = vadd.f32 %v2225_v53, %v1299_v52  ;;  %v2237_v40 = vld [vmem:[#allocation2 + $0x9] sm:$0x1] }
 0x173   :  { %3165 = vst [vmem:[%s3966_s5 + $0xf8] sm:$0xff] %v3102_v51   ;;  %v2361_v60 = vadd.f32 %v2360_v54, %v2298_v45  ;;  %3133 = vst [vmem:[%s3965_s4 + $0xf0] sm:$0xff] %v2937_v55   ;;  %v2299_v62 = vmul.f32 %v1299_v52, %v1299_v52  ;;  %v2019_v0 = vadd.f32 %v3324_v30, %v2018_v57 }
 0x174   :  { %v2154_v1 = vadd.f32 %v2153_v56, %v2091_v58  ;;  %3164 = vst [vmem:[%s3966_s5 + $0xf0] sm:$0xff] %v3097_v59   ;;  %v2227_v3 = vadd.f32 %v3404_v35, %v2226_v61  ;;  %v2093_v5 = vmul.f32 %v3325_v42, %v3325_v42  ;;  %v2301_v8 = vmul.f32 %v3405_v47, %v3405_v47  ;;  %v2029_v35 = vld [vmem:[#allocation2 + $0x1] sm:$0x1] }
 0x175   :  { %v2362_v4 = vadd.f32 %v2361_v60, %v2299_v62  ;;  %v2020_v6 = vadd.f32 %v3325_v42, %v2019_v0 }
 0x176   :  { %v2155_v7 = vadd.f32 %v2154_v1, %v2092_v63  ;;  %v2228_v9 = vadd.f32 %v3405_v47, %v2227_v3 }
 0x177   :  { %v2363_v10 = vadd.f32 %v2362_v4, %v2300_v2  ;;  %v2021_v11 = vrot.slane %v2020_v6, 4 }
 0x178   :  { %v2156_v12 = vadd.f32 %v2155_v7, %v2093_v5  ;;  %v2229_v13 = vrot.slane %v2228_v9, 4 }
 0x179   :  { %v2364_v14 = vadd.f32 %v2363_v10, %v2301_v8  ;;  %v2022_v15 = vadd.f32 %v2021_v11, %v2020_v6 }
 0x17a   :  { %v2157_v16 = vrot.slane %v2156_v12, 4  ;;  %v2230_v17 = vadd.f32 %v2229_v13, %v2228_v9 }
 0x17b   :  { %v2365_v18 = vrot.slane %v2364_v14, 4  ;;  %v2023_v19 = vrot.slane %v2022_v15, 2 }
 0x17c   :  { %v2158_v20 = vadd.f32 %v2157_v16, %v2156_v12  ;;  %v2231_v21 = vrot.slane %v2230_v17, 2 }
 0x17d   :  { %v2366_v22 = vadd.f32 %v2365_v18, %v2364_v14  ;;  %v2024_v23 = vadd.f32 %v2023_v19, %v2022_v15 }
 0x17e   :  { %v2159_v24 = vrot.slane %v2158_v20, 2  ;;  %v2232_v25 = vadd.f32 %v2231_v21, %v2230_v17 }
 0x17f   :  { %v2367_v26 = vrot.slane %v2366_v22, 2  ;;  %v2025_v27 = vrot.slane %v2024_v23, 1 }
 0x180   :  { %v2160_v28 = vadd.f32 %v2159_v24, %v2158_v20  ;;  %v2233_v30 = vrot.slane %v2232_v25, 1 }
 0x181   :  { %v2368_v31 = vadd.f32 %v2367_v26, %v2366_v22  ;;  %v2026_v32 = vadd.f32 %v2025_v27, %v2024_v23 }
 0x182   :  { %v2161_v33 = vrot.slane %v2160_v28, 1  ;;  %v2234_v36 = vadd.f32 %v2233_v30, %v2232_v25 }
 0x183   :  { %v2369_v37 = vrot.slane %v2368_v31, 1  ;;  %v2027_v38 = vadd.f32 %v2026_v32, %v1957_v29 }
 0x184   :  { %v2162_v39 = vadd.f32 %v2161_v33, %v2160_v28  ;;  %v2235_v41 = vadd.f32 %v2234_v36, %v2165_v34 }
 0x185   :  { %v2370_v42 = vadd.f32 %v2369_v37, %v2368_v31  ;;  %2028 = vst [vmem:[#allocation2] sm:$0x1] %v2027_v38 }
 0x186   :  { %v2163_v43 = vadd.f32 %v2162_v39, %v2029_v35  ;;  %2236 = vst [vmem:[#allocation2 + $0x8] sm:$0x1] %v2235_v41 }
 0x187   :  { %v2371_v44 = vadd.f32 %v2370_v42, %v2237_v40 }
 0x188   :  { %2164 = vst [vmem:[#allocation2 + $0x1] sm:$0x1] %v2163_v43 }
 0x189   :  { %2372 = vst [vmem:[#allocation2 + $0x9] sm:$0x1] %v2371_v44 }
 0x18f   :  { %v2376_v45 = vld [vmem:[#allocation2] sm:$0xff] }
 0x190   :  { %2378 = vst [vmem:[%s3967_s6] sm:$0xff] %v2376_v45  ;;  %v2377_v46 = vld [vmem:[#allocation2 + $0x8] sm:$0xff] }
 0x191   :  { %2379 = vst [vmem:[%s3967_s6 + $0x8] sm:$0xff] %v2377_v46 }

</bundles_post_ra>
